<compile_context>
chip_gen: v7x
topology: tpu7x:2x2x1
jax: 0.10.0
libtpu: 0.0.40
codegen_flags: <defaults>
</compile_context>

<pallas_src>
import functools
import math

import jax
import jax.numpy as jnp
from jax import lax
from jax.experimental import pallas as pl
from jax.experimental.pallas import tpu as pltpu

_NEG_BIG = -1e30  # bias value for padded key columns


def _round_up(x, m):
    return ((x + m - 1) // m) * m


def _padded_bytes(shape, dtype):
    """Rough VMEM footprint of one buffer (trailing dims padded to the hw tile)."""
    size = jnp.dtype(dtype).itemsize
    dims = list(shape)
    if len(dims) >= 1:
        dims[-1] = _round_up(dims[-1], 128)
    if len(dims) >= 2:
        dims[-2] = _round_up(dims[-2], max(8, 32 // size))
    n = 1
    for d in dims:
        n *= d
    return n * size


# ----------------------------- fused attention kernel -----------------------------------
def _make_attn_kernel(*, no_heads, c_hidden, eps, compute_dtype):
    H, D = no_heads, c_hidden
    HD = H * D

    def kernel(q_ref, k_ref, v_ref, bias_ref,
               wqg_ref, bg_ref, wo_ref, bo_ref, lng_ref, lnb_ref,
               out_ref,
               qh_scr, qln_scr, gate_scr, m_scr, l_scr, acc_scr):
        ki = pl.program_id(2)

        # ---------------- per-q-tile init (first K tile only) ----------------------------
        @pl.when(ki == 0)
        def _init():
            x = q_ref[...].astype(jnp.float32)                           # [tq, C]
            mu = jnp.mean(x, axis=-1, keepdims=True)
            var = jnp.mean(jnp.square(x - mu), axis=-1, keepdims=True)
            q_ln = (x - mu) * lax.rsqrt(var + eps) * lng_ref[...] + lnb_ref[...]
            qln_scr[...] = q_ln                                          # residual input

            # one wide projection: [tq,C]@[C,2HD] -> Q (pre-scaled by 1/sqrt(D)) | gate
            qg = jnp.dot(q_ln.astype(compute_dtype), wqg_ref[...],
                         preferred_element_type=jnp.float32)             # [tq, 2HD]
            gate_scr[...] = jax.nn.sigmoid(qg[:, HD:] + bg_ref[...])
            q_all = qg[:, :HD].astype(compute_dtype)
            # head-major q scratch [H, tq, D]; built once per q tile, leading-dim indexed.
            for h in range(H):
                qh_scr[h] = q_all[:, h * D:(h + 1) * D]

            m_scr[...] = jnp.full(m_scr.shape, -jnp.inf, jnp.float32)
            l_scr[...] = jnp.zeros(l_scr.shape, jnp.float32)
            acc_scr[...] = jnp.zeros(acc_scr.shape, jnp.float32)

        # --------- head-batched online-softmax attention over the current K tile ---------
        s = jnp.einsum('hqd,hkd->hqk', qh_scr[...], k_ref[...],
                       preferred_element_type=jnp.float32)                # [H, tq, tk]
        s = s + bias_ref[...]                                             # triangle(+mask) bias
        m_new = jnp.maximum(m_scr[...], jnp.max(s, axis=-1, keepdims=True))
        alpha = jnp.exp(m_scr[...] - m_new)
        p = jnp.exp(s - m_new)
        l_scr[...] = alpha * l_scr[...] + jnp.sum(p, axis=-1, keepdims=True)
        acc_scr[...] = alpha * acc_scr[...] + jnp.einsum(
            'hqk,hkd->hqd', p.astype(compute_dtype), v_ref[...],
            preferred_element_type=jnp.float32)
        m_scr[...] = m_new

        # -------------- finalize (last K tile): gate, output projection, residual --------
        @pl.when(ki == pl.num_programs(2) - 1)
        def _finalize():
            inv_l = 1.0 / l_scr[...]                                      # [H, tq, 1]
            o_flat = jnp.concatenate(
                [acc_scr[h] * inv_l[h] for h in range(H)], axis=-1)       # [tq, HD] f32
            o_g = (o_flat * gate_scr[...]).astype(compute_dtype)
            out = jnp.dot(o_g, wo_ref[...],
                          preferred_element_type=jnp.float32) + bo_ref[...]
            # TODO(synk): for production C < 128, fold q rows into the lane dim in the
            # wrapper so this store (and the q load) is a full-width vst.
            out_ref[...] = (qln_scr[...] + out).astype(out_ref.dtype)

    return kernel


# ------------------------------ one attention direction ---------------------------------
def _fused_gated_mha(q_x, kv_x, bias, mha_p, ln_g, ln_b, *, apply_ln_kv,
                     no_heads, c_hidden, eps, block_q, block_k, compute_dtype):
    """bias: pre-materialised [B, H, Q, K] (triangle + mask) bias for this direction."""
    B, Q, C = q_x.shape
    K = kv_x.shape[1]
    H, D = no_heads, c_hidden
    HD = H * D

    # ---- hoisted once per call (plain XLA): optional KV LayerNorm + K|V projection ----
    kv = kv_x.astype(jnp.float32)
    if apply_ln_kv:
        mu = jnp.mean(kv, axis=-1, keepdims=True)
        var = jnp.mean(jnp.square(kv - mu), axis=-1, keepdims=True)
        kv = (kv - mu) * lax.rsqrt(var + eps) * ln_g + ln_b
    kv_c = kv.astype(compute_dtype)
    wk = mha_p["wk"].reshape(C, H, D).astype(compute_dtype)
    wv = mha_p["wv"].reshape(C, H, D).astype(compute_dtype)
    k_heads = jnp.einsum('bkc,chd->bhkd', kv_c, wk,
                         preferred_element_type=jnp.float32).astype(compute_dtype)
    v_heads = jnp.einsum('bkc,chd->bhkd', kv_c, wv,
                         preferred_element_type=jnp.float32).astype(compute_dtype)

    # ---- tile sizes & padding (no silent full-Q fallback) ----
    bq = min(_round_up(block_q, 8), _round_up(Q, 8))
    Qp = _round_up(Q, bq)
    if _round_up(K, 8) <= block_k:
        tk = _round_up(K, 8)              # single K tile (lane dim == full array dim)
    else:
        tk = _round_up(block_k, 128)      # tiled K: bias lane dim must be a 128-multiple
    Kp = _round_up(K, tk)
    n_q, n_k = Qp // bq, Kp // tk

    q_pad = jnp.pad(q_x, ((0, 0), (0, Qp - Q), (0, 0)))
    k_pad = jnp.pad(k_heads, ((0, 0), (0, 0), (0, Kp - K), (0, 0)))
    v_pad = jnp.pad(v_heads, ((0, 0), (0, 0), (0, Kp - K), (0, 0)))
    bias_f = bias.astype(jnp.float32)
    if Kp > K:   # padded keys must never win the softmax
        bias_f = jnp.pad(bias_f, ((0, 0), (0, 0), (0, 0), (0, Kp - K)),
                         constant_values=_NEG_BIG)
    if Qp > Q:
        bias_f = jnp.pad(bias_f, ((0, 0), (0, 0), (0, Qp - Q), (0, 0)))

    # ---- fused / pre-scaled weights (trace-time, free) ----
    wqg = jnp.concatenate([mha_p["wq"] * (1.0 / math.sqrt(D)), mha_p["wg"]],
                          axis=1).astype(compute_dtype)                   # [C, 2HD]
    bg = mha_p["bg"].reshape(1, HD).astype(jnp.float32)
    wo = mha_p["wo"].astype(compute_dtype)                                # [HD, C]
    bo = mha_p["bo"].reshape(1, C).astype(jnp.float32)
    lng = ln_g.reshape(1, C).astype(jnp.float32)
    lnb = ln_b.reshape(1, C).astype(jnp.float32)

    # ---- explicit VMEM budget -> raise the scoped limit only as far as needed ----
    blk_bytes = (2 * _padded_bytes((bq, C), jnp.float32)                  # q (double buffered)
                 + 4 * _padded_bytes((H, tk, D), compute_dtype)           # k, v
                 + 2 * _padded_bytes((H, bq, tk), jnp.float32)            # bias
                 + 2 * _padded_bytes((bq, C), jnp.float32))               # out
    weight_bytes = (_padded_bytes((C, 2 * HD), compute_dtype)
                    + _padded_bytes((1, HD), jnp.float32)
                    + _padded_bytes((HD, C), compute_dtype)
                    + 3 * _padded_bytes((1, C), jnp.float32))
    scratch_bytes = (2 * _padded_bytes((H, bq, D), jnp.float32)
                     + _padded_bytes((bq, C), jnp.float32)
                     + _padded_bytes((bq, HD), jnp.float32)
                     + 2 * _padded_bytes((H, bq, 1), jnp.float32))
    vmem_limit = int(min(100 * 2**20,
                         max(32 * 2**20, 2 * (blk_bytes + 2 * weight_bytes + scratch_bytes))))

    def _const(shape):
        return pl.BlockSpec(shape, lambda b, qi, ki: (0,) * len(shape))

    kernel = _make_attn_kernel(no_heads=H, c_hidden=D, eps=eps,
                               compute_dtype=compute_dtype)

    out = pl.pallas_call(
        kernel,
        out_shape=jax.ShapeDtypeStruct((B, Qp, C), jnp.float32),
        grid=(B, n_q, n_k),
        in_specs=[
            pl.BlockSpec((None, bq, C), lambda b, qi, ki: (b, qi, 0)),      # q
            pl.BlockSpec((None, H, tk, D), lambda b, qi, ki: (b, 0, ki, 0)),  # k (head-major)
            pl.BlockSpec((None, H, tk, D), lambda b, qi, ki: (b, 0, ki, 0)),  # v (head-major)
            pl.BlockSpec((None, H, bq, tk), lambda b, qi, ki: (b, 0, qi, ki)),  # bias
            _const((C, 2 * HD)),   # wqg
            _const((1, HD)),       # bg
            _const((HD, C)),       # wo
            _const((1, C)),        # bo
            _const((1, C)),        # ln gamma
            _const((1, C)),        # ln beta
        ],
        out_specs=pl.BlockSpec((None, bq, C), lambda b, qi, ki: (b, qi, 0)),
        scratch_shapes=[
            pltpu.VMEM((H, bq, D), compute_dtype),   # q, head-major
            pltpu.VMEM((bq, C), jnp.float32),        # LayerNorm(q) for residual
            pltpu.VMEM((bq, HD), jnp.float32),       # sigmoid gate
            pltpu.VMEM((H, bq, 1), jnp.float32),     # running max
            pltpu.VMEM((H, bq, 1), jnp.float32),     # running denom
            pltpu.VMEM((H, bq, D), jnp.float32),     # running numerator
        ],
        compiler_params=pltpu.CompilerParams(
            dimension_semantics=("parallel", "parallel", "arbitrary"),
            vmem_limit_bytes=vmem_limit),
    )(q_pad, k_pad, v_pad, bias_f, wqg, bg, wo, bo, lng, lnb)

    return out[:, :Q, :]


# --------------------------------- full module forward ----------------------------------
@functools.partial(jax.jit, static_argnames=("no_heads", "c_hidden", "inf", "eps",
                                              "block_q", "block_k", "compute_dtype"))
def bidirectional_triangle_attention(x1, x2, x_pair, mask, params, *, no_heads, c_hidden,
                                     inf=1e9, eps=1e-5, block_q=128, block_k=512,
                                     compute_dtype=jnp.bfloat16):
    """Forward pass matching the PyTorch module (mask=None matches the module default)."""
    # Triangle bias (+ mask bias folded in), materialised once; dir-2 uses the transposed
    # copy so the kernel never transposes the bias in the inner loop.
    tri = jnp.einsum('bijc,ch->bhij', x_pair.astype(jnp.float32),
                     params["w_tri"].astype(jnp.float32))
    bias1 = tri
    if mask is not None:
        bias1 = bias1 + (inf * (mask.astype(jnp.float32) - 1.0))[:, None, :, :]
    bias2 = jnp.swapaxes(bias1, -1, -2)

    common = dict(no_heads=no_heads, c_hidden=c_hidden, eps=eps,
                  block_q=block_q, block_k=block_k, compute_dtype=compute_dtype)
    # direction 1 (J -> I): q = LN(x1) (in-kernel), kv = LN(x2) (hoisted)
    x1_new = _fused_gated_mha(x1, x2, bias1, params["mha1"],
                              params["ln_g"], params["ln_b"],
                              apply_ln_kv=True, **common)
    # direction 2 (I -> J): q = LN(x2) (in-kernel), kv = the updated x1 (no LN)
    x2_new = _fused_gated_mha(x2, x1_new, bias2, params["mha2"],
                              params["ln_g"], params["ln_b"],
                              apply_ln_kv=False, **common)
    return x1_new, x2_new


# ------------------------------- pure-JAX reference check -------------------------------
def _reference(x1, x2, x_pair, mask, params, *, no_heads, c_hidden, inf=1e9, eps=1e-5):
    def ln(x):
        m = jnp.mean(x, -1, keepdims=True)
        v = jnp.mean((x - m) ** 2, -1, keepdims=True)
        return (x - m) / jnp.sqrt(v + eps) * params["ln_g"] + params["ln_b"]

    def mha(qx, kvx, biases, p):
        B, Q, C = qx.shape
        K = kvx.shape[1]
        H, D = no_heads, c_hidden
        q = (qx @ p["wq"]).reshape(B, Q, H, D).transpose(0, 2, 1, 3) / math.sqrt(D)
        k = (kvx @ p["wk"]).reshape(B, K, H, D).transpose(0, 2, 1, 3)
        v = (kvx @ p["wv"]).reshape(B, K, H, D).transpose(0, 2, 1, 3)
        a = jnp.einsum("bhqd,bhkd->bhqk", q, k)
        for b in biases:
            a = a + b
        a = jax.nn.softmax(a, axis=-1)
        o = jnp.einsum("bhqk,bhkd->bhqd", a, v).transpose(0, 2, 1, 3)           # [B,Q,H,D]
        g = jax.nn.sigmoid(qx @ p["wg"] + p["bg"]).reshape(B, Q, H, D)
        o = (o * g).reshape(B, Q, H * D)
        return o @ p["wo"] + p["bo"]

    x1n, x2n = ln(x1), ln(x2)
    tri = jnp.einsum("bijc,ch->bhij", x_pair, params["w_tri"])
    b1, b2 = [tri], [jnp.swapaxes(tri, -1, -2)]
    if mask is not None:
        mb = (inf * (mask - 1.0))[:, None, :, :]
        b1 = [mb] + b1
        b2 = [jnp.swapaxes(mb, -1, -2)] + b2
    x1n = x1n + mha(x1n, x2n, b1, params["mha1"])
    x2n = x2n + mha(x2n, x1n, b2, params["mha2"])
    return x1n, x2n


# ---------------------------------------- main -------------------------------------------
if __name__ == "__main__":
    def make_params(key, c_in, c_hidden, no_heads):
        hd = c_hidden * no_heads
        ks = jax.random.split(key, 5)

        def mha(kk):
            k = jax.random.split(kk, 7)
            return {
                "wq": jax.random.normal(k[0], (c_in, hd), jnp.float32) / math.sqrt(c_in),
                "wk": jax.random.normal(k[1], (c_in, hd), jnp.float32) / math.sqrt(c_in),
                "wv": jax.random.normal(k[2], (c_in, hd), jnp.float32) / math.sqrt(c_in),
                "wg": jax.random.normal(k[3], (c_in, hd), jnp.float32) / math.sqrt(c_in),
                "bg": 0.1 * jax.random.normal(k[4], (hd,), jnp.float32),
                "wo": jax.random.normal(k[5], (hd, c_in), jnp.float32) / math.sqrt(hd),
                "bo": 0.1 * jax.random.normal(k[6], (c_in,), jnp.float32),
            }

        return {
            "ln_g": 1.0 + 0.1 * jax.random.normal(ks[0], (c_in,), jnp.float32),
            "ln_b": 0.1 * jax.random.normal(ks[1], (c_in,), jnp.float32),
            "w_tri": jax.random.normal(ks[2], (c_in, no_heads), jnp.float32) / math.sqrt(c_in),
            "mha1": mha(ks[3]),
            "mha2": mha(ks[4]),
        }

    C_IN, C_HIDDEN, NO_HEADS = 32, 16, 4
    key = jax.random.PRNGKey(0)
    kp, kx1, kx2, kxp, km, kB = jax.random.split(key, 6)
    params = make_params(kp, C_IN, C_HIDDEN, NO_HEADS)

    # ---- config A: tiny shapes; f32 (tight) and bf16 paths; mask and no-mask ----
    B, I, J = 2, 16, 24
    x1 = jax.random.normal(kx1, (B, I, C_IN), jnp.float32)
    x2 = jax.random.normal(kx2, (B, J, C_IN), jnp.float32)
    x_pair = jax.random.normal(kxp, (B, I, J, C_IN), jnp.float32)
    mask = (jax.random.uniform(km, (B, I, J)) > 0.15).astype(jnp.float32)

    for compute_dtype, tol in ((jnp.float32, 1e-2), (jnp.bfloat16, 8e-2)):
        for m in (None, mask):   # mask=None matches the module default
            out1, out2 = bidirectional_triangle_attention(
                x1, x2, x_pair, m, params, no_heads=NO_HEADS, c_hidden=C_HIDDEN,
                compute_dtype=compute_dtype)
            out1 = jax.block_until_ready(out1)
            out2 = jax.block_until_ready(out2)
            ref1, ref2 = _reference(x1, x2, x_pair, m, params,
                                    no_heads=NO_HEADS, c_hidden=C_HIDDEN)
            tag = f"dtype={compute_dtype.__name__}, mask={'None' if m is None else 'set'}"
            assert jnp.allclose(out1, ref1, atol=tol, rtol=tol), f"x1 mismatch ({tag})"
            assert jnp.allclose(out2, ref2, atol=tol, rtol=tol), f"x2 mismatch ({tag})"

    # ---- config B: K > block_k exercises the K-tiled online-softmax + Q-padding path ----
    Bb, Ib, Jb = 1, 40, 200
    kb = jax.random.split(kB, 4)
    x1b = jax.random.normal(kb[0], (Bb, Ib, C_IN), jnp.float32)
    x2b = jax.random.normal(kb[1], (Bb, Jb, C_IN), jnp.float32)
    xpb = jax.random.normal(kb[2], (Bb, Ib, Jb, C_IN), jnp.float32)
    maskb = (jax.random.uniform(kb[3], (Bb, Ib, Jb)) > 0.15).astype(jnp.float32)

    out1, out2 = bidirectional_triangle_attention(
        x1b, x2b, xpb, maskb, params, no_heads=NO_HEADS, c_hidden=C_HIDDEN,
        block_q=32, block_k=128, compute_dtype=jnp.float32)
    out1 = jax.block_until_ready(out1)
    out2 = jax.block_until_ready(out2)
    ref1, ref2 = _reference(x1b, x2b, xpb, maskb, params,
                            no_heads=NO_HEADS, c_hidden=C_HIDDEN)
    assert jnp.allclose(out1, ref1, atol=1e-2, rtol=1e-2), "x1 mismatch (K-tiled config)"
    assert jnp.allclose(out2, ref2, atol=1e-2, rtol=1e-2), "x2 mismatch (K-tiled config)"

    print("KERNEL_OK")
</pallas_src>

<mosaic_0001>
module attributes {stable_mosaic.version = 11 : i64} {
  func.func @kernel(%arg0: i32, %arg1: i32, %arg2: i32, %arg3: memref<1x16x32xf32, #tpu.memory_space<vmem>>, %arg4: memref<1x4x24x16xf32, #tpu.memory_space<vmem>>, %arg5: memref<1x4x24x16xf32, #tpu.memory_space<vmem>>, %arg6: memref<1x4x16x24xf32, #tpu.memory_space<vmem>>, %arg7: memref<32x128xf32, #tpu.memory_space<vmem>>, %arg8: memref<1x64xf32, #tpu.memory_space<vmem>>, %arg9: memref<64x32xf32, #tpu.memory_space<vmem>>, %arg10: memref<1x32xf32, #tpu.memory_space<vmem>>, %arg11: memref<1x32xf32, #tpu.memory_space<vmem>>, %arg12: memref<1x32xf32, #tpu.memory_space<vmem>>, %arg13: memref<1x16x32xf32, #tpu.memory_space<vmem>>, %arg14: memref<4x16x16xf32, #tpu.memory_space<vmem>>, %arg15: memref<16x32xf32, #tpu.memory_space<vmem>>, %arg16: memref<16x64xf32, #tpu.memory_space<vmem>>, %arg17: memref<4x16x1xf32, #tpu.memory_space<vmem>>, %arg18: memref<4x16x1xf32, #tpu.memory_space<vmem>>, %arg19: memref<4x16x16xf32, #tpu.memory_space<vmem>>) attributes {dimension_semantics = [#tpu.dimension_semantics<parallel>, #tpu.dimension_semantics<parallel>, #tpu.dimension_semantics<arbitrary>], iteration_bounds = array<i64: 2, 1, 1>, scalar_prefetch = 0 : i64, scratch_operands = 6 : i64, tpu.core_type = #tpu.core_type<tc>, window_params = [{transform_indices = @transform_0, window_bounds = array<i64: 1, 16, 32>}, {transform_indices = @transform_1, window_bounds = array<i64: 1, 4, 24, 16>}, {transform_indices = @transform_2, window_bounds = array<i64: 1, 4, 24, 16>}, {transform_indices = @transform_3, window_bounds = array<i64: 1, 4, 16, 24>}, {pipeline_mode = #tpu.pipeline_mode<synchronous>, transform_indices = @transform_4, window_bounds = array<i64: 32, 128>}, {pipeline_mode = #tpu.pipeline_mode<synchronous>, transform_indices = @transform_5, window_bounds = array<i64: 1, 64>}, {pipeline_mode = #tpu.pipeline_mode<synchronous>, transform_indices = @transform_6, window_bounds = array<i64: 64, 32>}, {pipeline_mode = #tpu.pipeline_mode<synchronous>, transform_indices = @transform_7, window_bounds = array<i64: 1, 32>}, {pipeline_mode = #tpu.pipeline_mode<synchronous>, transform_indices = @transform_8, window_bounds = array<i64: 1, 32>}, {pipeline_mode = #tpu.pipeline_mode<synchronous>, transform_indices = @transform_9, window_bounds = array<i64: 1, 32>}, {transform_indices = @transform_10, window_bounds = array<i64: 1, 16, 32>}]} {
    %c0_i32 = arith.constant 0 : i32
    %0 = arith.cmpi eq, %arg2, %c0_i32 : i32
    %1 = arith.extui %0 : i1 to i32
    %c0_i32_0 = arith.constant 0 : i32
    %2 = arith.cmpi ne, %1, %c0_i32_0 : i32
    scf.if %2 {
      %c0_41 = arith.constant 0 : index
      %c0_42 = arith.constant 0 : index
      %c0_43 = arith.constant 0 : index
      %38 = vector.load %arg3[%c0_41, %c0_42, %c0_43] : memref<1x16x32xf32, #tpu.memory_space<vmem>>, vector<1x16x32xf32>
      %39 = vector.shape_cast %38 : vector<1x16x32xf32> to vector<16x32xf32>
      %cst_44 = arith.constant dense<0.000000e+00> : vector<16xf32>
      %40 = vector.multi_reduction <add>, %39, %cst_44 [1] : vector<16x32xf32> to vector<16xf32>
      %41 = vector.shape_cast %40 : vector<16xf32> to vector<16x1xf32>
      %cst_45 = arith.constant 3.200000e+01 : f32
      %42 = vector.broadcast %cst_45 : f32 to vector<16x1xf32>
      %43 = arith.divf %41, %42 : vector<16x1xf32>
      %44 = vector.broadcast %43 : vector<16x1xf32> to vector<16x32xf32>
      %45 = arith.subf %39, %44 : vector<16x32xf32>
      %46 = arith.mulf %45, %45 : vector<16x32xf32>
      %cst_46 = arith.constant dense<0.000000e+00> : vector<16xf32>
      %47 = vector.multi_reduction <add>, %46, %cst_46 [1] : vector<16x32xf32> to vector<16xf32>
      %48 = vector.shape_cast %47 : vector<16xf32> to vector<16x1xf32>
      %cst_47 = arith.constant 3.200000e+01 : f32
      %49 = vector.broadcast %cst_47 : f32 to vector<16x1xf32>
      %50 = arith.divf %48, %49 : vector<16x1xf32>
      %51 = vector.broadcast %43 : vector<16x1xf32> to vector<16x32xf32>
      %52 = arith.subf %39, %51 : vector<16x32xf32>
      %cst_48 = arith.constant 9.99999974E-6 : f32
      %53 = vector.broadcast %cst_48 : f32 to vector<16x1xf32>
      %54 = arith.addf %50, %53 : vector<16x1xf32>
      %55 = math.rsqrt %54 : vector<16x1xf32>
      %56 = vector.broadcast %55 : vector<16x1xf32> to vector<16x32xf32>
      %57 = arith.mulf %52, %56 : vector<16x32xf32>
      %c0_49 = arith.constant 0 : index
      %c0_50 = arith.constant 0 : index
      %58 = vector.load %arg11[%c0_49, %c0_50] : memref<1x32xf32, #tpu.memory_space<vmem>>, vector<1x32xf32>
      %59 = vector.broadcast %58 : vector<1x32xf32> to vector<16x32xf32>
      %60 = arith.mulf %57, %59 : vector<16x32xf32>
      %c0_51 = arith.constant 0 : index
      %c0_52 = arith.constant 0 : index
      %61 = vector.load %arg12[%c0_51, %c0_52] : memref<1x32xf32, #tpu.memory_space<vmem>>, vector<1x32xf32>
      %62 = vector.broadcast %61 : vector<1x32xf32> to vector<16x32xf32>
      %63 = arith.addf %60, %62 : vector<16x32xf32>
      %c0_53 = arith.constant 0 : index
      %c0_54 = arith.constant 0 : index
      %64 = vector.load %arg15[%c0_53, %c0_54] : memref<16x32xf32, #tpu.memory_space<vmem>>, vector<16x32xf32>
      tpu.vector_store %arg15[%c0_53, %c0_54], %63 {strides = array<i32>} : memref<16x32xf32, #tpu.memory_space<vmem>>, vector<16x32xf32>,
      %c0_55 = arith.constant 0 : index
      %c0_56 = arith.constant 0 : index
      %65 = vector.load %arg7[%c0_55, %c0_56] : memref<32x128xf32, #tpu.memory_space<vmem>>, vector<32x128xf32>
      %cst_57 = arith.constant dense<0.000000e+00> : vector<16x128xf32>
      %66 = tpu.matmul %63, %65, %cst_57 {dimension_numbers = #tpu.dot_dimension_numbers<[1], [0], [0], [1], [0, 0, 1, 1], [], []>} : vector<16x32xf32>, vector<32x128xf32>, vector<16x128xf32> -> vector<16x128xf32>
      %67 = vector.extract_strided_slice %66 {offsets = [0, 64], sizes = [16, 64], strides = [1, 1]} : vector<16x128xf32> to vector<16x64xf32>
      %c0_58 = arith.constant 0 : index
      %c0_59 = arith.constant 0 : index
      %68 = vector.load %arg8[%c0_58, %c0_59] : memref<1x64xf32, #tpu.memory_space<vmem>>, vector<1x64xf32>
      %69 = vector.broadcast %68 : vector<1x64xf32> to vector<16x64xf32>
      %70 = arith.addf %67, %69 : vector<16x64xf32>
      %71 = arith.negf %70 : vector<16x64xf32>
      %72 = math.exp %71 : vector<16x64xf32>
      %cst_60 = arith.constant 1.000000e+00 : f32
      %73 = vector.broadcast %cst_60 : f32 to vector<16x64xf32>
      %74 = arith.addf %73, %72 : vector<16x64xf32>
      %75 = arith.divf %73, %74 : vector<16x64xf32>
      %c0_61 = arith.constant 0 : index
      %c0_62 = arith.constant 0 : index
      %76 = vector.load %arg16[%c0_61, %c0_62] : memref<16x64xf32, #tpu.memory_space<vmem>>, vector<16x64xf32>
      tpu.vector_store %arg16[%c0_61, %c0_62], %75 {strides = array<i32>} : memref<16x64xf32, #tpu.memory_space<vmem>>, vector<16x64xf32>,
      %77 = vector.extract_strided_slice %66 {offsets = [0, 0], sizes = [16, 64], strides = [1, 1]} : vector<16x128xf32> to vector<16x64xf32>
      %78 = vector.extract_strided_slice %77 {offsets = [0, 0], sizes = [16, 16], strides = [1, 1]} : vector<16x64xf32> to vector<16x16xf32>
      %c0_63 = arith.constant 0 : index
      %c0_64 = arith.constant 0 : index
      %c0_65 = arith.constant 0 : index
      %79 = vector.load %arg14[%c0_63, %c0_64, %c0_65] : memref<4x16x16xf32, #tpu.memory_space<vmem>>, vector<1x16x16xf32>
      %80 = vector.shape_cast %79 : vector<1x16x16xf32> to vector<16x16xf32>
      %81 = vector.shape_cast %78 : vector<16x16xf32> to vector<1x16x16xf32>
      tpu.vector_store %arg14[%c0_63, %c0_64, %c0_65], %81 {strides = array<i32>} : memref<4x16x16xf32, #tpu.memory_space<vmem>>, vector<1x16x16xf32>,
      %82 = vector.extract_strided_slice %77 {offsets = [0, 16], sizes = [16, 16], strides = [1, 1]} : vector<16x64xf32> to vector<16x16xf32>
      %c1 = arith.constant 1 : index
      %c0_66 = arith.constant 0 : index
      %c0_67 = arith.constant 0 : index
      %83 = vector.load %arg14[%c1, %c0_66, %c0_67] : memref<4x16x16xf32, #tpu.memory_space<vmem>>, vector<1x16x16xf32>
      %84 = vector.shape_cast %83 : vector<1x16x16xf32> to vector<16x16xf32>
      %85 = vector.shape_cast %82 : vector<16x16xf32> to vector<1x16x16xf32>
      tpu.vector_store %arg14[%c1, %c0_66, %c0_67], %85 {strides = array<i32>} : memref<4x16x16xf32, #tpu.memory_space<vmem>>, vector<1x16x16xf32>,
      %86 = vector.extract_strided_slice %77 {offsets = [0, 32], sizes = [16, 16], strides = [1, 1]} : vector<16x64xf32> to vector<16x16xf32>
      %c2 = arith.constant 2 : index
      %c0_68 = arith.constant 0 : index
      %c0_69 = arith.constant 0 : index
      %87 = vector.load %arg14[%c2, %c0_68, %c0_69] : memref<4x16x16xf32, #tpu.memory_space<vmem>>, vector<1x16x16xf32>
      %88 = vector.shape_cast %87 : vector<1x16x16xf32> to vector<16x16xf32>
      %89 = vector.shape_cast %86 : vector<16x16xf32> to vector<1x16x16xf32>
      tpu.vector_store %arg14[%c2, %c0_68, %c0_69], %89 {strides = array<i32>} : memref<4x16x16xf32, #tpu.memory_space<vmem>>, vector<1x16x16xf32>,
      %90 = vector.extract_strided_slice %77 {offsets = [0, 48], sizes = [16, 16], strides = [1, 1]} : vector<16x64xf32> to vector<16x16xf32>
      %c3 = arith.constant 3 : index
      %c0_70 = arith.constant 0 : index
      %c0_71 = arith.constant 0 : index
      %91 = vector.load %arg14[%c3, %c0_70, %c0_71] : memref<4x16x16xf32, #tpu.memory_space<vmem>>, vector<1x16x16xf32>
      %92 = vector.shape_cast %91 : vector<1x16x16xf32> to vector<16x16xf32>
      %93 = vector.shape_cast %90 : vector<16x16xf32> to vector<1x16x16xf32>
      tpu.vector_store %arg14[%c3, %c0_70, %c0_71], %93 {strides = array<i32>} : memref<4x16x16xf32, #tpu.memory_space<vmem>>, vector<1x16x16xf32>,
      %cst_72 = arith.constant 0xFF800000 : f32
      %94 = vector.broadcast %cst_72 : f32 to vector<4x16x1xf32>
      %c0_73 = arith.constant 0 : index
      %c0_74 = arith.constant 0 : index
      %c0_75 = arith.constant 0 : index
      %95 = vector.load %arg17[%c0_73, %c0_74, %c0_75] : memref<4x16x1xf32, #tpu.memory_space<vmem>>, vector<4x16x1xf32>
      tpu.vector_store %arg17[%c0_73, %c0_74, %c0_75], %94 {strides = array<i32>} : memref<4x16x1xf32, #tpu.memory_space<vmem>>, vector<4x16x1xf32>,
      %cst_76 = arith.constant 0.000000e+00 : f32
      %96 = vector.broadcast %cst_76 : f32 to vector<4x16x1xf32>
      %c0_77 = arith.constant 0 : index
      %c0_78 = arith.constant 0 : index
      %c0_79 = arith.constant 0 : index
      %97 = vector.load %arg18[%c0_77, %c0_78, %c0_79] : memref<4x16x1xf32, #tpu.memory_space<vmem>>, vector<4x16x1xf32>
      tpu.vector_store %arg18[%c0_77, %c0_78, %c0_79], %96 {strides = array<i32>} : memref<4x16x1xf32, #tpu.memory_space<vmem>>, vector<4x16x1xf32>,
      %cst_80 = arith.constant 0.000000e+00 : f32
      %98 = vector.broadcast %cst_80 : f32 to vector<4x16x16xf32>
      %c0_81 = arith.constant 0 : index
      %c0_82 = arith.constant 0 : index
      %c0_83 = arith.constant 0 : index
      %99 = vector.load %arg19[%c0_81, %c0_82, %c0_83] : memref<4x16x16xf32, #tpu.memory_space<vmem>>, vector<4x16x16xf32>
      tpu.vector_store %arg19[%c0_81, %c0_82, %c0_83], %98 {strides = array<i32>} : memref<4x16x16xf32, #tpu.memory_space<vmem>>, vector<4x16x16xf32>,
    } else {
    }
    %c0 = arith.constant 0 : index
    %c0_1 = arith.constant 0 : index
    %c0_2 = arith.constant 0 : index
    %3 = vector.load %arg14[%c0, %c0_1, %c0_2] : memref<4x16x16xf32, #tpu.memory_space<vmem>>, vector<4x16x16xf32>
    %c0_3 = arith.constant 0 : index
    %c0_4 = arith.constant 0 : index
    %c0_5 = arith.constant 0 : index
    %c0_6 = arith.constant 0 : index
    %4 = vector.load %arg4[%c0_3, %c0_4, %c0_5, %c0_6] : memref<1x4x24x16xf32, #tpu.memory_space<vmem>>, vector<1x4x24x16xf32>
    %5 = vector.shape_cast %4 : vector<1x4x24x16xf32> to vector<4x24x16xf32>
    "tpu.trace_start"() <{level = 10 : i32, message = "hqd,hkd->hqk"}> : () -> ()
    %cst = arith.constant dense<0.000000e+00> : vector<4x16x24xf32>
    %6 = tpu.matmul %3, %5, %cst {dimension_numbers = #tpu.dot_dimension_numbers<[2], [2], [1], [1], [0, 0, 0, 1, 1, 1], [0], [0]>} : vector<4x16x16xf32>, vector<4x24x16xf32>, vector<4x16x24xf32> -> vector<4x16x24xf32>
    "tpu.trace_stop"() : () -> ()
    %c0_7 = arith.constant 0 : index
    %c0_8 = arith.constant 0 : index
    %c0_9 = arith.constant 0 : index
    %c0_10 = arith.constant 0 : index
    %7 = vector.load %arg6[%c0_7, %c0_8, %c0_9, %c0_10] : memref<1x4x16x24xf32, #tpu.memory_space<vmem>>, vector<1x4x16x24xf32>
    %8 = vector.shape_cast %7 : vector<1x4x16x24xf32> to vector<4x16x24xf32>
    %9 = arith.addf %6, %8 : vector<4x16x24xf32>
    %c0_11 = arith.constant 0 : index
    %c0_12 = arith.constant 0 : index
    %c0_13 = arith.constant 0 : index
    %10 = vector.load %arg17[%c0_11, %c0_12, %c0_13] : memref<4x16x1xf32, #tpu.memory_space<vmem>>, vector<4x16x1xf32>
    %cst_14 = arith.constant dense<0xFF800000> : vector<4x16xf32>
    %11 = vector.multi_reduction <maximumf>, %9, %cst_14 [2] : vector<4x16x24xf32> to vector<4x16xf32>
    %12 = vector.shape_cast %11 : vector<4x16xf32> to vector<4x16x1xf32>
    %13 = arith.maximumf %10, %12 : vector<4x16x1xf32>
    %c0_15 = arith.constant 0 : index
    %c0_16 = arith.constant 0 : index
    %c0_17 = arith.constant 0 : index
    %14 = vector.load %arg17[%c0_15, %c0_16, %c0_17] : memref<4x16x1xf32, #tpu.memory_space<vmem>>, vector<4x16x1xf32>
    %15 = arith.subf %14, %13 : vector<4x16x1xf32>
    %16 = math.exp %15 : vector<4x16x1xf32>
    %17 = vector.broadcast %13 : vector<4x16x1xf32> to vector<4x16x24xf32>
    %18 = arith.subf %9, %17 : vector<4x16x24xf32>
    %19 = math.exp %18 : vector<4x16x24xf32>
    %c0_18 = arith.constant 0 : index
    %c0_19 = arith.constant 0 : index
    %c0_20 = arith.constant 0 : index
    %20 = vector.load %arg18[%c0_18, %c0_19, %c0_20] : memref<4x16x1xf32, #tpu.memory_space<vmem>>, vector<4x16x1xf32>
    %21 = arith.mulf %16, %20 : vector<4x16x1xf32>
    %cst_21 = arith.constant dense<0.000000e+00> : vector<4x16xf32>
    %22 = vector.multi_reduction <add>, %19, %cst_21 [2] : vector<4x16x24xf32> to vector<4x16xf32>
    %23 = vector.shape_cast %22 : vector<4x16xf32> to vector<4x16x1xf32>
    %24 = arith.addf %21, %23 : vector<4x16x1xf32>
    %c0_22 = arith.constant 0 : index
    %c0_23 = arith.constant 0 : index
    %c0_24 = arith.constant 0 : index
    %25 = vector.load %arg18[%c0_22, %c0_23, %c0_24] : memref<4x16x1xf32, #tpu.memory_space<vmem>>, vector<4x16x1xf32>
    tpu.vector_store %arg18[%c0_22, %c0_23, %c0_24], %24 {strides = array<i32>} : memref<4x16x1xf32, #tpu.memory_space<vmem>>, vector<4x16x1xf32>,
    %c0_25 = arith.constant 0 : index
    %c0_26 = arith.constant 0 : index
    %c0_27 = arith.constant 0 : index
    %26 = vector.load %arg19[%c0_25, %c0_26, %c0_27] : memref<4x16x16xf32, #tpu.memory_space<vmem>>, vector<4x16x16xf32>
    %27 = vector.broadcast %16 : vector<4x16x1xf32> to vector<4x16x16xf32>
    %28 = arith.mulf %27, %26 : vector<4x16x16xf32>
    %c0_28 = arith.constant 0 : index
    %c0_29 = arith.constant 0 : index
    %c0_30 = arith.constant 0 : index
    %c0_31 = arith.constant 0 : index
    %29 = vector.load %arg5[%c0_28, %c0_29, %c0_30, %c0_31] : memref<1x4x24x16xf32, #tpu.memory_space<vmem>>, vector<1x4x24x16xf32>
    %30 = vector.shape_cast %29 : vector<1x4x24x16xf32> to vector<4x24x16xf32>
    "tpu.trace_start"() <{level = 10 : i32, message = "hqk,hkd->hqd"}> : () -> ()
    %cst_32 = arith.constant dense<0.000000e+00> : vector<4x16x16xf32>
    %31 = tpu.matmul %19, %30, %cst_32 {dimension_numbers = #tpu.dot_dimension_numbers<[2], [1], [1], [2], [0, 0, 0, 1, 1, 2], [0], [0]>} : vector<4x16x24xf32>, vector<4x24x16xf32>, vector<4x16x16xf32> -> vector<4x16x16xf32>
    "tpu.trace_stop"() : () -> ()
    %32 = arith.addf %28, %31 : vector<4x16x16xf32>
    %c0_33 = arith.constant 0 : index
    %c0_34 = arith.constant 0 : index
    %c0_35 = arith.constant 0 : index
    %33 = vector.load %arg19[%c0_33, %c0_34, %c0_35] : memref<4x16x16xf32, #tpu.memory_space<vmem>>, vector<4x16x16xf32>
    tpu.vector_store %arg19[%c0_33, %c0_34, %c0_35], %32 {strides = array<i32>} : memref<4x16x16xf32, #tpu.memory_space<vmem>>, vector<4x16x16xf32>,
    %c0_36 = arith.constant 0 : index
    %c0_37 = arith.constant 0 : index
    %c0_38 = arith.constant 0 : index
    %34 = vector.load %arg17[%c0_36, %c0_37, %c0_38] : memref<4x16x1xf32, #tpu.memory_space<vmem>>, vector<4x16x1xf32>
    tpu.vector_store %arg17[%c0_36, %c0_37, %c0_38], %13 {strides = array<i32>} : memref<4x16x1xf32, #tpu.memory_space<vmem>>, vector<4x16x1xf32>,
    %c0_i32_39 = arith.constant 0 : i32
    %35 = arith.cmpi eq, %arg2, %c0_i32_39 : i32
    %36 = arith.extui %35 : i1 to i32
    %c0_i32_40 = arith.constant 0 : i32
    %37 = arith.cmpi ne, %36, %c0_i32_40 : i32
    scf.if %37 {
      %c0_41 = arith.constant 0 : index
      %c0_42 = arith.constant 0 : index
      %c0_43 = arith.constant 0 : index
      %38 = vector.load %arg18[%c0_41, %c0_42, %c0_43] : memref<4x16x1xf32, #tpu.memory_space<vmem>>, vector<4x16x1xf32>
      %cst_44 = arith.constant 1.000000e+00 : f32
      %39 = vector.broadcast %cst_44 : f32 to vector<4x16x1xf32>
      %40 = arith.divf %39, %38 : vector<4x16x1xf32>
      %c0_45 = arith.constant 0 : index
      %c0_46 = arith.constant 0 : index
      %c0_47 = arith.constant 0 : index
      %41 = vector.load %arg19[%c0_45, %c0_46, %c0_47] : memref<4x16x16xf32, #tpu.memory_space<vmem>>, vector<1x16x16xf32>
      %42 = vector.shape_cast %41 : vector<1x16x16xf32> to vector<16x16xf32>
      %43 = vector.extract_strided_slice %40 {offsets = [0, 0, 0], sizes = [1, 16, 1], strides = [1, 1, 1]} : vector<4x16x1xf32> to vector<1x16x1xf32>
      %44 = vector.shape_cast %43 : vector<1x16x1xf32> to vector<16x1xf32>
      %45 = vector.broadcast %44 : vector<16x1xf32> to vector<16x16xf32>
      %46 = arith.mulf %42, %45 : vector<16x16xf32>
      %c1 = arith.constant 1 : index
      %c0_48 = arith.constant 0 : index
      %c0_49 = arith.constant 0 : index
      %47 = vector.load %arg19[%c1, %c0_48, %c0_49] : memref<4x16x16xf32, #tpu.memory_space<vmem>>, vector<1x16x16xf32>
      %48 = vector.shape_cast %47 : vector<1x16x16xf32> to vector<16x16xf32>
      %49 = vector.extract_strided_slice %40 {offsets = [1, 0, 0], sizes = [1, 16, 1], strides = [1, 1, 1]} : vector<4x16x1xf32> to vector<1x16x1xf32>
      %50 = vector.shape_cast %49 : vector<1x16x1xf32> to vector<16x1xf32>
      %51 = vector.broadcast %50 : vector<16x1xf32> to vector<16x16xf32>
      %52 = arith.mulf %48, %51 : vector<16x16xf32>
      %c2 = arith.constant 2 : index
      %c0_50 = arith.constant 0 : index
      %c0_51 = arith.constant 0 : index
      %53 = vector.load %arg19[%c2, %c0_50, %c0_51] : memref<4x16x16xf32, #tpu.memory_space<vmem>>, vector<1x16x16xf32>
      %54 = vector.shape_cast %53 : vector<1x16x16xf32> to vector<16x16xf32>
      %55 = vector.extract_strided_slice %40 {offsets = [2, 0, 0], sizes = [1, 16, 1], strides = [1, 1, 1]} : vector<4x16x1xf32> to vector<1x16x1xf32>
      %56 = vector.shape_cast %55 : vector<1x16x1xf32> to vector<16x1xf32>
      %57 = vector.broadcast %56 : vector<16x1xf32> to vector<16x16xf32>
      %58 = arith.mulf %54, %57 : vector<16x16xf32>
      %c3 = arith.constant 3 : index
      %c0_52 = arith.constant 0 : index
      %c0_53 = arith.constant 0 : index
      %59 = vector.load %arg19[%c3, %c0_52, %c0_53] : memref<4x16x16xf32, #tpu.memory_space<vmem>>, vector<1x16x16xf32>
      %60 = vector.shape_cast %59 : vector<1x16x16xf32> to vector<16x16xf32>
      %61 = vector.extract_strided_slice %40 {offsets = [3, 0, 0], sizes = [1, 16, 1], strides = [1, 1, 1]} : vector<4x16x1xf32> to vector<1x16x1xf32>
      %62 = vector.shape_cast %61 : vector<1x16x1xf32> to vector<16x1xf32>
      %63 = vector.broadcast %62 : vector<16x1xf32> to vector<16x16xf32>
      %64 = arith.mulf %60, %63 : vector<16x16xf32>
      %65 = tpu.concatenate %46, %52, %58, %64 in 1 : vector<16x16xf32>, vector<16x16xf32>, vector<16x16xf32>, vector<16x16xf32> -> vector<16x64xf32>
      %c0_54 = arith.constant 0 : index
      %c0_55 = arith.constant 0 : index
      %66 = vector.load %arg16[%c0_54, %c0_55] : memref<16x64xf32, #tpu.memory_space<vmem>>, vector<16x64xf32>
      %67 = arith.mulf %65, %66 : vector<16x64xf32>
      %c0_56 = arith.constant 0 : index
      %c0_57 = arith.constant 0 : index
      %68 = vector.load %arg9[%c0_56, %c0_57] : memref<64x32xf32, #tpu.memory_space<vmem>>, vector<64x32xf32>
      %cst_58 = arith.constant dense<0.000000e+00> : vector<16x32xf32>
      %69 = tpu.matmul %67, %68, %cst_58 {dimension_numbers = #tpu.dot_dimension_numbers<[1], [0], [0], [1], [0, 0, 1, 1], [], []>} : vector<16x64xf32>, vector<64x32xf32>, vector<16x32xf32> -> vector<16x32xf32>
      %c0_59 = arith.constant 0 : index
      %c0_60 = arith.constant 0 : index
      %70 = vector.load %arg10[%c0_59, %c0_60] : memref<1x32xf32, #tpu.memory_space<vmem>>, vector<1x32xf32>
      %71 = vector.broadcast %70 : vector<1x32xf32> to vector<16x32xf32>
      %72 = arith.addf %69, %71 : vector<16x32xf32>
      %c0_61 = arith.constant 0 : index
      %c0_62 = arith.constant 0 : index
      %73 = vector.load %arg15[%c0_61, %c0_62] : memref<16x32xf32, #tpu.memory_space<vmem>>, vector<16x32xf32>
      %74 = arith.addf %73, %72 : vector<16x32xf32>
      %c0_63 = arith.constant 0 : index
      %c0_64 = arith.constant 0 : index
      %c0_65 = arith.constant 0 : index
      %75 = vector.load %arg13[%c0_63, %c0_64, %c0_65] : memref<1x16x32xf32, #tpu.memory_space<vmem>>, vector<1x16x32xf32>
      %76 = vector.shape_cast %75 : vector<1x16x32xf32> to vector<16x32xf32>
      %77 = vector.shape_cast %74 : vector<16x32xf32> to vector<1x16x32xf32>
      tpu.vector_store %arg13[%c0_63, %c0_64, %c0_65], %77 {strides = array<i32>} : memref<1x16x32xf32, #tpu.memory_space<vmem>>, vector<1x16x32xf32>,
    } else {
    }
    return
  }
  func.func @transform_0(%arg0: i32, %arg1: i32, %arg2: i32) -> (i32, i32, i32) {
    %c0_i32 = arith.constant 0 : i32
    %c0_i32_0 = arith.constant 0 : i32
    return %arg0, %arg1, %c0_i32 : i32, i32, i32
  }
  func.func @transform_1(%arg0: i32, %arg1: i32, %arg2: i32) -> (i32, i32, i32, i32) {
    %c0_i32 = arith.constant 0 : i32
    %c0_i32_0 = arith.constant 0 : i32
    %c0_i32_1 = arith.constant 0 : i32
    return %arg0, %c0_i32, %arg2, %c0_i32_0 : i32, i32, i32, i32
  }
  func.func @transform_2(%arg0: i32, %arg1: i32, %arg2: i32) -> (i32, i32, i32, i32) {
    %c0_i32 = arith.constant 0 : i32
    %c0_i32_0 = arith.constant 0 : i32
    %c0_i32_1 = arith.constant 0 : i32
    return %arg0, %c0_i32, %arg2, %c0_i32_0 : i32, i32, i32, i32
  }
  func.func @transform_3(%arg0: i32, %arg1: i32, %arg2: i32) -> (i32, i32, i32, i32) {
    %c0_i32 = arith.constant 0 : i32
    %c0_i32_0 = arith.constant 0 : i32
    return %arg0, %c0_i32, %arg1, %arg2 : i32, i32, i32, i32
  }
  func.func @transform_4(%arg0: i32, %arg1: i32, %arg2: i32) -> (i32, i32) {
    %c0_i32 = arith.constant 0 : i32
    %c0_i32_0 = arith.constant 0 : i32
    %c0_i32_1 = arith.constant 0 : i32
    return %c0_i32, %c0_i32_0 : i32, i32
  }
  func.func @transform_5(%arg0: i32, %arg1: i32, %arg2: i32) -> (i32, i32) {
    %c0_i32 = arith.constant 0 : i32
    %c0_i32_0 = arith.constant 0 : i32
    %c0_i32_1 = arith.constant 0 : i32
    return %c0_i32, %c0_i32_0 : i32, i32
  }
  func.func @transform_6(%arg0: i32, %arg1: i32, %arg2: i32) -> (i32, i32) {
    %c0_i32 = arith.constant 0 : i32
    %c0_i32_0 = arith.constant 0 : i32
    %c0_i32_1 = arith.constant 0 : i32
    return %c0_i32, %c0_i32_0 : i32, i32
  }
  func.func @transform_7(%arg0: i32, %arg1: i32, %arg2: i32) -> (i32, i32) {
    %c0_i32 = arith.constant 0 : i32
    %c0_i32_0 = arith.constant 0 : i32
    %c0_i32_1 = arith.constant 0 : i32
    return %c0_i32, %c0_i32_0 : i32, i32
  }
  func.func @transform_8(%arg0: i32, %arg1: i32, %arg2: i32) -> (i32, i32) {
    %c0_i32 = arith.constant 0 : i32
    %c0_i32_0 = arith.constant 0 : i32
    %c0_i32_1 = arith.constant 0 : i32
    return %c0_i32, %c0_i32_0 : i32, i32
  }
  func.func @transform_9(%arg0: i32, %arg1: i32, %arg2: i32) -> (i32, i32) {
    %c0_i32 = arith.constant 0 : i32
    %c0_i32_0 = arith.constant 0 : i32
    %c0_i32_1 = arith.constant 0 : i32
    return %c0_i32, %c0_i32_0 : i32, i32
  }
  func.func @transform_10(%arg0: i32, %arg1: i32, %arg2: i32) -> (i32, i32, i32) {
    %c0_i32 = arith.constant 0 : i32
    %c0_i32_0 = arith.constant 0 : i32
    return %arg0, %arg1, %c0_i32 : i32, i32, i32
  }
}

module attributes {stable_mosaic.version = 11 : i64} {
  func.func @kernel(%arg0: i32, %arg1: i32, %arg2: i32, %arg3: memref<1x24x32xf32, #tpu.memory_space<vmem>>, %arg4: memref<1x4x16x16xf32, #tpu.memory_space<vmem>>, %arg5: memref<1x4x16x16xf32, #tpu.memory_space<vmem>>, %arg6: memref<1x4x24x16xf32, #tpu.memory_space<vmem>>, %arg7: memref<32x128xf32, #tpu.memory_space<vmem>>, %arg8: memref<1x64xf32, #tpu.memory_space<vmem>>, %arg9: memref<64x32xf32, #tpu.memory_space<vmem>>, %arg10: memref<1x32xf32, #tpu.memory_space<vmem>>, %arg11: memref<1x32xf32, #tpu.memory_space<vmem>>, %arg12: memref<1x32xf32, #tpu.memory_space<vmem>>, %arg13: memref<1x24x32xf32, #tpu.memory_space<vmem>>, %arg14: memref<4x24x16xf32, #tpu.memory_space<vmem>>, %arg15: memref<24x32xf32, #tpu.memory_space<vmem>>, %arg16: memref<24x64xf32, #tpu.memory_space<vmem>>, %arg17: memref<4x24x1xf32, #tpu.memory_space<vmem>>, %arg18: memref<4x24x1xf32, #tpu.memory_space<vmem>>, %arg19: memref<4x24x16xf32, #tpu.memory_space<vmem>>) attributes {dimension_semantics = [#tpu.dimension_semantics<parallel>, #tpu.dimension_semantics<parallel>, #tpu.dimension_semantics<arbitrary>], iteration_bounds = array<i64: 2, 1, 1>, scalar_prefetch = 0 : i64, scratch_operands = 6 : i64, tpu.core_type = #tpu.core_type<tc>, window_params = [{transform_indices = @transform_0, window_bounds = array<i64: 1, 24, 32>}, {transform_indices = @transform_1, window_bounds = array<i64: 1, 4, 16, 16>}, {transform_indices = @transform_2, window_bounds = array<i64: 1, 4, 16, 16>}, {transform_indices = @transform_3, window_bounds = array<i64: 1, 4, 24, 16>}, {pipeline_mode = #tpu.pipeline_mode<synchronous>, transform_indices = @transform_4, window_bounds = array<i64: 32, 128>}, {pipeline_mode = #tpu.pipeline_mode<synchronous>, transform_indices = @transform_5, window_bounds = array<i64: 1, 64>}, {pipeline_mode = #tpu.pipeline_mode<synchronous>, transform_indices = @transform_6, window_bounds = array<i64: 64, 32>}, {pipeline_mode = #tpu.pipeline_mode<synchronous>, transform_indices = @transform_7, window_bounds = array<i64: 1, 32>}, {pipeline_mode = #tpu.pipeline_mode<synchronous>, transform_indices = @transform_8, window_bounds = array<i64: 1, 32>}, {pipeline_mode = #tpu.pipeline_mode<synchronous>, transform_indices = @transform_9, window_bounds = array<i64: 1, 32>}, {transform_indices = @transform_10, window_bounds = array<i64: 1, 24, 32>}]} {
    %c0_i32 = arith.constant 0 : i32
    %0 = arith.cmpi eq, %arg2, %c0_i32 : i32
    %1 = arith.extui %0 : i1 to i32
    %c0_i32_0 = arith.constant 0 : i32
    %2 = arith.cmpi ne, %1, %c0_i32_0 : i32
    scf.if %2 {
      %c0_41 = arith.constant 0 : index
      %c0_42 = arith.constant 0 : index
      %c0_43 = arith.constant 0 : index
      %38 = vector.load %arg3[%c0_41, %c0_42, %c0_43] : memref<1x24x32xf32, #tpu.memory_space<vmem>>, vector<1x24x32xf32>
      %39 = vector.shape_cast %38 : vector<1x24x32xf32> to vector<24x32xf32>
      %cst_44 = arith.constant dense<0.000000e+00> : vector<24xf32>
      %40 = vector.multi_reduction <add>, %39, %cst_44 [1] : vector<24x32xf32> to vector<24xf32>
      %41 = vector.shape_cast %40 : vector<24xf32> to vector<24x1xf32>
      %cst_45 = arith.constant 3.200000e+01 : f32
      %42 = vector.broadcast %cst_45 : f32 to vector<24x1xf32>
      %43 = arith.divf %41, %42 : vector<24x1xf32>
      %44 = vector.broadcast %43 : vector<24x1xf32> to vector<24x32xf32>
      %45 = arith.subf %39, %44 : vector<24x32xf32>
      %46 = arith.mulf %45, %45 : vector<24x32xf32>
      %cst_46 = arith.constant dense<0.000000e+00> : vector<24xf32>
      %47 = vector.multi_reduction <add>, %46, %cst_46 [1] : vector<24x32xf32> to vector<24xf32>
      %48 = vector.shape_cast %47 : vector<24xf32> to vector<24x1xf32>
      %cst_47 = arith.constant 3.200000e+01 : f32
      %49 = vector.broadcast %cst_47 : f32 to vector<24x1xf32>
      %50 = arith.divf %48, %49 : vector<24x1xf32>
      %51 = vector.broadcast %43 : vector<24x1xf32> to vector<24x32xf32>
      %52 = arith.subf %39, %51 : vector<24x32xf32>
      %cst_48 = arith.constant 9.99999974E-6 : f32
      %53 = vector.broadcast %cst_48 : f32 to vector<24x1xf32>
      %54 = arith.addf %50, %53 : vector<24x1xf32>
      %55 = math.rsqrt %54 : vector<24x1xf32>
      %56 = vector.broadcast %55 : vector<24x1xf32> to vector<24x32xf32>
      %57 = arith.mulf %52, %56 : vector<24x32xf32>
      %c0_49 = arith.constant 0 : index
      %c0_50 = arith.constant 0 : index
      %58 = vector.load %arg11[%c0_49, %c0_50] : memref<1x32xf32, #tpu.memory_space<vmem>>, vector<1x32xf32>
      %59 = vector.broadcast %58 : vector<1x32xf32> to vector<24x32xf32>
      %60 = arith.mulf %57, %59 : vector<24x32xf32>
      %c0_51 = arith.constant 0 : index
      %c0_52 = arith.constant 0 : index
      %61 = vector.load %arg12[%c0_51, %c0_52] : memref<1x32xf32, #tpu.memory_space<vmem>>, vector<1x32xf32>
      %62 = vector.broadcast %61 : vector<1x32xf32> to vector<24x32xf32>
      %63 = arith.addf %60, %62 : vector<24x32xf32>
      %c0_53 = arith.constant 0 : index
      %c0_54 = arith.constant 0 : index
      %64 = vector.load %arg15[%c0_53, %c0_54] : memref<24x32xf32, #tpu.memory_space<vmem>>, vector<24x32xf32>
      tpu.vector_store %arg15[%c0_53, %c0_54], %63 {strides = array<i32>} : memref<24x32xf32, #tpu.memory_space<vmem>>, vector<24x32xf32>,
      %c0_55 = arith.constant 0 : index
      %c0_56 = arith.constant 0 : index
      %65 = vector.load %arg7[%c0_55, %c0_56] : memref<32x128xf32, #tpu.memory_space<vmem>>, vector<32x128xf32>
      %cst_57 = arith.constant dense<0.000000e+00> : vector<24x128xf32>
      %66 = tpu.matmul %63, %65, %cst_57 {dimension_numbers = #tpu.dot_dimension_numbers<[1], [0], [0], [1], [0, 0, 1, 1], [], []>} : vector<24x32xf32>, vector<32x128xf32>, vector<24x128xf32> -> vector<24x128xf32>
      %67 = vector.extract_strided_slice %66 {offsets = [0, 64], sizes = [24, 64], strides = [1, 1]} : vector<24x128xf32> to vector<24x64xf32>
      %c0_58 = arith.constant 0 : index
      %c0_59 = arith.constant 0 : index
      %68 = vector.load %arg8[%c0_58, %c0_59] : memref<1x64xf32, #tpu.memory_space<vmem>>, vector<1x64xf32>
      %69 = vector.broadcast %68 : vector<1x64xf32> to vector<24x64xf32>
      %70 = arith.addf %67, %69 : vector<24x64xf32>
      %71 = arith.negf %70 : vector<24x64xf32>
      %72 = math.exp %71 : vector<24x64xf32>
      %cst_60 = arith.constant 1.000000e+00 : f32
      %73 = vector.broadcast %cst_60 : f32 to vector<24x64xf32>
      %74 = arith.addf %73, %72 : vector<24x64xf32>
      %75 = arith.divf %73, %74 : vector<24x64xf32>
      %c0_61 = arith.constant 0 : index
      %c0_62 = arith.constant 0 : index
      %76 = vector.load %arg16[%c0_61, %c0_62] : memref<24x64xf32, #tpu.memory_space<vmem>>, vector<24x64xf32>
      tpu.vector_store %arg16[%c0_61, %c0_62], %75 {strides = array<i32>} : memref<24x64xf32, #tpu.memory_space<vmem>>, vector<24x64xf32>,
      %77 = vector.extract_strided_slice %66 {offsets = [0, 0], sizes = [24, 64], strides = [1, 1]} : vector<24x128xf32> to vector<24x64xf32>
      %78 = vector.extract_strided_slice %77 {offsets = [0, 0], sizes = [24, 16], strides = [1, 1]} : vector<24x64xf32> to vector<24x16xf32>
      %c0_63 = arith.constant 0 : index
      %c0_64 = arith.constant 0 : index
      %c0_65 = arith.constant 0 : index
      %79 = vector.load %arg14[%c0_63, %c0_64, %c0_65] : memref<4x24x16xf32, #tpu.memory_space<vmem>>, vector<1x24x16xf32>
      %80 = vector.shape_cast %79 : vector<1x24x16xf32> to vector<24x16xf32>
      %81 = vector.shape_cast %78 : vector<24x16xf32> to vector<1x24x16xf32>
      tpu.vector_store %arg14[%c0_63, %c0_64, %c0_65], %81 {strides = array<i32>} : memref<4x24x16xf32, #tpu.memory_space<vmem>>, vector<1x24x16xf32>,
      %82 = vector.extract_strided_slice %77 {offsets = [0, 16], sizes = [24, 16], strides = [1, 1]} : vector<24x64xf32> to vector<24x16xf32>
      %c1 = arith.constant 1 : index
      %c0_66 = arith.constant 0 : index
      %c0_67 = arith.constant 0 : index
      %83 = vector.load %arg14[%c1, %c0_66, %c0_67] : memref<4x24x16xf32, #tpu.memory_space<vmem>>, vector<1x24x16xf32>
      %84 = vector.shape_cast %83 : vector<1x24x16xf32> to vector<24x16xf32>
      %85 = vector.shape_cast %82 : vector<24x16xf32> to vector<1x24x16xf32>
      tpu.vector_store %arg14[%c1, %c0_66, %c0_67], %85 {strides = array<i32>} : memref<4x24x16xf32, #tpu.memory_space<vmem>>, vector<1x24x16xf32>,
      %86 = vector.extract_strided_slice %77 {offsets = [0, 32], sizes = [24, 16], strides = [1, 1]} : vector<24x64xf32> to vector<24x16xf32>
      %c2 = arith.constant 2 : index
      %c0_68 = arith.constant 0 : index
      %c0_69 = arith.constant 0 : index
      %87 = vector.load %arg14[%c2, %c0_68, %c0_69] : memref<4x24x16xf32, #tpu.memory_space<vmem>>, vector<1x24x16xf32>
      %88 = vector.shape_cast %87 : vector<1x24x16xf32> to vector<24x16xf32>
      %89 = vector.shape_cast %86 : vector<24x16xf32> to vector<1x24x16xf32>
      tpu.vector_store %arg14[%c2, %c0_68, %c0_69], %89 {strides = array<i32>} : memref<4x24x16xf32, #tpu.memory_space<vmem>>, vector<1x24x16xf32>,
      %90 = vector.extract_strided_slice %77 {offsets = [0, 48], sizes = [24, 16], strides = [1, 1]} : vector<24x64xf32> to vector<24x16xf32>
      %c3 = arith.constant 3 : index
      %c0_70 = arith.constant 0 : index
      %c0_71 = arith.constant 0 : index
      %91 = vector.load %arg14[%c3, %c0_70, %c0_71] : memref<4x24x16xf32, #tpu.memory_space<vmem>>, vector<1x24x16xf32>
      %92 = vector.shape_cast %91 : vector<1x24x16xf32> to vector<24x16xf32>
      %93 = vector.shape_cast %90 : vector<24x16xf32> to vector<1x24x16xf32>
      tpu.vector_store %arg14[%c3, %c0_70, %c0_71], %93 {strides = array<i32>} : memref<4x24x16xf32, #tpu.memory_space<vmem>>, vector<1x24x16xf32>,
      %cst_72 = arith.constant 0xFF800000 : f32
      %94 = vector.broadcast %cst_72 : f32 to vector<4x24x1xf32>
      %c0_73 = arith.constant 0 : index
      %c0_74 = arith.constant 0 : index
      %c0_75 = arith.constant 0 : index
      %95 = vector.load %arg17[%c0_73, %c0_74, %c0_75] : memref<4x24x1xf32, #tpu.memory_space<vmem>>, vector<4x24x1xf32>
      tpu.vector_store %arg17[%c0_73, %c0_74, %c0_75], %94 {strides = array<i32>} : memref<4x24x1xf32, #tpu.memory_space<vmem>>, vector<4x24x1xf32>,
      %cst_76 = arith.constant 0.000000e+00 : f32
      %96 = vector.broadcast %cst_76 : f32 to vector<4x24x1xf32>
      %c0_77 = arith.constant 0 : index
      %c0_78 = arith.constant 0 : index
      %c0_79 = arith.constant 0 : index
      %97 = vector.load %arg18[%c0_77, %c0_78, %c0_79] : memref<4x24x1xf32, #tpu.memory_space<vmem>>, vector<4x24x1xf32>
      tpu.vector_store %arg18[%c0_77, %c0_78, %c0_79], %96 {strides = array<i32>} : memref<4x24x1xf32, #tpu.memory_space<vmem>>, vector<4x24x1xf32>,
      %cst_80 = arith.constant 0.000000e+00 : f32
      %98 = vector.broadcast %cst_80 : f32 to vector<4x24x16xf32>
      %c0_81 = arith.constant 0 : index
      %c0_82 = arith.constant 0 : index
      %c0_83 = arith.constant 0 : index
      %99 = vector.load %arg19[%c0_81, %c0_82, %c0_83] : memref<4x24x16xf32, #tpu.memory_space<vmem>>, vector<4x24x16xf32>
      tpu.vector_store %arg19[%c0_81, %c0_82, %c0_83], %98 {strides = array<i32>} : memref<4x24x16xf32, #tpu.memory_space<vmem>>, vector<4x24x16xf32>,
    } else {
    }
    %c0 = arith.constant 0 : index
    %c0_1 = arith.constant 0 : index
    %c0_2 = arith.constant 0 : index
    %3 = vector.load %arg14[%c0, %c0_1, %c0_2] : memref<4x24x16xf32, #tpu.memory_space<vmem>>, vector<4x24x16xf32>
    %c0_3 = arith.constant 0 : index
    %c0_4 = arith.constant 0 : index
    %c0_5 = arith.constant 0 : index
    %c0_6 = arith.constant 0 : index
    %4 = vector.load %arg4[%c0_3, %c0_4, %c0_5, %c0_6] : memref<1x4x16x16xf32, #tpu.memory_space<vmem>>, vector<1x4x16x16xf32>
    %5 = vector.shape_cast %4 : vector<1x4x16x16xf32> to vector<4x16x16xf32>
    "tpu.trace_start"() <{level = 10 : i32, message = "hqd,hkd->hqk"}> : () -> ()
    %cst = arith.constant dense<0.000000e+00> : vector<4x24x16xf32>
    %6 = tpu.matmul %3, %5, %cst {dimension_numbers = #tpu.dot_dimension_numbers<[2], [2], [1], [1], [0, 0, 0, 1, 1, 1], [0], [0]>} : vector<4x24x16xf32>, vector<4x16x16xf32>, vector<4x24x16xf32> -> vector<4x24x16xf32>
    "tpu.trace_stop"() : () -> ()
    %c0_7 = arith.constant 0 : index
    %c0_8 = arith.constant 0 : index
    %c0_9 = arith.constant 0 : index
    %c0_10 = arith.constant 0 : index
    %7 = vector.load %arg6[%c0_7, %c0_8, %c0_9, %c0_10] : memref<1x4x24x16xf32, #tpu.memory_space<vmem>>, vector<1x4x24x16xf32>
    %8 = vector.shape_cast %7 : vector<1x4x24x16xf32> to vector<4x24x16xf32>
    %9 = arith.addf %6, %8 : vector<4x24x16xf32>
    %c0_11 = arith.constant 0 : index
    %c0_12 = arith.constant 0 : index
    %c0_13 = arith.constant 0 : index
    %10 = vector.load %arg17[%c0_11, %c0_12, %c0_13] : memref<4x24x1xf32, #tpu.memory_space<vmem>>, vector<4x24x1xf32>
    %cst_14 = arith.constant dense<0xFF800000> : vector<4x24xf32>
    %11 = vector.multi_reduction <maximumf>, %9, %cst_14 [2] : vector<4x24x16xf32> to vector<4x24xf32>
    %12 = vector.shape_cast %11 : vector<4x24xf32> to vector<4x24x1xf32>
    %13 = arith.maximumf %10, %12 : vector<4x24x1xf32>
    %c0_15 = arith.constant 0 : index
    %c0_16 = arith.constant 0 : index
    %c0_17 = arith.constant 0 : index
    %14 = vector.load %arg17[%c0_15, %c0_16, %c0_17] : memref<4x24x1xf32, #tpu.memory_space<vmem>>, vector<4x24x1xf32>
    %15 = arith.subf %14, %13 : vector<4x24x1xf32>
    %16 = math.exp %15 : vector<4x24x1xf32>
    %17 = vector.broadcast %13 : vector<4x24x1xf32> to vector<4x24x16xf32>
    %18 = arith.subf %9, %17 : vector<4x24x16xf32>
    %19 = math.exp %18 : vector<4x24x16xf32>
    %c0_18 = arith.constant 0 : index
    %c0_19 = arith.constant 0 : index
    %c0_20 = arith.constant 0 : index
    %20 = vector.load %arg18[%c0_18, %c0_19, %c0_20] : memref<4x24x1xf32, #tpu.memory_space<vmem>>, vector<4x24x1xf32>
    %21 = arith.mulf %16, %20 : vector<4x24x1xf32>
    %cst_21 = arith.constant dense<0.000000e+00> : vector<4x24xf32>
    %22 = vector.multi_reduction <add>, %19, %cst_21 [2] : vector<4x24x16xf32> to vector<4x24xf32>
    %23 = vector.shape_cast %22 : vector<4x24xf32> to vector<4x24x1xf32>
    %24 = arith.addf %21, %23 : vector<4x24x1xf32>
    %c0_22 = arith.constant 0 : index
    %c0_23 = arith.constant 0 : index
    %c0_24 = arith.constant 0 : index
    %25 = vector.load %arg18[%c0_22, %c0_23, %c0_24] : memref<4x24x1xf32, #tpu.memory_space<vmem>>, vector<4x24x1xf32>
    tpu.vector_store %arg18[%c0_22, %c0_23, %c0_24], %24 {strides = array<i32>} : memref<4x24x1xf32, #tpu.memory_space<vmem>>, vector<4x24x1xf32>,
    %c0_25 = arith.constant 0 : index
    %c0_26 = arith.constant 0 : index
    %c0_27 = arith.constant 0 : index
    %26 = vector.load %arg19[%c0_25, %c0_26, %c0_27] : memref<4x24x16xf32, #tpu.memory_space<vmem>>, vector<4x24x16xf32>
    %27 = vector.broadcast %16 : vector<4x24x1xf32> to vector<4x24x16xf32>
    %28 = arith.mulf %27, %26 : vector<4x24x16xf32>
    %c0_28 = arith.constant 0 : index
    %c0_29 = arith.constant 0 : index
    %c0_30 = arith.constant 0 : index
    %c0_31 = arith.constant 0 : index
    %29 = vector.load %arg5[%c0_28, %c0_29, %c0_30, %c0_31] : memref<1x4x16x16xf32, #tpu.memory_space<vmem>>, vector<1x4x16x16xf32>
    %30 = vector.shape_cast %29 : vector<1x4x16x16xf32> to vector<4x16x16xf32>
    "tpu.trace_start"() <{level = 10 : i32, message = "hqk,hkd->hqd"}> : () -> ()
    %cst_32 = arith.constant dense<0.000000e+00> : vector<4x24x16xf32>
    %31 = tpu.matmul %19, %30, %cst_32 {dimension_numbers = #tpu.dot_dimension_numbers<[2], [1], [1], [2], [0, 0, 0, 1, 1, 2], [0], [0]>} : vector<4x24x16xf32>, vector<4x16x16xf32>, vector<4x24x16xf32> -> vector<4x24x16xf32>
    "tpu.trace_stop"() : () -> ()
    %32 = arith.addf %28, %31 : vector<4x24x16xf32>
    %c0_33 = arith.constant 0 : index
    %c0_34 = arith.constant 0 : index
    %c0_35 = arith.constant 0 : index
    %33 = vector.load %arg19[%c0_33, %c0_34, %c0_35] : memref<4x24x16xf32, #tpu.memory_space<vmem>>, vector<4x24x16xf32>
    tpu.vector_store %arg19[%c0_33, %c0_34, %c0_35], %32 {strides = array<i32>} : memref<4x24x16xf32, #tpu.memory_space<vmem>>, vector<4x24x16xf32>,
    %c0_36 = arith.constant 0 : index
    %c0_37 = arith.constant 0 : index
    %c0_38 = arith.constant 0 : index
    %34 = vector.load %arg17[%c0_36, %c0_37, %c0_38] : memref<4x24x1xf32, #tpu.memory_space<vmem>>, vector<4x24x1xf32>
    tpu.vector_store %arg17[%c0_36, %c0_37, %c0_38], %13 {strides = array<i32>} : memref<4x24x1xf32, #tpu.memory_space<vmem>>, vector<4x24x1xf32>,
    %c0_i32_39 = arith.constant 0 : i32
    %35 = arith.cmpi eq, %arg2, %c0_i32_39 : i32
    %36 = arith.extui %35 : i1 to i32
    %c0_i32_40 = arith.constant 0 : i32
    %37 = arith.cmpi ne, %36, %c0_i32_40 : i32
    scf.if %37 {
      %c0_41 = arith.constant 0 : index
      %c0_42 = arith.constant 0 : index
      %c0_43 = arith.constant 0 : index
      %38 = vector.load %arg18[%c0_41, %c0_42, %c0_43] : memref<4x24x1xf32, #tpu.memory_space<vmem>>, vector<4x24x1xf32>
      %cst_44 = arith.constant 1.000000e+00 : f32
      %39 = vector.broadcast %cst_44 : f32 to vector<4x24x1xf32>
      %40 = arith.divf %39, %38 : vector<4x24x1xf32>
      %c0_45 = arith.constant 0 : index
      %c0_46 = arith.constant 0 : index
      %c0_47 = arith.constant 0 : index
      %41 = vector.load %arg19[%c0_45, %c0_46, %c0_47] : memref<4x24x16xf32, #tpu.memory_space<vmem>>, vector<1x24x16xf32>
      %42 = vector.shape_cast %41 : vector<1x24x16xf32> to vector<24x16xf32>
      %43 = vector.extract_strided_slice %40 {offsets = [0, 0, 0], sizes = [1, 24, 1], strides = [1, 1, 1]} : vector<4x24x1xf32> to vector<1x24x1xf32>
      %44 = vector.shape_cast %43 : vector<1x24x1xf32> to vector<24x1xf32>
      %45 = vector.broadcast %44 : vector<24x1xf32> to vector<24x16xf32>
      %46 = arith.mulf %42, %45 : vector<24x16xf32>
      %c1 = arith.constant 1 : index
      %c0_48 = arith.constant 0 : index
      %c0_49 = arith.constant 0 : index
      %47 = vector.load %arg19[%c1, %c0_48, %c0_49] : memref<4x24x16xf32, #tpu.memory_space<vmem>>, vector<1x24x16xf32>
      %48 = vector.shape_cast %47 : vector<1x24x16xf32> to vector<24x16xf32>
      %49 = vector.extract_strided_slice %40 {offsets = [1, 0, 0], sizes = [1, 24, 1], strides = [1, 1, 1]} : vector<4x24x1xf32> to vector<1x24x1xf32>
      %50 = vector.shape_cast %49 : vector<1x24x1xf32> to vector<24x1xf32>
      %51 = vector.broadcast %50 : vector<24x1xf32> to vector<24x16xf32>
      %52 = arith.mulf %48, %51 : vector<24x16xf32>
      %c2 = arith.constant 2 : index
      %c0_50 = arith.constant 0 : index
      %c0_51 = arith.constant 0 : index
      %53 = vector.load %arg19[%c2, %c0_50, %c0_51] : memref<4x24x16xf32, #tpu.memory_space<vmem>>, vector<1x24x16xf32>
      %54 = vector.shape_cast %53 : vector<1x24x16xf32> to vector<24x16xf32>
      %55 = vector.extract_strided_slice %40 {offsets = [2, 0, 0], sizes = [1, 24, 1], strides = [1, 1, 1]} : vector<4x24x1xf32> to vector<1x24x1xf32>
      %56 = vector.shape_cast %55 : vector<1x24x1xf32> to vector<24x1xf32>
      %57 = vector.broadcast %56 : vector<24x1xf32> to vector<24x16xf32>
      %58 = arith.mulf %54, %57 : vector<24x16xf32>
      %c3 = arith.constant 3 : index
      %c0_52 = arith.constant 0 : index
      %c0_53 = arith.constant 0 : index
      %59 = vector.load %arg19[%c3, %c0_52, %c0_53] : memref<4x24x16xf32, #tpu.memory_space<vmem>>, vector<1x24x16xf32>
      %60 = vector.shape_cast %59 : vector<1x24x16xf32> to vector<24x16xf32>
      %61 = vector.extract_strided_slice %40 {offsets = [3, 0, 0], sizes = [1, 24, 1], strides = [1, 1, 1]} : vector<4x24x1xf32> to vector<1x24x1xf32>
      %62 = vector.shape_cast %61 : vector<1x24x1xf32> to vector<24x1xf32>
      %63 = vector.broadcast %62 : vector<24x1xf32> to vector<24x16xf32>
      %64 = arith.mulf %60, %63 : vector<24x16xf32>
      %65 = tpu.concatenate %46, %52, %58, %64 in 1 : vector<24x16xf32>, vector<24x16xf32>, vector<24x16xf32>, vector<24x16xf32> -> vector<24x64xf32>
      %c0_54 = arith.constant 0 : index
      %c0_55 = arith.constant 0 : index
      %66 = vector.load %arg16[%c0_54, %c0_55] : memref<24x64xf32, #tpu.memory_space<vmem>>, vector<24x64xf32>
      %67 = arith.mulf %65, %66 : vector<24x64xf32>
      %c0_56 = arith.constant 0 : index
      %c0_57 = arith.constant 0 : index
      %68 = vector.load %arg9[%c0_56, %c0_57] : memref<64x32xf32, #tpu.memory_space<vmem>>, vector<64x32xf32>
      %cst_58 = arith.constant dense<0.000000e+00> : vector<24x32xf32>
      %69 = tpu.matmul %67, %68, %cst_58 {dimension_numbers = #tpu.dot_dimension_numbers<[1], [0], [0], [1], [0, 0, 1, 1], [], []>} : vector<24x64xf32>, vector<64x32xf32>, vector<24x32xf32> -> vector<24x32xf32>
      %c0_59 = arith.constant 0 : index
      %c0_60 = arith.constant 0 : index
      %70 = vector.load %arg10[%c0_59, %c0_60] : memref<1x32xf32, #tpu.memory_space<vmem>>, vector<1x32xf32>
      %71 = vector.broadcast %70 : vector<1x32xf32> to vector<24x32xf32>
      %72 = arith.addf %69, %71 : vector<24x32xf32>
      %c0_61 = arith.constant 0 : index
      %c0_62 = arith.constant 0 : index
      %73 = vector.load %arg15[%c0_61, %c0_62] : memref<24x32xf32, #tpu.memory_space<vmem>>, vector<24x32xf32>
      %74 = arith.addf %73, %72 : vector<24x32xf32>
      %c0_63 = arith.constant 0 : index
      %c0_64 = arith.constant 0 : index
      %c0_65 = arith.constant 0 : index
      %75 = vector.load %arg13[%c0_63, %c0_64, %c0_65] : memref<1x24x32xf32, #tpu.memory_space<vmem>>, vector<1x24x32xf32>
      %76 = vector.shape_cast %75 : vector<1x24x32xf32> to vector<24x32xf32>
      %77 = vector.shape_cast %74 : vector<24x32xf32> to vector<1x24x32xf32>
      tpu.vector_store %arg13[%c0_63, %c0_64, %c0_65], %77 {strides = array<i32>} : memref<1x24x32xf32, #tpu.memory_space<vmem>>, vector<1x24x32xf32>,
    } else {
    }
    return
  }
  func.func @transform_0(%arg0: i32, %arg1: i32, %arg2: i32) -> (i32, i32, i32) {
    %c0_i32 = arith.constant 0 : i32
    %c0_i32_0 = arith.constant 0 : i32
    return %arg0, %arg1, %c0_i32 : i32, i32, i32
  }
  func.func @transform_1(%arg0: i32, %arg1: i32, %arg2: i32) -> (i32, i32, i32, i32) {
    %c0_i32 = arith.constant 0 : i32
    %c0_i32_0 = arith.constant 0 : i32
    %c0_i32_1 = arith.constant 0 : i32
    return %arg0, %c0_i32, %arg2, %c0_i32_0 : i32, i32, i32, i32
  }
  func.func @transform_2(%arg0: i32, %arg1: i32, %arg2: i32) -> (i32, i32, i32, i32) {
    %c0_i32 = arith.constant 0 : i32
    %c0_i32_0 = arith.constant 0 : i32
    %c0_i32_1 = arith.constant 0 : i32
    return %arg0, %c0_i32, %arg2, %c0_i32_0 : i32, i32, i32, i32
  }
  func.func @transform_3(%arg0: i32, %arg1: i32, %arg2: i32) -> (i32, i32, i32, i32) {
    %c0_i32 = arith.constant 0 : i32
    %c0_i32_0 = arith.constant 0 : i32
    return %arg0, %c0_i32, %arg1, %arg2 : i32, i32, i32, i32
  }
  func.func @transform_4(%arg0: i32, %arg1: i32, %arg2: i32) -> (i32, i32) {
    %c0_i32 = arith.constant 0 : i32
    %c0_i32_0 = arith.constant 0 : i32
    %c0_i32_1 = arith.constant 0 : i32
    return %c0_i32, %c0_i32_0 : i32, i32
  }
  func.func @transform_5(%arg0: i32, %arg1: i32, %arg2: i32) -> (i32, i32) {
    %c0_i32 = arith.constant 0 : i32
    %c0_i32_0 = arith.constant 0 : i32
    %c0_i32_1 = arith.constant 0 : i32
    return %c0_i32, %c0_i32_0 : i32, i32
  }
  func.func @transform_6(%arg0: i32, %arg1: i32, %arg2: i32) -> (i32, i32) {
    %c0_i32 = arith.constant 0 : i32
    %c0_i32_0 = arith.constant 0 : i32
    %c0_i32_1 = arith.constant 0 : i32
    return %c0_i32, %c0_i32_0 : i32, i32
  }
  func.func @transform_7(%arg0: i32, %arg1: i32, %arg2: i32) -> (i32, i32) {
    %c0_i32 = arith.constant 0 : i32
    %c0_i32_0 = arith.constant 0 : i32
    %c0_i32_1 = arith.constant 0 : i32
    return %c0_i32, %c0_i32_0 : i32, i32
  }
  func.func @transform_8(%arg0: i32, %arg1: i32, %arg2: i32) -> (i32, i32) {
    %c0_i32 = arith.constant 0 : i32
    %c0_i32_0 = arith.constant 0 : i32
    %c0_i32_1 = arith.constant 0 : i32
    return %c0_i32, %c0_i32_0 : i32, i32
  }
  func.func @transform_9(%arg0: i32, %arg1: i32, %arg2: i32) -> (i32, i32) {
    %c0_i32 = arith.constant 0 : i32
    %c0_i32_0 = arith.constant 0 : i32
    %c0_i32_1 = arith.constant 0 : i32
    return %c0_i32, %c0_i32_0 : i32, i32
  }
  func.func @transform_10(%arg0: i32, %arg1: i32, %arg2: i32) -> (i32, i32, i32) {
    %c0_i32 = arith.constant 0 : i32
    %c0_i32_0 = arith.constant 0 : i32
    return %arg0, %arg1, %c0_i32 : i32, i32, i32
  }
}

</mosaic_0001>

<bundles_post_ra>
// kernel: bidirectional_triangle_attention.3
= control target key start
LH: loop header
LB: loop body
LE: loop exit
PB: predicated region body
PF: predicated region fallthrough
CT: control target
= control target key end

     0   :  { %s3809_s0 = inlined_call_operand.vmem [shape: f32[2,24,32], index: 0, kind: input, shape index: {}]   ;;  %s3810_s1 = inlined_call_operand.vmem [shape: f32[2,4,16,16], index: 1, kind: input, shape index: {}]   ;;  %s3811_s2 = inlined_call_operand.vmem [shape: f32[2,4,16,16], index: 2, kind: input, shape index: {}]   ;;  %s3812_s3 = inlined_call_operand.vmem [shape: f32[2,4,24,16], index: 3, kind: input, shape index: {}]   ;;  %s3813_s4 = inlined_call_operand.vmem [shape: f32[32,128], index: 4, kind: input, shape index: {}]   ;;  %s3814_s5 = inlined_call_operand.vmem [shape: f32[1,64], index: 5, kind: input, shape index: {}]   ;;  %s3815_s6 = inlined_call_operand.vmem [shape: f32[64,32], index: 6, kind: input, shape index: {}]   ;;  %s3816_s7 = inlined_call_operand.vmem [shape: f32[1,32], index: 7, kind: input, shape index: {}]   ;;  %s3817_s8 = inlined_call_operand.vmem [shape: f32[1,32], index: 8, kind: input, shape index: {}]   ;;  %s3818_s9 = inlined_call_operand.vmem [shape: f32[1,32], index: 9, kind: input, shape index: {}]   ;;  %s3819_s10 = inlined_call_operand.hbm [shape: f32[2,24,32], index: 10, kind: output, shape index: {}]  }
   0x1   :  { %3822 = sst [smem:[#allocation11_spill]] %s3809_s0 }
   0x2   :  { %15 = vsyncpa [#allocation9], 0 }
   0x3   :  { %17 = vsyncpa [#allocation9 + $0x1], 0  ;;  %s3056_s13 = smov 0   ;;  %s3058_s14 = smov 0  }
   0x4   :  { %s3060_s15 = smov 0   ;;  %s3062_s16 = smov 0  }
   0x5   :  { %s3064_s17 = smov 0   ;;  %s3066_s18 = smov 0  }
   0x6 LB: > { %s2430_s19 = sadd.s32 4294967295, %s2984_s18   ;;  %s2431_s20 = sadd.s32 4294967294, %s2984_s18   ;;  %s2984_s18 = sphi %s3066_s18, %s23_s18   ;;  %s2980_s17 = sphi %s3064_s17, %s3834_s17   ;;  %s2976_s16 = sphi %s3062_s16, %s3833_s16   ;;  %s2972_s15 = sphi %s3060_s15, %s3832_s15   ;;  %s2968_s14 = sphi %s3058_s14, %s3831_s14   ;;  %s2964_s13 = sphi %s3056_s13, %s3830_s13  }
   0x7   : > { %s42_s21 = sadd.s32 1, %s2980_s17  ;;  %s291_s22 = sadd.s32 1, %s2972_s15 }
   0x8   : > { %p44_p0 = scmp.ge.s32.totalorder %s42_s21, 2  ;;  %p301_p1 = scmp.ne.s32.totalorder %s2972_s15, %s2968_s14 }
   0x9   : > { %p302_p2 = scmp.eq.s32.totalorder %s2430_s19, 1  ;;  %p307_p3 = scmp.ne.s32.totalorder %s2968_s14, %s2964_s13 }
   0xa   : > { %s3836_s21 = smov (%p44_p0, %s42_s21), 0  ;;  %p308_p5 = scmp.eq.s32.totalorder %s2431_s20, 1 }
   0xb   : > { %p3096_p4 = por %p302_p2, %p301_p1  ;;  %s286_s24 = ssub.s32 %s2980_s17, %s3836_s21 }
   0xc   : > { %p2434_p6 = scmp.ge.s32.totalorder %s2984_s18, 1  ;;  %p289_p7 = scmp.eq.s32.totalorder %s286_s24, 0 }
   0xd   : > { %p3103_p8 = por %p308_p5, %p307_p3  ;;  %p399_p9 = scmp.lt.s32.totalorder %s2984_s18, 3 }
   0xe   : > { %s3109_s26 = scalar_select %p289_p7, %s2972_s15, %s291_s22  }
   0xf   : > { %p400_p10 = pnand %p2434_p6, %p399_p9 }
  0x10   : > { %p472_p11 = scmp.lt.s32.totalorder (!%p400_p10), %s2976_s16, 1  ;;  %vm522_vm0 = vcmask (!%p400_p10), 261120   ;;  %s3825_s0 = sld [smem:[#allocation11_spill]] (!%p400_p10)  ;;  %v586_v21 = vld [vmem:[%s3813_s4] sm:$0xff] (!%p400_p10)  ;;  %v587_v22 = vld [vmem:[%s3813_s4 + $0x8] sm:$0xff] (!%p400_p10)  ;;  %v588_v23 = vld [vmem:[%s3813_s4 + $0x10] sm:$0xff] (!%p400_p10) }
  0x11   : > { %403 = sbr.rel (%p400_p10) target bundleno = 1862 (0x746), region = 60  ;;  %v3820_v24 = vmov (!%p400_p10), 0.0|0.0   ;;  %v2696_v25 = vpack.c.bf16 (!%p400_p10), %v587_v22, %v586_v21  ;;  %v589_v26 = vld [vmem:[%s3813_s4 + $0x18] sm:$0xff] (!%p400_p10)  ;;  %vm2987_vm1 = vmmov (!%p400_p10), 0   ;;  %v2988_v27 = vmov (!%p400_p10), 0.0   ;;  %s2989_s30 = smov (!%p400_p10), 112  }
  0x12   : > { %2695 = vmatprep.subr.bf16.mxu0 (!%p400_p10), %v3820_v24  ;;  %2557 = vmatprep.mubr.msk.f32.mxu0 (!%p400_p10), %vm2987_vm1, %v2988_v27  ;;  %v2699_v28 = vpack.c.bf16 (!%p400_p10), %v589_v26, %v588_v23  ;;  %v2441_v39 = vld [vmem:[%s3817_s8] ss:$0 sm:$0xff] (!%p400_p10)  ;;  %vm725_vm2 = vcmask (!%p400_p10), 130048   ;;  %s2991_s12 = smov (!%p400_p10), 96   ;;  %vm771_vm4 = vcmask (!%p400_p10), 7168   ;;  %vm721_vm5 = vcmask (!%p400_p10), 523264  }
  0x13   : > { %2701 = vmatprep.subr.bf16.mxu1 (!%p400_p10), %v3820_v24  ;;  %2570 = vmatprep.mubr.msk.f32.mxu1 (!%p400_p10), %vm2987_vm1, %v2988_v27  ;;  %v2442_v41 = vld [vmem:[%s3818_s9] ss:$0 sm:$0xff] (!%p400_p10)  ;;  %796 = vst.msk [vmem:[#allocation7] sm:$0xff] (!%p400_p10), %vm725_vm2, %v2988_v27  ;;  %797 = vst.msk [vmem:[#allocation7 + $0x8] sm:$0xff] (!%p400_p10), %vm725_vm2, %v2988_v27  ;;  %vm2151_vm6 = vcmask (!%p400_p10), 392192   ;;  %s2998_s24 = smov (!%p400_p10), [#allocation8]  }
  0x14   : > { %2697 = vmatpush3.bf16.msra.mxu0 (!%p400_p10), %v2696_v25  ;;  %798 = vst.msk [vmem:[#allocation7 + $0x10] sm:$0xff] (!%p400_p10), %vm725_vm2, %v2988_v27  ;;  %799 = vst.msk [vmem:[#allocation7 + $0x18] sm:$0xff] (!%p400_p10), %vm725_vm2, %v2988_v27 }
  0x15   : > { %2698 = vmatprep.subr.bf16.mxu0 (!%p400_p10), %v3820_v24  ;;  %800 = vst.msk [vmem:[#allocation7 + $0x20] sm:$0xff] (!%p400_p10), %vm725_vm2, %v2988_v27  ;;  %801 = vst.msk [vmem:[#allocation7 + $0x28] sm:$0xff] (!%p400_p10), %vm725_vm2, %v2988_v27 }
  0x16   : > { %802 = vst.msk [vmem:[#allocation7 + $0x30] sm:$0xff] (!%p400_p10), %vm725_vm2, %v2988_v27  ;;  %803 = vst.msk [vmem:[#allocation7 + $0x38] sm:$0xff] (!%p400_p10), %vm725_vm2, %v2988_v27 }
  0x17   : > { %804 = vst.msk [vmem:[#allocation7 + $0x40] sm:$0xff] (!%p400_p10), %vm725_vm2, %v2988_v27  ;;  %805 = vst.msk [vmem:[#allocation7 + $0x48] sm:$0xff] (!%p400_p10), %vm725_vm2, %v2988_v27 }
  0x18   : > { %s3113_s27 = scalar_select %p472_p11, %s2976_s16, 1  ;;  %2700 = vmatpush3.bf16.msra.mxu0 %v2699_v28  ;;  %806 = vst.msk [vmem:[#allocation7 + $0x50] sm:$0xff] %vm725_vm2, %v2988_v27  ;;  %807 = vst.msk [vmem:[#allocation7 + $0x58] sm:$0xff] %vm725_vm2, %v2988_v27 }
  0x19   : > { %2705 = vmatprep.subr.bf16.mxu0 %v3820_v24  ;;  %vm3199_vm3 = vmpackc.low %vm725_vm2, %vm725_vm2  ;;  %784 = vst.msk [vmem:[#allocation6] sm:$0xff] %vm771_vm4, %v2988_v27 }
  0x1a   : > { %s2742_s28 = smul.u32 24, %s3113_s27  ;;  %s2489_s22 = sshll.u32 %s3113_s27, 6  ;;  %785 = vst.msk [vmem:[#allocation6 + $0x8] sm:$0xff] %vm771_vm4, %v2988_v27  ;;  %786 = vst.msk [vmem:[#allocation6 + $0x10] sm:$0xff] %vm771_vm4, %v2988_v27 }
  0x1b   : > { %s3169_s29 = scalar_lea.vmem %s3810_s1, %s2489_s22  ;;  %s2743_s19 = smul.u32 96, %s3113_s27  ;;  %787 = vst.msk [vmem:[#allocation6 + $0x18] sm:$0xff] %vm771_vm4, %v2988_v27  ;;  %788 = vst.msk [vmem:[#allocation6 + $0x20] sm:$0xff] %vm771_vm4, %v2988_v27 }
  0x1c   : > { %s479_s11 = scalar_lea.vmem %s3825_s0, %s2742_s28  ;;  %v820_v52 = vld [vmem:[%s3169_s29] sm:$0xff]  ;;  %v821_v53 = vld [vmem:[%s3169_s29 + $0x8] sm:$0xff]  ;;  %v822_v56 = vld [vmem:[%s3169_s29 + $0x10] sm:$0xff]  ;;  %789 = vst.msk [vmem:[#allocation6 + $0x28] sm:$0xff] %vm771_vm4, %v2988_v27 }
  0x1d   : > { %v519_v0 = vld [vmem:[%s479_s11] sm:$0xff]  ;;  %v521_v1 = vld [vmem:[%s479_s11 + $0x10] sm:$0xff]  ;;  %v520_v2 = vld [vmem:[%s479_s11 + $0x8] sm:$0xff]  ;;  %v2702_v54 = vpack.c.bf16 %v821_v53, %v820_v52  ;;  %s2990_s11 = smov 80   ;;  %s3291_s28 = scalar_lea.vmem %s3812_s3, %s2743_s19  ;;  %790 = vst.msk [vmem:[#allocation6 + $0x30] sm:$0xff] %vm771_vm4, %v2988_v27 }
  0x1e   : > { %v523_v3 = vsel %vm522_vm0, %v519_v0, 0.0  ;;  %v529_v4 = vsel %vm522_vm0, %v521_v1, 0.0  ;;  %v526_v5 = vsel %vm522_vm0, %v520_v2, 0.0  ;;  %v823_v57 = vld [vmem:[%s3169_s29 + $0x18] sm:$0xff]  ;;  %v824_v61 = vld [vmem:[%s3169_s29 + $0x20] sm:$0xff]  ;;  %v825_v62 = vld [vmem:[%s3169_s29 + $0x28] sm:$0xff] }
  0x1f   : > { %524 = vadd.xlane.f32.xlu0 %v523_v3  ;;  %530 = vadd.xlane.f32.xlu1 %v529_v4  ;;  %v2706_v58 = vpack.c.bf16 %v823_v57, %v822_v56  ;;  %791 = vst.msk [vmem:[#allocation6 + $0x38] sm:$0xff] %vm771_vm4, %v2988_v27  ;;  %792 = vst.msk [vmem:[#allocation6 + $0x40] sm:$0xff] %vm771_vm4, %v2988_v27  ;;  %v832_v52 = vld [vmem:[%s3291_s28 + $0x20] sm:$0xff]  ;;  %v833_v56 = vld [vmem:[%s3291_s28 + $0x28] sm:$0xff]  ;;  %s2995_s19 = smov 16  }
  0x20   : > { %2704 = vmatpush3.bf16.xpose.msk.msra.mxu1 %vm3199_vm3, %v2702_v54  ;;  %793 = vst.msk [vmem:[#allocation6 + $0x48] sm:$0xff] %vm771_vm4, %v2988_v27  ;;  %794 = vst.msk [vmem:[#allocation6 + $0x50] sm:$0xff] %vm771_vm4, %v2988_v27 }
  0x21   : > { %2709 = vmatprep.subr.bf16.mxu1 %v3820_v24  ;;  %795 = vst.msk [vmem:[#allocation6 + $0x58] sm:$0xff] %vm771_vm4, %v2988_v27 }
  0x23   : > { %527 = vadd.xlane.f32.xlu0 %v526_v5 }
  0xac   : > { %v525_v6 = vpop.xlane.xlu0 %524  ;;  %v531_v7 = vpop.xlane.xlu1 %530 }
  0xad   : > { %v533_v8 = vmul.f32 0.03125, %v525_v6  ;;  %v535_v9 = vmul.f32 0.03125, %v531_v7 }
  0xaf   : > { %v536_v10 = vsub.f32 %v519_v0, %v533_v8  ;;  %v538_v11 = vsub.f32 %v521_v1, %v535_v9  ;;  %v2710_v1 = vpack.c.bf16 %v825_v62, %v824_v61  ;;  %v826_v8 = vld [vmem:[%s3169_s29 + $0x30] sm:$0xff]  ;;  %v827_v9 = vld [vmem:[%s3169_s29 + $0x38] sm:$0xff]  ;;  %s2996_s29 = smov 32  }
  0xb0   : > { %v528_v12 = vpop.xlane.xlu0 %527  ;;  %v834_v62 = vld [vmem:[%s3291_s28 + $0x30] sm:$0xff] }
  0xb1   : > { %v534_v13 = vmul.f32 0.03125, %v528_v12  ;;  %v539_v14 = vmul.f32 %v536_v10, %v536_v10  ;;  %v541_v15 = vmul.f32 %v538_v11, %v538_v11  ;;  %v2714_v12 = vpack.c.bf16 %v827_v9, %v826_v8  ;;  %v835_v9 = vld [vmem:[%s3291_s28 + $0x38] sm:$0xff] }
  0xb3   : > { %v537_v16 = vsub.f32 %v520_v2, %v534_v13  ;;  %v542_v17 = vsel %vm522_vm0, %v539_v14, 0.0  ;;  %v548_v18 = vsel %vm522_vm0, %v541_v15, 0.0 }
  0xb4   : > { %543 = vadd.xlane.f32.xlu1 %v542_v17 }
  0xb5   : > { %v540_v19 = vmul.f32 %v537_v16, %v537_v16 }
  0xb7   : > { %v545_v20 = vsel %vm522_vm0, %v540_v19, 0.0 }
  0xb8   : > { %549 = vadd.xlane.f32.xlu1 %v548_v18  ;;  %546 = vadd.xlane.f32.xlu0 %v545_v20 }
 0x141   : > { %v544_v29 = vpop.xlane.xlu1 %543 }
 0x142   : > { %v551_v30 = vmul.f32 0.03125, %v544_v29 }
 0x144   : > { %v554_v31 = vadd.f32 1e-05, %v551_v30  ;;  %v828_v30 = vld [vmem:[%s3291_s28] sm:$0xff] }
 0x145   : > { %v550_v32 = vpop.xlane.xlu1 %549  ;;  %v547_v33 = vpop.xlane.xlu0 %546 }
 0x146   : > { %2816 = vrsqrt.f32 %v554_v31  ;;  %v553_v34 = vmul.f32 0.03125, %v550_v32  ;;  %v552_v35 = vmul.f32 0.03125, %v547_v33 }
 0x148   : > { %v556_v36 = vadd.f32 1e-05, %v553_v34  ;;  %v555_v37 = vadd.f32 1e-05, %v552_v35  ;;  %v829_v34 = vld [vmem:[%s3291_s28 + $0x8] sm:$0xff] }
 0x14a   : > { %2818 = vrsqrt.f32 %v556_v36 }
 0x14b   : > { %2820 = vrsqrt.f32 %v555_v37 }
 0x150   : > { %v2817_v38 = vpop.eup %2816 }
 0x151   : > { %v560_v40 = vmul.f32 %v2817_v38, %v536_v10 }
 0x153   : > { %v570_v42 = vmul.f32 %v2441_v39, %v560_v40 }
 0x154   : > { %v2819_v43 = vpop.eup %2818 }
 0x155   : > { %v2821_v44 = vpop.eup %2820  ;;  %v580_v45 = vadd.f32 %v2442_v41, %v570_v42  ;;  %v562_v46 = vmul.f32 %v2819_v43, %v538_v11 }
 0x156   : > { %v561_v47 = vmul.f32 %v2821_v44, %v537_v16  ;;  %v2992_v44 = vmov -inf  }
 0x157   : > { %583 = vst.msk [vmem:[#allocation3] sm:$0xff] %vm522_vm0, %v580_v45  ;;  %2558 = vmatmul.mubr.msk.f32.vlgmr.msra.gmra.mrb[0].mxu0 %vm522_vm0, %v580_v45  ;;  %v572_v48 = vmul.f32 %v2441_v39, %v562_v46  ;;  %v2993_v46 = vmov 0  }
 0x158   : > { %2560 = vmatprep.mubr.msk.f32.mxu0 %vm2987_vm1, %v2988_v27  ;;  %v571_v49 = vmul.f32 %v2441_v39, %v561_v47  ;;  %2708 = vmatpush3.bf16.xpose.msk.msra.mxu0 %vm3199_vm3, %v2706_v58  ;;  %v830_v39 = vld [vmem:[%s3291_s28 + $0x10] sm:$0xff]  ;;  %772 = vst.msk [vmem:[#allocation5] sm:$0xff] %vm771_vm4, %v2992_v44  ;;  %773 = vst.msk [vmem:[#allocation5 + $0x8] sm:$0xff] %vm771_vm4, %v2992_v44  ;;  %v831_v47 = vld [vmem:[%s3291_s28 + $0x18] sm:$0xff] }
 0x159   : > { %v582_v50 = vadd.f32 %v2442_v41, %v572_v48  ;;  %2713 = vmatprep.subr.bf16.mxu0 %v3820_v24  ;;  %774 = vst.msk [vmem:[#allocation5 + $0x10] sm:$0xff] %vm771_vm4, %v2992_v44  ;;  %775 = vst.msk [vmem:[#allocation5 + $0x18] sm:$0xff] %vm771_vm4, %v2992_v44  ;;  %2814 = vset.pattern.permute.xlu1 %v2993_v46 }
 0x15a   : > { %v581_v51 = vadd.f32 %v2442_v41, %v571_v49  ;;  %776 = vst.msk [vmem:[#allocation5 + $0x20] sm:$0xff] %vm771_vm4, %v2992_v44  ;;  %777 = vst.msk [vmem:[#allocation5 + $0x28] sm:$0xff] %vm771_vm4, %v2992_v44  ;;  %2815 = vset.pattern.permute.xlu0 %v2993_v46 }
 0x15b   : > { %585 = vst.msk [vmem:[#allocation3 + $0x10] sm:$0xff] %vm522_vm0, %v582_v50 }
 0x15c   : > { %584 = vst.msk [vmem:[#allocation3 + $0x8] sm:$0xff] %vm522_vm0, %v581_v51  ;;  %2561 = vmatmul.mubr.msk.f32.gmra.mrb[2].mxu0 %vm522_vm0, %v581_v51 }
 0x15d   : > { %2563 = vmatprep.mubr.msk.f32.mxu0 %vm2987_vm1, %v2988_v27  ;;  %778 = vst.msk [vmem:[#allocation5 + $0x30] sm:$0xff] %vm771_vm4, %v2992_v44  ;;  %779 = vst.msk [vmem:[#allocation5 + $0x38] sm:$0xff] %vm771_vm4, %v2992_v44 }
 0x15e   : > { %780 = vst.msk [vmem:[#allocation5 + $0x40] sm:$0xff] %vm771_vm4, %v2992_v44  ;;  %781 = vst.msk [vmem:[#allocation5 + $0x48] sm:$0xff] %vm771_vm4, %v2992_v44 }
 0x15f   : > { %782 = vst.msk [vmem:[#allocation5 + $0x50] sm:$0xff] %vm771_vm4, %v2992_v44  ;;  %783 = vst.msk [vmem:[#allocation5 + $0x58] sm:$0xff] %vm771_vm4, %v2992_v44 }
 0x160   : > { %2564 = vmatmul.mubr.msk.f32.gmra.mrb[4].mxu0 %vm522_vm0, %v582_v50 }
 0x161   : > { %2583 = vmatprep.mubr.msk.f32.mxu0 %vm2987_vm1, %v2988_v27 }
 0x22a   : > { %v3211_v59 = vpop.f32.mrb[0].mxu0 }
 0x22b   : > { %726 = vst.msk [vmem:[#allocation2] sm:$0xff] %vm725_vm2, %v3211_v59  ;;  %v2559_v60 = vpop.f32.mrb[1].mxu0  ;;  %732 = vrot.lane.b32.xlu0 %v3211_v59, %s2989_s30 }
 0x22f   : > { %v3218_v63 = vpop.f32.mrb[2].mxu0  ;;  %758 = vrot.lane.b32.xlu0 %v3211_v59, %s2990_s11 }
 0x230   : > { %727 = vst.msk [vmem:[#allocation2 + $0x8] sm:$0xff] %vm725_vm2, %v3218_v63  ;;  %734 = vrot.lane.b32.xlu1 %v3218_v63, %s2989_s30  ;;  %v2562_v0 = vpop.f32.mrb[3].mxu0 }
 0x231   : > { %v837_v0 = vld [vmem:[%s3291_s28 + $0x48] sm:$0xff] }
 0x232   : > { %v808_v2 = vld [vmem:[#allocation2] sm:$0xff] }
 0x233   : > { %v3224_v3 = vpop.f32.mrb[4].mxu0  ;;  %2571 = vmatmul.mubr.msk.f32.vlgmr.msra.gmra.mrb[0].mxu1 %vm725_vm2, %v808_v2  ;;  %760 = vrot.lane.b32.xlu0 %v3218_v63, %s2990_s11 }
 0x234   : > { %728 = vst.msk [vmem:[#allocation2 + $0x10] sm:$0xff] %vm725_vm2, %v3224_v3  ;;  %736 = vrot.lane.b32.xlu1 %v3224_v3, %s2989_s30  ;;  %v2565_v4 = vpop.f32.mrb[5].mxu0  ;;  %2573 = vmatprep.mubr.msk.f32.mxu1 %vm2987_vm1, %v2988_v27 }
 0x235   : > { %2712 = vmatpush3.bf16.xpose.msk.msra.mxu1 %vm3199_vm3, %v2710_v1 }
 0x236   : > { %2717 = vmatprep.subr.bf16.mxu1 %v3820_v24 }
 0x237   : > { %v809_v5 = vld [vmem:[#allocation2 + $0x8] sm:$0xff]  ;;  %762 = vrot.lane.b32.xlu0 %v3224_v3, %s2990_s11  ;;  %s3423_s11 = scalar_lea.vmem %s3811_s2, %s2489_s22 }
 0x238   : > { %2574 = vmatmul.mubr.msk.f32.gmra.mrb[2].mxu1 %vm725_vm2, %v809_v5  ;;  %745 = vrot.lane.b32.xlu1 %v3211_v59, %s2991_s12 }
 0x239   : > { %2576 = vmatprep.mubr.msk.f32.mxu1 %vm2987_vm1, %v2988_v27 }
 0x23b   : > { %v810_v6 = vld [vmem:[#allocation2 + $0x10] sm:$0xff] }
 0x23c   : > { %747 = vrot.lane.b32.xlu1 %v3218_v63, %s2991_s12  ;;  %2577 = vmatmul.mubr.msk.f32.gmra.mrb[4].mxu1 %vm725_vm2, %v810_v6 }
 0x23d   : > { %2596 = vmatprep.mubr.msk.f32.mxu1 %vm2987_vm1, %v2988_v27 }
 0x240   : > { %749 = vrot.lane.b32.xlu1 %v3224_v3, %s2991_s12  ;;  %s2994_s12 = smov 64  }
 0x29d   : > { %v733_v7 = vpop.permute.xlu0 %732 }
 0x29e   : > { %742 = vst.msk [vmem:[#allocation2 + $0x18] sm:$0xff] %vm725_vm2, %v733_v7 }
 0x2a1   : > { %v759_v10 = vpop.permute.xlu0 %758 }
 0x2a2   : > { %v735_v11 = vpop.permute.xlu1 %734  ;;  %768 = vst.msk [vmem:[#allocation2 + $0x48] sm:$0xff] %vm725_vm2, %v759_v10  ;;  %v838_v10 = vld [vmem:[%s3291_s28 + $0x50] sm:$0xff] }
 0x2a3   : > { %743 = vst.msk [vmem:[#allocation2 + $0x20] sm:$0xff] %vm725_vm2, %v735_v11 }
 0x2a5   : > { %v761_v13 = vpop.permute.xlu0 %760  ;;  %v811_v14 = vld [vmem:[#allocation2 + $0x18] sm:$0xff] }
 0x2a6   : > { %v737_v15 = vpop.permute.xlu1 %736  ;;  %769 = vst.msk [vmem:[#allocation2 + $0x50] sm:$0xff] %vm725_vm2, %v761_v13  ;;  %2584 = vmatmul.mubr.msk.f32.vlgmr.msra.gmra.mrb[6].mxu0 %vm725_vm2, %v811_v14 }
 0x2a7   : > { %744 = vst.msk [vmem:[#allocation2 + $0x28] sm:$0xff] %vm725_vm2, %v737_v15  ;;  %2586 = vmatprep.mubr.msk.f32.mxu0 %vm2987_vm1, %v2988_v27  ;;  %2716 = vmatpush3.bf16.xpose.msk.msra.mxu0 %vm3199_vm3, %v2714_v12 }
 0x2a8   : > { %2720 = vmatprep.subr.bf16.mxu0 %v3820_v24 }
 0x2a9   : > { %v763_v16 = vpop.permute.xlu0 %762  ;;  %v817_v23 = vld [vmem:[#allocation2 + $0x48] sm:$0xff] }
 0x2aa   : > { %v746_v17 = vpop.permute.xlu1 %745  ;;  %770 = vst.msk [vmem:[#allocation2 + $0x58] sm:$0xff] %vm725_vm2, %v763_v16  ;;  %v812_v18 = vld [vmem:[#allocation2 + $0x20] sm:$0xff] }
 0x2ab   : > { %755 = vst.msk [vmem:[#allocation2 + $0x30] sm:$0xff] %vm725_vm2, %v746_v17  ;;  %2587 = vmatmul.mubr.msk.f32.gmra.mrb[8].mxu0 %vm725_vm2, %v812_v18 }
 0x2ac   : > { %2589 = vmatprep.mubr.msk.f32.mxu0 %vm2987_vm1, %v2988_v27 }
 0x2ad   : > { %v818_v26 = vld [vmem:[#allocation2 + $0x50] sm:$0xff] }
 0x2ae   : > { %v748_v19 = vpop.permute.xlu1 %747  ;;  %v813_v20 = vld [vmem:[#allocation2 + $0x28] sm:$0xff] }
 0x2af   : > { %756 = vst.msk [vmem:[#allocation2 + $0x38] sm:$0xff] %vm725_vm2, %v748_v19  ;;  %2590 = vmatmul.mubr.msk.f32.gmra.mrb[10].mxu0 %vm725_vm2, %v813_v20  ;;  %v836_v19 = vld [vmem:[%s3291_s28 + $0x40] sm:$0xff]  ;;  %v839_v20 = vld [vmem:[%s3291_s28 + $0x58] sm:$0xff]  ;;  %s2910_s28 = sshll.u32 %s2998_s24, 4  ;;  %s2911_s28 = int_to_ptr.vmem [resolvable:$false] %s2910_s28 }
 0x2b0   : > { %2609 = vmatprep.mubr.msk.f32.mxu0 %vm2987_vm1, %v2988_v27  ;;  %s2912_s0 = scalar_lea.vmem %s2911_s28, 768 }
 0x2b1   : > { %v819_v29 = vld [vmem:[#allocation2 + $0x58] sm:$0xff] }
 0x2b2   : > { %v750_v21 = vpop.permute.xlu1 %749  ;;  %v814_v22 = vld [vmem:[#allocation2 + $0x30] sm:$0xff] }
 0x2b3   : > { %757 = vst.msk [vmem:[#allocation2 + $0x40] sm:$0xff] %vm725_vm2, %v750_v21  ;;  %2597 = vmatmul.mubr.msk.f32.vlgmr.msra.gmra.mrb[6].mxu1 %vm725_vm2, %v814_v22  ;;  %2610 = vmatmul.mubr.msk.f32.vlgmr.msra.gmra.mrb[12].mxu0 %vm725_vm2, %v817_v23 }
 0x2b4   : > { %2599 = vmatprep.mubr.msk.f32.mxu1 %vm2987_vm1, %v2988_v27  ;;  %2612 = vmatprep.mubr.msk.f32.mxu0 %vm2987_vm1, %v2988_v27 }
 0x2b6   : > { %v815_v25 = vld [vmem:[#allocation2 + $0x38] sm:$0xff] }
 0x2b7   : > { %2600 = vmatmul.mubr.msk.f32.gmra.mrb[8].mxu1 %vm725_vm2, %v815_v25  ;;  %2613 = vmatmul.mubr.msk.f32.gmra.mrb[14].mxu0 %vm725_vm2, %v818_v26 }
 0x2b8   : > { %2602 = vmatprep.mubr.msk.f32.mxu1 %vm2987_vm1, %v2988_v27  ;;  %2615 = vmatprep.mubr.msk.f32.mxu0 %vm2987_vm1, %v2988_v27 }
 0x2ba   : > { %v816_v28 = vld [vmem:[#allocation2 + $0x40] sm:$0xff] }
 0x2bb   : > { %2603 = vmatmul.mubr.msk.f32.gmra.mrb[10].mxu1 %vm725_vm2, %v816_v28  ;;  %2616 = vmatmul.mubr.msk.f32.gmra.mrb[16].mxu0 %vm725_vm2, %v819_v29 }
 0x2bc   : > { %2622 = vmatprep.mubr.msk.f32.mxu1 %vm2987_vm1, %v2988_v27  ;;  %2635 = vmatprep.mubr.msk.f32.mxu0 %vm2987_vm1, %v2988_v27 }
 0x306   : > { %v922_v31 = vpop.f32.mrb[0].mxu1 }
 0x307   : > { %v3294_v32 = vadd.f32 %v922_v31, %v828_v30  ;;  %v2572_v33 = vpop.f32.mrb[1].mxu1 }
 0x309   : > { %v1233_v35 = vsel %vm725_vm2, %v3294_v32, -inf }
 0x30a   : > { %1234 = vmax.xlane.f32.xlu1 %v1233_v35 }
 0x30b   : > { %v927_v36 = vpop.f32.mrb[2].mxu1 }
 0x30c   : > { %v3299_v37 = vadd.f32 %v927_v36, %v829_v34  ;;  %v2575_v38 = vpop.f32.mrb[3].mxu1  ;;  %v3389_v34 = vld [vmem:[#allocation5] sm:$0xff] }
 0x30e   : > { %v1236_v40 = vsel %vm725_vm2, %v3299_v37, -inf }
 0x30f   : > { %1237 = vmax.xlane.f32.xlu0 %v1236_v40  ;;  %v932_v41 = vpop.f32.mrb[4].mxu1 }
 0x310   : > { %v3304_v42 = vadd.f32 %v932_v41, %v830_v39  ;;  %v2578_v43 = vpop.f32.mrb[5].mxu1  ;;  %v3398_v39 = vld [vmem:[#allocation5 + $0x8] sm:$0xff] }
 0x311   : > { %v3403_v43 = vld [vmem:[#allocation5 + $0x10] sm:$0xff] }
 0x312   : > { %v1239_v45 = vsel %vm725_vm2, %v3304_v42, -inf }
 0x313   : > { %1240 = vmax.xlane.f32.xlu1 %v1239_v45 }
 0x379   : > { %v1017_v48 = vpop.f32.mrb[6].mxu0 }
 0x37a   : > { %v3345_v49 = vadd.f32 %v1017_v48, %v831_v47  ;;  %v2585_v50 = vpop.f32.mrb[7].mxu0  ;;  %v1582_v48 = vld [vmem:[%s3423_s11] sm:$0xff] }
 0x37b   : > { %v1583_v50 = vld [vmem:[%s3423_s11 + $0x8] sm:$0xff] }
 0x37c   : > { %v1242_v51 = vsel %vm725_vm2, %v3345_v49, -inf }
 0x37d   : > { %1243 = vmax.xlane.f32.xlu0 %v1242_v51  ;;  %v2718_v51 = vpack.c.bf16 %v1583_v50, %v1582_v48 }
 0x37e   : > { %v1022_v53 = vpop.f32.mrb[8].mxu0 }
 0x37f   : > { %v3350_v54 = vadd.f32 %v1022_v53, %v832_v52  ;;  %v2588_v55 = vpop.f32.mrb[9].mxu0  ;;  %2719 = vmatpush3.bf16.msra.mxu1 %v2718_v51  ;;  %v3429_v52 = vld [vmem:[#allocation5 + $0x18] sm:$0xff] }
 0x380   : > { %2723 = vmatprep.subr.bf16.mxu1 %v3820_v24 }
 0x381   : > { %v1245_v57 = vsel %vm725_vm2, %v3350_v54, -inf }
 0x382   : > { %1246 = vmax.xlane.f32.xlu0 %v1245_v57  ;;  %v1027_v58 = vpop.f32.mrb[10].mxu0  ;;  %v3439_v57 = vld [vmem:[#allocation5 + $0x20] sm:$0xff] }
 0x383   : > { %v3355_v60 = vadd.f32 %v1027_v58, %v833_v56  ;;  %v2591_v61 = vpop.f32.mrb[11].mxu0 }
 0x385   : > { %v1248_v1 = vsel %vm725_vm2, %v3355_v60, -inf }
 0x386   : > { %v1112_v2 = vpop.f32.mrb[6].mxu1  ;;  %1249 = vmax.xlane.f32.xlu0 %v1248_v1  ;;  %v1207_v4 = vpop.f32.mrb[12].mxu0 }
 0x387   : > { %v3361_v5 = vadd.f32 %v1112_v2, %v834_v62  ;;  %v3363_v6 = vadd.f32 %v1207_v4, %v837_v0  ;;  %v2598_v7 = vpop.f32.mrb[7].mxu1  ;;  %v2611_v8 = vpop.f32.mrb[13].mxu0  ;;  %v3444_v62 = vld [vmem:[#allocation5 + $0x28] sm:$0xff]  ;;  %v3453_v4 = vld [vmem:[#allocation5 + $0x30] sm:$0xff] }
 0x388   : > { %v3455_v7 = vld [vmem:[#allocation5 + $0x48] sm:$0xff] }
 0x389   : > { %v1251_v11 = vsel %vm725_vm2, %v3361_v5, -inf  ;;  %v1260_v12 = vsel %vm725_vm2, %v3363_v6, -inf }
 0x38a   : > { %1252 = vmax.xlane.f32.xlu1 %v1251_v11  ;;  %v1117_v13 = vpop.f32.mrb[8].mxu1  ;;  %1261 = vmax.xlane.f32.xlu0 %v1260_v12  ;;  %v1212_v14 = vpop.f32.mrb[14].mxu0 }
 0x38b   : > { %v3371_v15 = vadd.f32 %v1117_v13, %v835_v9  ;;  %v3373_v16 = vadd.f32 %v1212_v14, %v838_v10  ;;  %v2601_v17 = vpop.f32.mrb[9].mxu1  ;;  %v2614_v18 = vpop.f32.mrb[15].mxu0  ;;  %v1584_v13 = vld [vmem:[%s3423_s11 + $0x10] sm:$0xff]  ;;  %v1585_v14 = vld [vmem:[%s3423_s11 + $0x18] sm:$0xff] }
 0x38c   : > { %v3469_v17 = vld [vmem:[#allocation5 + $0x38] sm:$0xff]  ;;  %v3471_v18 = vld [vmem:[#allocation5 + $0x50] sm:$0xff] }
 0x38d   : > { %v1254_v21 = vsel %vm725_vm2, %v3371_v15, -inf  ;;  %v1263_v22 = vsel %vm725_vm2, %v3373_v16, -inf }
 0x38e   : > { %1255 = vmax.xlane.f32.xlu1 %v1254_v21  ;;  %v1122_v23 = vpop.f32.mrb[10].mxu1  ;;  %1264 = vmax.xlane.f32.xlu0 %v1263_v22  ;;  %v1217_v25 = vpop.f32.mrb[16].mxu0 }
 0x38f   : > { %v3381_v26 = vadd.f32 %v1122_v23, %v836_v19  ;;  %v3383_v28 = vadd.f32 %v1217_v25, %v839_v20  ;;  %v2604_v29 = vpop.f32.mrb[11].mxu1  ;;  %v2617_v30 = vpop.f32.mrb[17].mxu0  ;;  %v2721_v19 = vpack.c.bf16 %v1585_v14, %v1584_v13 }
 0x390   : > { %v3489_v30 = vld [vmem:[#allocation5 + $0x40] sm:$0xff] }
 0x391   : > { %v1257_v31 = vsel %vm725_vm2, %v3381_v26, -inf  ;;  %v1266_v33 = vsel %vm725_vm2, %v3383_v28, -inf  ;;  %2722 = vmatpush3.bf16.msra.mxu0 %v2721_v19 }
 0x392   : > { %1258 = vmax.xlane.f32.xlu1 %v1257_v31  ;;  %1267 = vmax.xlane.f32.xlu0 %v1266_v33  ;;  %v3491_v31 = vld [vmem:[#allocation5 + $0x58] sm:$0xff] }
 0x393   : > { %2726 = vmatprep.subr.bf16.mxu0 %v3820_v24 }
 0x397   : > { %v1235_v35 = vpop.xlane.xlu1 %1234 }
 0x398   : > { %v3392_v36 = vmax.f32 %v3389_v34, %v1235_v35 }
 0x39a   : > { %v1281_v38 = vsub.f32 %v3389_v34, %v3392_v36  ;;  %1970 = vst.msk [vmem:[#allocation5] sm:$0xff] %vm771_vm4, %v3392_v36 }
 0x39c   : > { %v1238_v40 = vpop.xlane.xlu0 %1237 }
 0x39d   : > { %v3401_v41 = vmax.f32 %v3398_v39, %v1238_v40 }
 0x39f   : > { %v1282_v44 = vsub.f32 %v3398_v39, %v3401_v41  ;;  %1971 = vst.msk [vmem:[#allocation5 + $0x8] sm:$0xff] %vm771_vm4, %v3401_v41 }
 0x3a0   : > { %v1241_v45 = vpop.xlane.xlu1 %1240 }
 0x3a1   : > { %v3410_v46 = vmax.f32 %v3403_v43, %v1241_v45 }
 0x3a3   : > { %1972 = vst.msk [vmem:[#allocation5 + $0x10] sm:$0xff] %vm771_vm4, %v3410_v46  ;;  %1319 = vperm.xlu1 %2814, %v3392_v36   ;;  %v3828_v34 = vsub.f32 %v3403_v43, %v3410_v46 }
 0x3a5   : > { %v1297_v36 = vmul.f32 1.442695, %v3828_v34 }
 0x3a7   : > { %1324 = vperm.xlu1 %2814, %v3401_v41   ;;  %v1423_v41 = vld [vmem:[#allocation6 + $0x50] sm:$0xff] }
 0x3ab   : > { %1329 = vperm.xlu1 %2814, %v3410_v46  }
 0x40a   : > { %v1244_v53 = vpop.xlane.xlu0 %1243 }
 0x40b   : > { %v3432_v55 = vmax.f32 %v3429_v52, %v1244_v53 }
 0x40d   : > { %v1284_v56 = vsub.f32 %v3429_v52, %v3432_v55  ;;  %1973 = vst.msk [vmem:[#allocation5 + $0x18] sm:$0xff] %vm771_vm4, %v3432_v55  ;;  %1334 = vperm.xlu0 %2815, %v3432_v55  }
 0x40f   : > { %v1247_v58 = vpop.xlane.xlu0 %1246 }
 0x410   : > { %v3442_v61 = vmax.f32 %v3439_v57, %v1247_v58 }
 0x412   : > { %v1285_v0 = vsub.f32 %v3439_v57, %v3442_v61  ;;  %1974 = vst.msk [vmem:[#allocation5 + $0x20] sm:$0xff] %vm771_vm4, %v3442_v61 }
 0x413   : > { %v1250_v1 = vpop.xlane.xlu0 %1249 }
 0x414   : > { %v3451_v2 = vmax.f32 %v3444_v62, %v1250_v1 }
 0x416   : > { %v1286_v8 = vsub.f32 %v3444_v62, %v3451_v2  ;;  %1975 = vst.msk [vmem:[#allocation5 + $0x28] sm:$0xff] %vm771_vm4, %v3451_v2 }
 0x417   : > { %v1253_v9 = vpop.xlane.xlu1 %1252  ;;  %v1262_v10 = vpop.xlane.xlu0 %1261 }
 0x418   : > { %v3462_v11 = vmax.f32 %v3453_v4, %v1253_v9  ;;  %v3465_v12 = vmax.f32 %v3455_v7, %v1262_v10  ;;  %v1303_v52 = vmul.f32 1.442695, %v1286_v8 }
 0x41a   : > { %v1287_v20 = vsub.f32 %v3453_v4, %v3462_v11  ;;  %1976 = vst.msk [vmem:[#allocation5 + $0x30] sm:$0xff] %vm771_vm4, %v3462_v11  ;;  %v1290_v21 = vsub.f32 %v3455_v7, %v3465_v12  ;;  %1979 = vst.msk [vmem:[#allocation5 + $0x48] sm:$0xff] %vm771_vm4, %v3465_v12  ;;  %1349 = vperm.xlu1 %2814, %v3462_v11   ;;  %v1301_v4 = vmul.f32 1.442695, %v1285_v0 }
 0x41b   : > { %v1256_v22 = vpop.xlane.xlu1 %1255  ;;  %v1265_v23 = vpop.xlane.xlu0 %1264 }
 0x41c   : > { %v3483_v25 = vmax.f32 %v3469_v17, %v1256_v22  ;;  %v3486_v29 = vmax.f32 %v3471_v18, %v1265_v23  ;;  %v1586_v23 = vld [vmem:[%s3423_s11 + $0x20] sm:$0xff] }
 0x41e   : > { %v1288_v33 = vsub.f32 %v3469_v17, %v3483_v25  ;;  %1977 = vst.msk [vmem:[#allocation5 + $0x38] sm:$0xff] %vm771_vm4, %v3483_v25  ;;  %v1291_v35 = vsub.f32 %v3471_v18, %v3486_v29  ;;  %1980 = vst.msk [vmem:[#allocation5 + $0x50] sm:$0xff] %vm771_vm4, %v3486_v29  ;;  %1339 = vperm.xlu1 %2814, %v3442_v61  }
 0x41f   : > { %v1259_v40 = vpop.xlane.xlu1 %1258  ;;  %v1268_v45 = vpop.xlane.xlu0 %1267 }
 0x420   : > { %v3503_v48 = vmax.f32 %v3489_v30, %v1259_v40  ;;  %v3506_v50 = vmax.f32 %v3491_v31, %v1268_v45  ;;  %v1587_v40 = vld [vmem:[%s3423_s11 + $0x28] sm:$0xff]  ;;  %v1313_v55 = vmul.f32 1.442695, %v1291_v35 }
 0x422   : > { %v1289_v51 = vsub.f32 %v3489_v30, %v3503_v48  ;;  %1978 = vst.msk [vmem:[#allocation5 + $0x40] sm:$0xff] %vm771_vm4, %v3503_v48  ;;  %v1292_v53 = vsub.f32 %v3491_v31, %v3506_v50  ;;  %1981 = vst.msk [vmem:[#allocation5 + $0x58] sm:$0xff] %vm771_vm4, %v3506_v50  ;;  %1359 = vperm.xlu0 %2815, %v3503_v48   ;;  %1354 = vperm.xlu1 %2814, %v3483_v25   ;;  %v1416_v31 = vld [vmem:[#allocation6 + $0x18] sm:$0xff] }
 0x423   : > { %v1320_v58 = vpop.permute.xlu1 %1319 }
 0x424   : > { %v1377_v1 = vsub.f32 %v3294_v32, %v1320_v58  ;;  %v2724_v32 = vpack.c.bf16 %v1587_v40, %v1586_v23  ;;  %v1315_v57 = vmul.f32 1.442695, %v1292_v53  ;;  %v1309_v61 = vmul.f32 1.442695, %v1289_v51 }
 0x426   : > { %v1389_v9 = vmul.f32 1.442695, %v1377_v1  ;;  %1344 = vperm.xlu1 %2814, %v3451_v2  }
 0x427   : > { %v1325_v10 = vpop.permute.xlu1 %1324 }
 0x428   : > { %2822 = vpow2.f32 %v1389_v9  ;;  %v1378_v13 = vsub.f32 %v3299_v37, %v1325_v10 }
 0x42a   : > { %v1391_v14 = vmul.f32 1.442695, %v1378_v13  ;;  %1364 = vperm.xlu1 %2814, %v3465_v12   ;;  %v1588_v13 = vld [vmem:[%s3423_s11 + $0x30] sm:$0xff] }
 0x42b   : > { %v1330_v19 = vpop.permute.xlu1 %1329 }
 0x42c   : > { %2824 = vpow2.f32 %v1391_v14  ;;  %v1379_v22 = vsub.f32 %v3304_v42, %v1330_v19  ;;  %v1589_v14 = vld [vmem:[%s3423_s11 + $0x38] sm:$0xff]  ;;  %s2744_s11 = smul.u32 384, %s2976_s16 }
 0x42d   : > { %v2727_v23 = vpack.c.bf16 %v1589_v14, %v1588_v13 }
 0x42e   : > { %v1393_v45 = vmul.f32 1.442695, %v1379_v22  ;;  %1369 = vperm.xlu1 %2814, %v3486_v29  }
 0x430   : > { %2826 = vpow2.f32 %v1393_v45 }
 0x432   : > { %v3526_v58 = vpop.eup %2822  ;;  %1374 = vperm.xlu1 %2814, %v3506_v50   ;;  %v1419_v50 = vld [vmem:[#allocation6 + $0x30] sm:$0xff] }
 0x433   : > { %2623 = vmatmul.mubr.msk.f32.vlgmr.msra.gmra.mrb[12].mxu1 %vm725_vm2, %v3526_v58 }
 0x434   : > { %2625 = vmatprep.mubr.msk.f32.mxu1 %vm2987_vm1, %v2988_v27  ;;  %2725 = vmatpush3.bf16.msra.mxu1 %v2724_v32 }
 0x435   : > { %2729 = vmatprep.subr.bf16.mxu1 %v3820_v24 }
 0x436   : > { %v3534_v37 = vpop.eup %2824 }
 0x437   : > { %2626 = vmatmul.mubr.msk.f32.gmra.mrb[14].mxu1 %vm725_vm2, %v3534_v37 }
 0x438   : > { %2628 = vmatprep.mubr.msk.f32.mxu1 %vm2987_vm1, %v2988_v27 }
 0x43a   : > { %v3540_v42 = vpop.eup %2826 }
 0x43b   : > { %2629 = vmatmul.mubr.msk.f32.gmra.mrb[16].mxu1 %vm725_vm2, %v3540_v42 }
 0x43c   : > { %2648 = vmatprep.mubr.msk.f32.mxu1 %vm2987_vm1, %v2988_v27 }
 0x48c   : > { %v1335_v1 = vpop.permute.xlu0 %1334 }
 0x48d   : > { %v1380_v9 = vsub.f32 %v3345_v49, %v1335_v1 }
 0x48f   : > { %v1395_v10 = vmul.f32 1.442695, %v1380_v9 }
 0x491   : > { %2828 = vpow2.f32 %v1395_v10 }
 0x499   : > { %v1350_v19 = vpop.permute.xlu1 %1349 }
 0x49a   : > { %v1383_v22 = vsub.f32 %v3361_v5, %v1350_v19 }
 0x49b   : > { %v2829_v40 = vpop.eup %2828 }
 0x49c   : > { %v1401_v45 = vmul.f32 1.442695, %v1383_v22  ;;  %2636 = vmatmul.mubr.msk.f32.vlgmr.msra.gmra.mrb[18].mxu0 %vm725_vm2, %v2829_v40  ;;  %v1446_v32 = vsel %vm725_vm2, %v2829_v40, 0.0 }
 0x49d   : > { %v1340_v24 = vpop.permute.xlu1 %1339  ;;  %1447 = vadd.xlane.f32.xlu0 %v1446_v32  ;;  %2638 = vmatprep.mubr.msk.f32.mxu0 %vm2987_vm1, %v2988_v27 }
 0x49e   : > { %2830 = vpow2.f32 %v1401_v45  ;;  %v1381_v49 = vsub.f32 %v3350_v54, %v1340_v24  ;;  %2728 = vmatpush3.bf16.msra.mxu0 %v2727_v23 }
 0x4a0   : > { %v1397_v1 = vmul.f32 1.442695, %v1381_v49 }
 0x4a1   : > { %v1355_v9 = vpop.permute.xlu1 %1354  ;;  %v1360_v10 = vpop.permute.xlu0 %1359 }
 0x4a2   : > { %2832 = vpow2.f32 %v1397_v1  ;;  %v1384_v5 = vsub.f32 %v3371_v15, %v1355_v9  ;;  %v1385_v13 = vsub.f32 %v3381_v26, %v1360_v10 }
 0x4a4   : > { %v1403_v14 = vmul.f32 1.442695, %v1384_v5  ;;  %v1405_v19 = vmul.f32 1.442695, %v1385_v13 }
 0x4a5   : > { %v1345_v22 = vpop.permute.xlu1 %1344 }
 0x4a6   : > { %2834 = vpow2.f32 %v1403_v14  ;;  %v1382_v40 = vsub.f32 %v3355_v60, %v1345_v22 }
 0x4a7   : > { %2836 = vpow2.f32 %v1405_v19 }
 0x4a8   : > { %v2831_v32 = vpop.eup %2830  ;;  %v1399_v47 = vmul.f32 1.442695, %v1382_v40 }
 0x4a9   : > { %2649 = vmatmul.mubr.msk.f32.vlgmr.msra.gmra.mrb[18].mxu1 %vm725_vm2, %v2831_v32  ;;  %v1365_v24 = vpop.permute.xlu1 %1364  ;;  %v1455_v54 = vsel %vm725_vm2, %v2831_v32, 0.0 }
 0x4aa   : > { %2838 = vpow2.f32 %v1399_v47  ;;  %v1386_v23 = vsub.f32 %v3363_v6, %v1365_v24  ;;  %1456 = vadd.xlane.f32.xlu1 %v1455_v54  ;;  %2651 = vmatprep.mubr.msk.f32.mxu1 %vm2987_vm1, %v2988_v27 }
 0x4ac   : > { %v2833_v15 = vpop.eup %2832  ;;  %v1407_v26 = vmul.f32 1.442695, %v1386_v23  ;;  %v1440_v23 = vsel %vm725_vm2, %v3534_v37, 0.0  ;;  %v1299_v37 = vmul.f32 1.442695, %v1284_v56 }
 0x4ad   : > { %v1370_v45 = vpop.permute.xlu1 %1369  ;;  %2639 = vmatmul.mubr.msk.f32.gmra.mrb[20].mxu0 %vm725_vm2, %v2833_v15  ;;  %v1449_v60 = vsel %vm725_vm2, %v2833_v15, 0.0  ;;  %v1437_v15 = vsel %vm725_vm2, %v3526_v58, 0.0  ;;  %v1307_v58 = vmul.f32 1.442695, %v1288_v33 }
 0x4ae   : > { %2840 = vpow2.f32 %v1407_v26  ;;  %v1387_v49 = vsub.f32 %v3373_v16, %v1370_v45  ;;  %1450 = vadd.xlane.f32.xlu0 %v1449_v60  ;;  %2641 = vmatprep.mubr.msk.f32.mxu0 %vm2987_vm1, %v2988_v27  ;;  %v1443_v26 = vsel %vm725_vm2, %v3540_v42, 0.0  ;;  %v1305_v45 = vmul.f32 1.442695, %v1287_v20  ;;  %v2446_v42 = vld [vmem:[%s3814_s5] ss:$0 sm:$0xff] }
 0x4af   : > { %v1311_v60 = vmul.f32 1.442695, %v1290_v21 }
 0x4b0   : > { %v2835_v47 = vpop.eup %2834  ;;  %v1409_v6 = vmul.f32 1.442695, %v1387_v49 }
 0x4b1   : > { %2652 = vmatmul.mubr.msk.f32.gmra.mrb[20].mxu1 %vm725_vm2, %v2835_v47  ;;  %v1375_v1 = vpop.permute.xlu1 %1374  ;;  %v1458_v9 = vsel %vm725_vm2, %v2835_v47, 0.0  ;;  %v2837_v5 = vpop.eup %2836  ;;  %v1417_v47 = vld [vmem:[#allocation6 + $0x20] sm:$0xff] }
 0x4b2   : > { %2842 = vpow2.f32 %v1409_v6  ;;  %v1388_v10 = vsub.f32 %v3383_v28, %v1375_v1  ;;  %1459 = vadd.xlane.f32.xlu1 %v1458_v9  ;;  %2654 = vmatprep.mubr.msk.f32.mxu1 %vm2987_vm1, %v2988_v27  ;;  %v1461_v54 = vsel %vm725_vm2, %v2837_v5, 0.0 }
 0x4b4   : > { %v2839_v16 = vpop.eup %2838  ;;  %v1411_v13 = vmul.f32 1.442695, %v1388_v10  ;;  %v1420_v10 = vld [vmem:[#allocation6 + $0x38] sm:$0xff] }
 0x4b5   : > { %2642 = vmatmul.mubr.msk.f32.gmra.mrb[22].mxu0 %vm725_vm2, %v2839_v16  ;;  %2655 = vmatmul.mubr.msk.f32.gmra.mrb[22].mxu1 %vm725_vm2, %v2837_v5  ;;  %v1452_v14 = vsel %vm725_vm2, %v2839_v16, 0.0 }
 0x4b6   : > { %2844 = vpow2.f32 %v1411_v13  ;;  %1453 = vadd.xlane.f32.xlu1 %v1452_v14  ;;  %2661 = vmatprep.mubr.msk.f32.mxu0 %vm2987_vm1, %v2988_v27 }
 0x4b7   : > { %2686 = vmatprep.mubr.msk.f32.mxu1 %vm2987_vm1, %v2988_v27  ;;  %2846 = vpow2.f32 %v1305_v45 }
 0x4b8   : > { %v2841_v28 = vpop.eup %2840  ;;  %2848 = vpow2.f32 %v1311_v60 }
 0x4b9   : > { %2662 = vmatmul.mubr.msk.f32.vlgmr.msra.gmra.mrb[24].mxu0 %vm725_vm2, %v2841_v28  ;;  %v1464_v19 = vsel %vm725_vm2, %v2841_v28, 0.0  ;;  %2850 = vpow2.f32 %v1299_v37  ;;  %v1418_v28 = vld [vmem:[#allocation6 + $0x28] sm:$0xff] }
 0x4ba   : > { %1465 = vadd.xlane.f32.xlu0 %v1464_v19  ;;  %2664 = vmatprep.mubr.msk.f32.mxu0 %vm2987_vm1, %v2988_v27  ;;  %2852 = vpow2.f32 %v1307_v58  ;;  %v1293_v19 = vmul.f32 1.442695, %v1281_v38  ;;  %v1424_v58 = vld [vmem:[#allocation6 + $0x58] sm:$0xff] }
 0x4bb   : > { %2854 = vpow2.f32 %v1301_v4 }
 0x4bc   : > { %v2843_v22 = vpop.eup %2842  ;;  %2856 = vpow2.f32 %v1303_v52 }
 0x4bd   : > { %2665 = vmatmul.mubr.msk.f32.gmra.mrb[26].mxu0 %vm725_vm2, %v2843_v22  ;;  %v1467_v40 = vsel %vm725_vm2, %v2843_v22, 0.0  ;;  %2858 = vpow2.f32 %v1313_v55 }
 0x4be   : > { %1468 = vadd.xlane.f32.xlu0 %v1467_v40  ;;  %2667 = vmatprep.mubr.msk.f32.mxu0 %vm2987_vm1, %v2988_v27  ;;  %2860 = vpow2.f32 %v1315_v57  ;;  %v1295_v40 = vmul.f32 1.442695, %v1282_v44 }
 0x4bf   : > { %2862 = vpow2.f32 %v1309_v61 }
 0x4c0   : > { %v2845_v32 = vpop.eup %2844 }
 0x4c1   : > { %2668 = vmatmul.mubr.msk.f32.gmra.mrb[28].mxu0 %vm725_vm2, %v2845_v32  ;;  %v1470_v24 = vsel %vm725_vm2, %v2845_v32, 0.0  ;;  %v2847_v56 = vpop.eup %2846 }
 0x4c2   : > { %1471 = vadd.xlane.f32.xlu1 %v1470_v24  ;;  %1462 = vadd.xlane.f32.xlu0 %v1461_v54  ;;  %v2849_v62 = vpop.eup %2848  ;;  %v1431_v53 = vmul.f32 %v2847_v56, %v1419_v50 }
 0x4c3   : > { %v2851_v0 = vpop.eup %2850 }
 0x4c4   : > { %v2853_v2 = vpop.eup %2852  ;;  %v1428_v33 = vmul.f32 %v2851_v0, %v1416_v31 }
 0x4c5   : > { %v2855_v7 = vpop.eup %2854  ;;  %v1432_v16 = vmul.f32 %v2853_v2, %v1420_v10 }
 0x4c6   : > { %1441 = vadd.xlane.f32.xlu1 %v1440_v23  ;;  %1438 = vadd.xlane.f32.xlu0 %v1437_v15  ;;  %v2857_v8 = vpop.eup %2856  ;;  %v1429_v1 = vmul.f32 %v2855_v7, %v1417_v47  ;;  %v1422_v23 = vld [vmem:[#allocation6 + $0x48] sm:$0xff] }
 0x4c7   : > { %v2859_v11 = vpop.eup %2858  ;;  %v1430_v24 = vmul.f32 %v2857_v8, %v1418_v28 }
 0x4c8   : > { %v3628_v12 = vpop.eup %2860  ;;  %v1435_v60 = vmul.f32 %v2859_v11, %v1423_v41 }
 0x4c9   : > { %v3630_v17 = vpop.eup %2862  ;;  %v1436_v52 = vmul.f32 %v3628_v12, %v1424_v58 }
 0x4ca   : > { %1444 = vadd.xlane.f32.xlu0 %v1443_v26  ;;  %v1434_v26 = vmul.f32 %v2849_v62, %v1422_v23 }
 0x4d7   : > { %685 = vrot.lane.b32.xlu1 %v2446_v42, %s2994_s12  ;;  %v1421_v42 = vld [vmem:[#allocation6 + $0x40] sm:$0xff] }
 0x4d8   : > { %v1433_v55 = vmul.f32 %v3630_v17, %v1421_v42 }
 0x4db   : > { %1542 = vperm.xlu1 %2814, %v2847_v56  }
 0x4df   : > { %1557 = vperm.xlu1 %2814, %v2849_v62   ;;  %v1414_v62 = vld [vmem:[#allocation6 + $0x8] sm:$0xff] }
 0x4e0   : > { %1527 = vperm.xlu0 %2815, %v2851_v0   ;;  %v1413_v0 = vld [vmem:[#allocation6] sm:$0xff] }
 0x4e3   : > { %1547 = vperm.xlu1 %2814, %v2853_v2  }
 0x4e4   : > { %1532 = vperm.xlu0 %2815, %v2855_v7  }
 0x4e7   : > { %1537 = vperm.xlu1 %2814, %v2857_v8  }
 0x4e8   : > { %1562 = vperm.xlu0 %2815, %v2859_v11  }
 0x4eb   : > { %1567 = vperm.xlu1 %2814, %v3628_v12  }
 0x4ec   : > { %1552 = vperm.xlu0 %2815, %v3630_v17  }
 0x506   : > { %v3634_v18 = vpop.f32.mrb[12].mxu1 }
 0x507   : > { %v2624_v20 = vpop.f32.mrb[13].mxu1 }
 0x50a   : > { %v3636_v21 = vpop.f32.mrb[14].mxu1 }
 0x50b   : > { %v2627_v25 = vpop.f32.mrb[15].mxu1 }
 0x50e   : > { %v3638_v29 = vpop.f32.mrb[16].mxu1 }
 0x50f   : > { %v2630_v30 = vpop.f32.mrb[17].mxu1 }
 0x52a   : > { %v1448_v35 = vpop.xlane.xlu0 %1447 }
 0x52b   : > { %v1476_v48 = vadd.f32 %v1448_v35, %v1428_v33  ;;  %v1415_v33 = vld [vmem:[#allocation6 + $0x10] sm:$0xff] }
 0x52d   : > { %1489 = vst.msk [vmem:[#allocation6 + $0x18] sm:$0xff] %vm771_vm4, %v1476_v48 }
 0x534   : > { %v1988_v51 = vld [vmem:[#allocation6 + $0x18] sm:$0xff] }
 0x535   : > { %2864 = vrcp.f32 %v1988_v51 }
 0x537   : > { %v1457_v49 = vpop.xlane.xlu1 %1456 }
 0x538   : > { %v1479_v6 = vadd.f32 %v1457_v49, %v1431_v53 }
 0x53a   : > { %1492 = vst.msk [vmem:[#allocation6 + $0x30] sm:$0xff] %vm771_vm4, %v1479_v6 }
 0x53b   : > { %v1451_v9 = vpop.xlane.xlu0 %1450 }
 0x53c   : > { %v1477_v5 = vadd.f32 %v1451_v9, %v1429_v1 }
 0x53e   : > { %1490 = vst.msk [vmem:[#allocation6 + $0x20] sm:$0xff] %vm771_vm4, %v1477_v5 }
 0x53f   : > { %v2865_v13 = vpop.eup %2864  ;;  %v1460_v14 = vpop.xlane.xlu1 %1459 }
 0x540   : > { %v1480_v22 = vadd.f32 %v1460_v14, %v1432_v16  ;;  %2048 = vperm.xlu0 %2815, %v2865_v13  }
 0x541   : > { %v1991_v32 = vld [vmem:[#allocation6 + $0x30] sm:$0xff] }
 0x542   : > { %1493 = vst.msk [vmem:[#allocation6 + $0x38] sm:$0xff] %vm771_vm4, %v1480_v22  ;;  %2866 = vrcp.f32 %v1991_v32 }
 0x543   : > { %v1454_v54 = vpop.xlane.xlu1 %1453  ;;  %2868 = vpow2.f32 %v1293_v19 }
 0x544   : > { %v1478_v15 = vadd.f32 %v1454_v54, %v1430_v24  ;;  %2870 = vpow2.f32 %v1295_v40 }
 0x545   : > { %v1989_v38 = vld [vmem:[#allocation6 + $0x20] sm:$0xff] }
 0x546   : > { %1491 = vst.msk [vmem:[#allocation6 + $0x28] sm:$0xff] %vm771_vm4, %v1478_v15  ;;  %2872 = vrcp.f32 %v1989_v38 }
 0x547   : > { %v1466_v39 = vpop.xlane.xlu0 %1465  ;;  %2874 = vpow2.f32 %v1297_v36 }
 0x548   : > { %v1482_v44 = vadd.f32 %v1466_v39, %v1434_v26  ;;  %v1501_v26 = vld [vmem:[#allocation7 + $0x18] sm:$0xff] }
 0x549   : > { %v1992_v45 = vld [vmem:[#allocation6 + $0x38] sm:$0xff] }
 0x54a   : > { %1495 = vst.msk [vmem:[#allocation6 + $0x48] sm:$0xff] %vm771_vm4, %v1482_v44  ;;  %2876 = vrcp.f32 %v1992_v45 }
 0x54b   : > { %v1469_v37 = vpop.xlane.xlu0 %1468 }
 0x54c   : > { %v2867_v4 = vpop.eup %2866  ;;  %v1483_v43 = vadd.f32 %v1469_v37, %v1435_v60 }
 0x54d   : > { %2070 = vperm.xlu1 %2814, %v2867_v4   ;;  %v3655_v46 = vpop.eup %2868  ;;  %v1990_v17 = vld [vmem:[#allocation6 + $0x28] sm:$0xff] }
 0x54e   : > { %1496 = vst.msk [vmem:[#allocation6 + $0x50] sm:$0xff] %vm771_vm4, %v1483_v43  ;;  %v3660_v56 = vpop.eup %2870  ;;  %v1425_v12 = vmul.f32 %v3655_v46, %v1413_v0 }
 0x54f   : > { %v1472_v57 = vpop.xlane.xlu1 %1471  ;;  %v1463_v61 = vpop.xlane.xlu0 %1462  ;;  %v1426_v20 = vmul.f32 %v3660_v56, %v1414_v62  ;;  %v1502_v62 = vld [vmem:[#allocation7 + $0x20] sm:$0xff] }
 0x550   : > { %v2873_v2 = vpop.eup %2872  ;;  %v1484_v7 = vadd.f32 %v1472_v57, %v1436_v52  ;;  %v1481_v8 = vadd.f32 %v1463_v61, %v1433_v55 }
 0x551   : > { %2053 = vperm.xlu1 %2814, %v2873_v2   ;;  %v1994_v11 = vld [vmem:[#allocation6 + $0x48] sm:$0xff]  ;;  %v3666_v25 = vpop.eup %2874 }
 0x552   : > { %1497 = vst.msk [vmem:[#allocation6 + $0x58] sm:$0xff] %vm771_vm4, %v1484_v7  ;;  %1494 = vst.msk [vmem:[#allocation6 + $0x40] sm:$0xff] %vm771_vm4, %v1481_v8  ;;  %2878 = vrcp.f32 %v1994_v11  ;;  %v1427_v53 = vmul.f32 %v3666_v25, %v1415_v33 }
 0x553   : > { %v1442_v30 = vpop.xlane.xlu1 %1441  ;;  %v1439_v31 = vpop.xlane.xlu0 %1438  ;;  %2880 = vrcp.f32 %v1990_v17 }
 0x554   : > { %v2877_v35 = vpop.eup %2876  ;;  %v1474_v48 = vadd.f32 %v1442_v30, %v1426_v20  ;;  %v1473_v50 = vadd.f32 %v1439_v31, %v1425_v12  ;;  %v1505_v12 = vld [vmem:[#allocation7 + $0x38] sm:$0xff] }
 0x555   : > { %2075 = vperm.xlu0 %2815, %v2877_v35   ;;  %v1995_v51 = vld [vmem:[#allocation6 + $0x50] sm:$0xff]  ;;  %v1503_v35 = vld [vmem:[#allocation7 + $0x28] sm:$0xff] }
 0x556   : > { %1487 = vst.msk [vmem:[#allocation6 + $0x8] sm:$0xff] %vm771_vm4, %v1474_v48  ;;  %1486 = vst.msk [vmem:[#allocation6] sm:$0xff] %vm771_vm4, %v1473_v50  ;;  %2882 = vrcp.f32 %v1995_v51  ;;  %v1506_v48 = vld [vmem:[#allocation7 + $0x40] sm:$0xff] }
 0x557   : > { %v686_v49 = vpop.permute.xlu1 %685  ;;  %v1445_v47 = vpop.xlane.xlu0 %1444 }
 0x558   : > { %v688_v6 = vadd.f32 %v686_v49, %v3211_v59  ;;  %v689_v1 = vadd.f32 %v686_v49, %v3218_v63  ;;  %v690_v9 = vadd.f32 %v686_v49, %v3224_v3  ;;  %v1475_v10 = vadd.f32 %v1445_v47, %v1427_v53 }
 0x559   : > { %v1996_v5 = vld [vmem:[#allocation6 + $0x58] sm:$0xff]  ;;  %v1993_v16 = vld [vmem:[#allocation6 + $0x40] sm:$0xff] }
 0x55a   : > { %v2447_v13 = vmul.f32 -1.442695, %v688_v6  ;;  %v2448_v14 = vmul.f32 -1.442695, %v689_v1  ;;  %v2449_v28 = vmul.f32 -1.442695, %v690_v9  ;;  %2884 = vrcp.f32 %v1996_v5 }
 0x55b   : > { %1488 = vst.msk [vmem:[#allocation6 + $0x10] sm:$0xff] %vm771_vm4, %v1475_v10  ;;  %2886 = vrcp.f32 %v1993_v16  ;;  %v1543_v42 = vpop.permute.xlu1 %1542  ;;  %v1507_v1 = vld [vmem:[#allocation7 + $0x48] sm:$0xff] }
 0x55c   : > { %v2879_v19 = vpop.eup %2878  ;;  %2888 = vpow2.f32 %v2447_v13 }
 0x55d   : > { %2890 = vpow2.f32 %v2448_v14  ;;  %2092 = vperm.xlu0 %2815, %v2879_v19   ;;  %v2881_v59 = vpop.eup %2880  ;;  %v1985_v22 = vld [vmem:[#allocation6] sm:$0xff]  ;;  %v1986_v3 = vld [vmem:[#allocation6 + $0x8] sm:$0xff]  ;;  %v1508_v19 = vld [vmem:[#allocation7 + $0x50] sm:$0xff] }
 0x55e   : > { %2892 = vpow2.f32 %v2449_v28 }
 0x55f   : > { %2894 = vrcp.f32 %v1985_v22  ;;  %v1528_v39 = vpop.permute.xlu0 %1527  ;;  %v1558_v52 = vpop.permute.xlu1 %1557 }
 0x560   : > { %v2883_v63 = vpop.eup %2882  ;;  %2896 = vrcp.f32 %v1986_v3  ;;  %v1573_v44 = vmul.f32 %v1528_v39, %v1501_v26  ;;  %v1579_v28 = vmul.f32 %v1558_v52, %v1507_v1 }
 0x561   : > { %2058 = vperm.xlu0 %2815, %v2881_v59   ;;  %2097 = vperm.xlu1 %2814, %v2883_v63  }
 0x562   : > { %v1987_v15 = vld [vmem:[#allocation6 + $0x10] sm:$0xff] }
 0x563   : > { %v1533_v57 = vpop.permute.xlu0 %1532  ;;  %v1548_v2 = vpop.permute.xlu1 %1547 }
 0x564   : > { %v2885_v40 = vpop.eup %2884  ;;  %v1574_v20 = vmul.f32 %v1533_v57, %v1502_v62  ;;  %v1577_v31 = vmul.f32 %v1548_v2, %v1505_v12  ;;  %v2167_v2 = vld [vmem:[%s3815_s6 + $0x30] sm:$0xff] }
 0x565   : > { %v2887_v32 = vpop.eup %2886  ;;  %2102 = vperm.xlu0 %2815, %v2885_v40   ;;  %v1509_v40 = vld [vmem:[#allocation7 + $0x58] sm:$0xff] }
 0x566   : > { %v2889_v24 = vpop.eup %2888  ;;  %2080 = vperm.xlu1 %2814, %v2887_v32  }
 0x567   : > { %v2891_v54 = vpop.eup %2890  ;;  %v700_v23 = vadd.f32 1.0, %v2889_v24  ;;  %v1563_v11 = vpop.permute.xlu0 %1562 }
 0x568   : > { %v2893_v34 = vpop.eup %2892  ;;  %v701_v36 = vadd.f32 1.0, %v2891_v54  ;;  %v1538_v33 = vpop.permute.xlu1 %1537  ;;  %v1580_v3 = vmul.f32 %v1563_v11, %v1508_v19 }
 0x569   : > { %2898 = vrcp.f32 %v700_v23  ;;  %1517 = vperm.xlu0 %2815, %v3660_v56   ;;  %v702_v38 = vadd.f32 1.0, %v2893_v34  ;;  %v2895_v41 = vpop.eup %2894  ;;  %v1504_v56 = vld [vmem:[#allocation7 + $0x30] sm:$0xff]  ;;  %v1575_v47 = vmul.f32 %v1538_v33, %v1503_v35 }
 0x56a   : > { %1512 = vperm.xlu1 %2814, %v3655_v46   ;;  %2900 = vrcp.f32 %v1987_v15  ;;  %v2897_v60 = vpop.eup %2896  ;;  %v1576_v61 = vmul.f32 %v1543_v42, %v1504_v56  ;;  %v2164_v42 = vld [vmem:[%s3815_s6 + $0x18] sm:$0xff] }
 0x56b   : > { %2902 = vrcp.f32 %v701_v36  ;;  %v1553_v50 = vpop.permute.xlu0 %1552 }
 0x56c   : > { %2904 = vrcp.f32 %v702_v38  ;;  %v1578_v6 = vmul.f32 %v1553_v50, %v1506_v48  ;;  %v1568_v32 = vpop.permute.xlu1 %1567 }
 0x56d   : > { %2026 = vperm.xlu0 %2815, %v2895_v41   ;;  %v1581_v15 = vmul.f32 %v1568_v32, %v1509_v40 }
 0x56e   : > { %1522 = vperm.xlu1 %2814, %v3666_v25  }
 0x56f   : > { %v1754_v45 = vpop.f32.mrb[18].mxu0 }
 0x570   : > { %v1949_v37 = vadd.f32 %v1754_v45, %v1573_v44  ;;  %v2637_v58 = vpop.f32.mrb[19].mxu0  ;;  %v2161_v44 = vld [vmem:[%s3815_s6] sm:$0xff]  ;;  %v2162_v45 = vld [vmem:[%s3815_s6 + $0x8] sm:$0xff] }
 0x571   : > { %2031 = vperm.xlu0 %2815, %v2897_v60   ;;  %v2730_v60 = vpack.c.bf16 %v2162_v45, %v2161_v44  ;;  %v2163_v58 = vld [vmem:[%s3815_s6 + $0x10] sm:$0xff] }
 0x572   : > { %1961 = vst.msk [vmem:[#allocation7 + $0x18] sm:$0xff] %vm725_vm2, %v1949_v37  ;;  %v3829_v37 = vmov 0.0|0.0  }
 0x573   : > { %v2899_v4 = vpop.eup %2898  ;;  %2731 = vmatpush3.bf16.msra.mxu1 %v2730_v60 }
 0x574   : > { %v2901_v43 = vpop.eup %2900  ;;  %712 = vrot.lane.b32.xlu1 %v2899_v4, %s2994_s12  ;;  %2732 = vmatprep.subr.bf16.mxu1 %v3829_v37  ;;  %v2733_v4 = vpack.c.bf16 %v2164_v42, %v2163_v58 }
 0x575   : > { %2036 = vperm.xlu0 %2815, %v2901_v43   ;;  %v2903_v46 = vpop.eup %2902  ;;  %v2165_v43 = vld [vmem:[%s3815_s6 + $0x20] sm:$0xff] }
 0x576   : > { %v2905_v55 = vpop.eup %2904 }
 0x577   : > { %2734 = vmatpush3.bf16.msra.mxu1 %v2733_v4 }
 0x578   : > { %714 = vrot.lane.b32.xlu1 %v2903_v46, %s2994_s12  ;;  %v2166_v46 = vld [vmem:[%s3815_s6 + $0x28] sm:$0xff]  ;;  %2735 = vmatprep.subr.bf16.mxu1 %v3829_v37 }
 0x579   : > { %716 = vrot.lane.b32.xlu0 %v2905_v55, %s2994_s12  ;;  %v2043_v26 = vld [vmem:[#allocation7 + $0x18] sm:$0xff]  ;;  %v2736_v56 = vpack.c.bf16 %v2166_v46, %v2165_v43  ;;  %s2997_s12 = smov 48  }
 0x57b   : > { %2737 = vmatpush3.bf16.msra.mxu1 %v2736_v56 }
 0x57c   : > { %v1843_v0 = vpop.f32.mrb[18].mxu1  ;;  %2738 = vmatprep.subr.bf16.mxu1 %v3829_v37 }
 0x57d   : > { %v1952_v7 = vadd.f32 %v1843_v0, %v1576_v61  ;;  %v2650_v8 = vpop.f32.mrb[19].mxu1 }
 0x57f   : > { %1964 = vst.msk [vmem:[#allocation7 + $0x30] sm:$0xff] %vm725_vm2, %v1952_v7  ;;  %v2168_v7 = vld [vmem:[%s3815_s6 + $0x38] sm:$0xff] }
 0x580   : > { %v1759_v17 = vpop.f32.mrb[20].mxu0  ;;  %v2739_v8 = vpack.c.bf16 %v2168_v7, %v2167_v2 }
 0x581   : > { %v1950_v25 = vadd.f32 %v1759_v17, %v1574_v20  ;;  %v2640_v30 = vpop.f32.mrb[21].mxu0 }
 0x582   : > { %2740 = vmatpush3.bf16.msra.mxu1 %v2739_v8 }
 0x583   : > { %1962 = vst.msk [vmem:[#allocation7 + $0x20] sm:$0xff] %vm725_vm2, %v1950_v25 }
 0x584   : > { %v1848_v51 = vpop.f32.mrb[20].mxu1 }
 0x585   : > { %v1953_v53 = vadd.f32 %v1848_v51, %v1577_v31  ;;  %v2653_v49 = vpop.f32.mrb[21].mxu1 }
 0x586   : > { %v2065_v52 = vld [vmem:[#allocation7 + $0x30] sm:$0xff] }
 0x587   : > { %1965 = vst.msk [vmem:[#allocation7 + $0x38] sm:$0xff] %vm725_vm2, %v1953_v53 }
 0x588   : > { %v1764_v9 = vpop.f32.mrb[22].mxu0  ;;  %v1853_v10 = vpop.f32.mrb[22].mxu1 }
 0x589   : > { %v1951_v5 = vadd.f32 %v1764_v9, %v1575_v47  ;;  %v1954_v16 = vadd.f32 %v1853_v10, %v1578_v6  ;;  %v2643_v13 = vpop.f32.mrb[23].mxu0  ;;  %v2656_v14 = vpop.f32.mrb[23].mxu1  ;;  %v1499_v10 = vld [vmem:[#allocation7 + $0x8] sm:$0xff] }
 0x58a   : > { %v2044_v62 = vld [vmem:[#allocation7 + $0x20] sm:$0xff] }
 0x58b   : > { %1963 = vst.msk [vmem:[#allocation7 + $0x28] sm:$0xff] %vm725_vm2, %v1951_v5  ;;  %1966 = vst.msk [vmem:[#allocation7 + $0x40] sm:$0xff] %vm725_vm2, %v1954_v16  ;;  %v1498_v5 = vld [vmem:[#allocation7] sm:$0xff] }
 0x58c   : > { %v1932_v59 = vpop.f32.mrb[24].mxu0 }
 0x58d   : > { %v1955_v22 = vadd.f32 %v1932_v59, %v1579_v28  ;;  %v2663_v63 = vpop.f32.mrb[25].mxu0  ;;  %v1500_v59 = vld [vmem:[#allocation7 + $0x10] sm:$0xff] }
 0x58e   : > { %v2066_v11 = vld [vmem:[#allocation7 + $0x38] sm:$0xff] }
 0x58f   : > { %1967 = vst.msk [vmem:[#allocation7 + $0x48] sm:$0xff] %vm725_vm2, %v1955_v22 }
 0x590   : > { %v1937_v24 = vpop.f32.mrb[26].mxu0 }
 0x591   : > { %v1956_v54 = vadd.f32 %v1937_v24, %v1580_v3  ;;  %v2666_v23 = vpop.f32.mrb[27].mxu0 }
 0x592   : > { %v2045_v35 = vld [vmem:[#allocation7 + $0x28] sm:$0xff]  ;;  %v2067_v6 = vld [vmem:[#allocation7 + $0x40] sm:$0xff] }
 0x593   : > { %1968 = vst.msk [vmem:[#allocation7 + $0x50] sm:$0xff] %vm725_vm2, %v1956_v54 }
 0x594   : > { %v1942_v34 = vpop.f32.mrb[28].mxu0 }
 0x595   : > { %v1957_v36 = vadd.f32 %v1942_v34, %v1581_v15  ;;  %v2669_v38 = vpop.f32.mrb[29].mxu0 }
 0x596   : > { %v2087_v17 = vld [vmem:[#allocation7 + $0x48] sm:$0xff] }
 0x597   : > { %1969 = vst.msk [vmem:[#allocation7 + $0x58] sm:$0xff] %vm725_vm2, %v1957_v36 }
 0x59a   : > { %v2088_v33 = vld [vmem:[#allocation7 + $0x50] sm:$0xff] }
 0x59e   : > { %v2089_v53 = vld [vmem:[#allocation7 + $0x58] sm:$0xff] }
 0x5bf   : > { %v2049_v39 = vpop.permute.xlu0 %2048 }
 0x5c0   : > { %v2061_v41 = vmul.f32 %v2049_v39, %v2043_v26 }
 0x5c2   : > { %2111 = vrot.lane.b32.xlu1 %v2061_v41, %s2995_s19 }
 0x5cc   : > { %v2071_v55 = vpop.permute.xlu1 %2070 }
 0x5cd   : > { %v2083_v57 = vmul.f32 %v2071_v55, %v2065_v52 }
 0x5cf   : > { %2123 = vrot.lane.b32.xlu0 %v2083_v57, %s2996_s29 }
 0x5d0   : > { %v2054_v61 = vpop.permute.xlu1 %2053 }
 0x5d1   : > { %v2062_v0 = vmul.f32 %v2054_v61, %v2044_v62 }
 0x5d3   : > { %2113 = vrot.lane.b32.xlu1 %v2062_v0, %s2995_s19 }
 0x5d4   : > { %v2076_v20 = vpop.permute.xlu0 %2075 }
 0x5d5   : > { %v2084_v12 = vmul.f32 %v2076_v20, %v2066_v11 }
 0x5d7   : > { %2125 = vrot.lane.b32.xlu0 %v2084_v12, %s2996_s29 }
 0x5dc   : > { %v2093_v25 = vpop.permute.xlu0 %2092 }
 0x5dd   : > { %v2105_v30 = vmul.f32 %v2093_v25, %v2087_v17  ;;  %v2482_v17 = vld [vmem:[%s3816_s7] ss:$0 sm:$0xff] }
 0x5df   : > { %2135 = vrot.lane.b32.xlu1 %v2105_v30, %s2997_s12 }
 0x5e0   : > { %v2098_v31 = vpop.permute.xlu1 %2097  ;;  %v2059_v48 = vpop.permute.xlu0 %2058 }
 0x5e1   : > { %v2106_v50 = vmul.f32 %v2098_v31, %v2088_v33  ;;  %v2063_v51 = vmul.f32 %v2059_v48, %v2045_v35  ;;  %v2266_v33 = vld [vmem:[#allocation3] sm:$0xff] }
 0x5e3   : > { %2137 = vrot.lane.b32.xlu1 %v2106_v50, %s2997_s12  ;;  %2115 = vrot.lane.b32.xlu0 %v2063_v51, %s2995_s19  ;;  %s468_s19 = sand.u32 1, %s2968_s14   ;;  %v2267_v51 = vld [vmem:[#allocation3 + $0x8] sm:$0xff] }
 0x5e4   : > { %v2103_v49 = vpop.permute.xlu0 %2102  ;;  %s2741_s20 = smul.u32 24, %s468_s19 }
 0x5e5   : > { %v2081_v47 = vpop.permute.xlu1 %2080  ;;  %v2107_v1 = vmul.f32 %v2103_v49, %v2089_v53 }
 0x5e6   : > { %v2085_v9 = vmul.f32 %v2081_v47, %v2067_v6 }
 0x5e7   : > { %2139 = vrot.lane.b32.xlu0 %v2107_v1, %s2997_s12  ;;  %v2268_v1 = vld [vmem:[#allocation3 + $0x10] sm:$0xff]  ;;  %s3760_s12 = scalar_lea.hbm %s3819_s10, %s2744_s11 }
 0x5e8   : > { %2127 = vrot.lane.b32.xlu1 %v2085_v9, %s2996_s29  ;;  %v1518_v16 = vpop.permute.xlu0 %1517  ;;  %s470_s29 = scalar_lea.vmem [#allocation8], %s2741_s20  ;;  %s3763_s20 = scalar_lea.sflag [#allocation9], %s468_s19 }
 0x5e9   : > { %v1513_v13 = vpop.permute.xlu1 %1512  ;;  %v1571_v14 = vmul.f32 %v1518_v16, %v1499_v10  ;;  %s2291_s30 = sshll.u32 %s470_s29, 4  ;;  %s3755_s30 = int_to_ptr.vmem [resolvable:$true] %s2291_s30 }
 0x5ea   : > { %v1570_v28 = vmul.f32 %v1513_v13, %v1498_v5  ;;  %s2906_s16 = scalar_lea.vmem %s3755_s30, 384  ;;  %p2913_p1 = scmp.lt.s32.totalorder %s3755_s30, %s2911_s28 }
 0x5eb   : > { %v1947_v19 = vadd.f32 %v3636_v21, %v1571_v14  ;;  %p2907_p12 = scmp.ne.s32.totalorder %s3755_s30, %s2906_s16  ;;  %p2914_p2 = scmp.lt.s32.totalorder %s2912_s0, %s2906_s16 }
 0x5ec   : > { %v1946_v22 = vadd.f32 %v3634_v18, %v1570_v28  ;;  %v2027_v63 = vpop.permute.xlu0 %2026 }
 0x5ed   : > { %1959 = vst.msk [vmem:[#allocation7 + $0x8] sm:$0xff] %vm725_vm2, %v1947_v19  ;;  %v1523_v3 = vpop.permute.xlu1 %1522  ;;  %p2908_p13 = pnand %p2907_p12, %p3096_p4  ;;  %p2915_p3 = por %p2914_p2, %p2913_p1 }
 0x5ee   : > { %1958 = vst.msk [vmem:[#allocation7] sm:$0xff] %vm725_vm2, %v1946_v22  ;;  %v1572_v40 = vmul.f32 %v1523_v3, %v1500_v59 }
 0x5ef   : > { %p2909_p0 = pneg %p2908_p13 }
 0x5f0   : > { %v1948_v32 = vadd.f32 %v3638_v29, %v1572_v40  ;;  %v2032_v24 = vpop.permute.xlu0 %2031 }
 0x5f1   : > { %v713_v54 = vpop.permute.xlu1 %712  ;;  %p2916_p5 = pnand %p2915_p3, %p2909_p0 }
 0x5f2   : > { %1960 = vst.msk [vmem:[#allocation7 + $0x10] sm:$0xff] %vm725_vm2, %v1948_v32 }
 0x5f3   : > { %722 = vst.msk [vmem:[#allocation4] sm:$0xff] %vm721_vm5, %v713_v54 }
 0x5f4   : > { %v2037_v21 = vpop.permute.xlu0 %2036  ;;  %v2022_v39 = vld [vmem:[#allocation7 + $0x8] sm:$0xff] }
 0x5f5   : > { %v715_v23 = vpop.permute.xlu1 %714  ;;  %v2021_v34 = vld [vmem:[#allocation7] sm:$0xff]  ;;  %v2040_v60 = vmul.f32 %v2032_v24, %v2022_v39 }
 0x5f6   : > { %723 = vst.msk [vmem:[#allocation4 + $0x8] sm:$0xff] %vm721_vm5, %v715_v23  ;;  %v2039_v26 = vmul.f32 %v2027_v63, %v2021_v34 }
 0x5f8   : > { %v717_v18 = vpop.permute.xlu0 %716 }
 0x5f9   : > { %724 = vst.msk [vmem:[#allocation4 + $0x10] sm:$0xff] %vm721_vm5, %v717_v18  ;;  %v2023_v43 = vld [vmem:[#allocation7 + $0x10] sm:$0xff] }
 0x5fa   : > { %v2155_v37 = vld [vmem:[#allocation4] sm:$0xff]  ;;  %v2041_v62 = vmul.f32 %v2037_v21, %v2023_v43 }
 0x5fd   : > { %v2156_v56 = vld [vmem:[#allocation4 + $0x8] sm:$0xff] }
 0x600   : > { %v2157_v11 = vld [vmem:[#allocation4 + $0x10] sm:$0xff] }
 0x634   : > { %v2112_v15 = vpop.permute.xlu1 %2111 }
 0x635   : > { %v2144_v29 = vsel %vm725_vm2, %v2039_v26, %v2112_v15 }
 0x641   : > { %v2124_v36 = vpop.permute.xlu0 %2123 }
 0x642   : > { %v2148_v41 = vsel %vm522_vm0, %v2144_v29, %v2124_v36 }
 0x645   : > { %v2114_v38 = vpop.permute.xlu1 %2113 }
 0x646   : > { %v2145_v4 = vsel %vm725_vm2, %v2040_v60, %v2114_v38 }
 0x649   : > { %v2126_v44 = vpop.permute.xlu0 %2125 }
 0x64a   : > { %v2149_v46 = vsel %vm522_vm0, %v2145_v4, %v2126_v44 }
 0x651   : > { %v2136_v45 = vpop.permute.xlu1 %2135 }
 0x652   : > { %v2152_v58 = vsel %vm2151_vm6, %v2148_v41, %v2136_v45 }
 0x653   : > { %v2158_v42 = vmul.f32 %v2155_v37, %v2152_v58 }
 0x655   : > { %v2138_v52 = vpop.permute.xlu1 %2137  ;;  %2687 = vmatmul.mubr.msk.f32.vlgmr.msra.gmra.mrb[24].mxu1 %vm721_vm5, %v2158_v42  ;;  %v2116_v55 = vpop.permute.xlu0 %2115 }
 0x656   : > { %v2153_v57 = vsel %vm2151_vm6, %v2149_v46, %v2138_v52  ;;  %2689 = vmatprep.mubr.msk.f32.mxu1 %vm2987_vm1, %v2988_v27  ;;  %v2146_v2 = vsel %vm725_vm2, %v2041_v62, %v2116_v55 }
 0x657   : > { %v2159_v61 = vmul.f32 %v2156_v56, %v2153_v57 }
 0x659   : > { %2690 = vmatmul.mubr.msk.f32.gmra.mrb[26].mxu1 %vm721_vm5, %v2159_v61  ;;  %v2140_v0 = vpop.permute.xlu0 %2139 }
 0x65a   : > { %v2128_v7 = vpop.permute.xlu1 %2127  ;;  %2692 = vmatprep.mubr.msk.f32.mxu1 %vm2987_vm1, %v2988_v27 }
 0x65b   : > { %v2150_v8 = vsel %vm522_vm0, %v2146_v2, %v2128_v7 }
 0x65c   : > { %v2154_v20 = vsel %vm2151_vm6, %v2150_v8, %v2140_v0 }
 0x65d   : > { %v2160_v12 = vmul.f32 %v2157_v11, %v2154_v20 }
 0x65f   : > { %2693 = vmatmul.mubr.msk.f32.gmra.mrb[28].mxu1 %vm721_vm5, %v2160_v12 }
 0x728   : > { %v2252_v25 = vpop.f32.mrb[24].mxu1 }
 0x729   : > { %v2253_v30 = vadd.f32 %v2482_v17, %v2252_v25  ;;  %v2688_v31 = vpop.f32.mrb[25].mxu1 }
 0x72b   : > { %v2269_v27 = vadd.f32 %v2266_v33, %v2253_v30 }
 0x72c   : > { %v2257_v35 = vpop.f32.mrb[26].mxu1 }
 0x72d   : > { %2272 = vst.msk [vmem:[%s470_s29] sm:$0xff] %vm522_vm0, %v2269_v27  ;;  %v2258_v48 = vadd.f32 %v2482_v17, %v2257_v35  ;;  %v2691_v50 = vpop.f32.mrb[27].mxu1 }
 0x72f   : > { %v2270_v53 = vadd.f32 %v2267_v51, %v2258_v48 }
 0x731   : > { %2273 = vst.msk [vmem:[%s470_s29 + $0x8] sm:$0xff] %vm522_vm0, %v2270_v53 }
 0x732   : > { %v2262_v49 = vpop.f32.mrb[28].mxu1 }
 0x733   : > { %v2263_v47 = vadd.f32 %v2482_v17, %v2262_v49  ;;  %v2694_v6 = vpop.f32.mrb[29].mxu1 }
 0x735   : > { %v2271_v9 = vadd.f32 %v2268_v1, %v2263_v47 }
 0x737   : > { %2274 = vst.msk [vmem:[%s470_s29 + $0x10] sm:$0xff] %vm522_vm0, %v2271_v9 }
 0x738   : > { %2919 = shalt.err (!%p2916_p5)
}
 0x739   : > { %s2920_s19 = scalar_lea.hbm %s3760_s12, 384  ;;  %s2924_s27 = scalar_lea.hbm %s3819_s10, 768 }
 0x73a   : > { %p2921_p6 = scmp.ne.s32.totalorder %s3760_s12, %s2920_s19  ;;  %p2925_p10 = scmp.lt.u32.totalorder %s3760_s12, %s3819_s10 }
 0x73b   : > { %p2926_p11 = scmp.lt.u32.totalorder %s2924_s27, %s2920_s19  ;;  %p2928_p13 = scmp.lt.u32.totalorder %s2920_s19, %s3760_s12 }
 0x73c   : > { %p2922_p7 = pnand %p2921_p6, %p3096_p4 }
 0x73d   : > { %p2927_p12 = por %p2926_p11, %p2925_p10 }
 0x73e   : > { %p2923_p9 = pneg %p2922_p7 }
 0x73f   : > { %p2929_p0 = por %p2928_p13, %p2927_p12 }
 0x741   : > { %p2930_p1 = pnand %p2929_p0, %p2923_p9 }
 0x743   : > { %2933 = shalt.err (!%p2930_p1)
}
 0x744   : > { %s2999_s0 = smov 128   ;;  %s3000_s16 = smov 8  }
 0x745   : > { %2745 = dma.vmem_to_hbm [thread:$0]  (%p3096_p4), %s3755_s30, 384, %s3760_s12, %s3763_s20, %s2999_s0, %s2999_s0, %s3000_s16  }
 0x746 PF: > { %p2751_p2 = scmp.ge.s32.totalorder %s2984_s18, 2  ;;  %s2306_s28 = sand.u32 1, %s2964_s13  }
 0x747   : > { %s2307_s19 = scalar_lea.sflag [#allocation9], %s2306_s28 }
 0x748   : > { %p2748_p3 = pnand %p2751_p2, %p3103_p8 }
 0x74a   : > { %2959 = dma.done.wait (!%p2748_p3), %s2307_s19, 384  }
 0x74b   : > { %2961 = vsyncadd (!%p2748_p3), %s2307_s19, 4294966912  ;;  %s23_s18 = sadd.s32 1, %s2984_s18   ;;  %s3830_s13 = smov %s2968_s14 }
 0x74c   : > { %p20_p5 = scmp.ge.s32.totalorder %s23_s18, 4   ;;  %s3831_s14 = smov %s2972_s15 }
 0x74d   : > { %s3832_s15 = smov %s3109_s26  ;;  %s3833_s16 = smov %s2980_s17 }
 0x74e   : > { %s3834_s17 = smov %s3836_s21  ;;  %22 = sbr.rel (!%p20_p5) target bundleno = 6 (0x6), region = 118 }
 0x755   :  { %2312 = vsyncpa [#allocation9], 1 }
 0x756   :  { %2314 = vsyncpa [#allocation9 + $0x1], 1 }

// kernel: bidirectional_triangle_attention.2
= control target key start
LH: loop header
LB: loop body
LE: loop exit
PB: predicated region body
PF: predicated region fallthrough
CT: control target
= control target key end

     0   :  { %s2582_s13 = smov 0   ;;  %s2584_s14 = smov 0   ;;  %s3018_s0 = inlined_call_operand.vmem [shape: f32[2,16,32], index: 0, kind: input, shape index: {}]   ;;  %s3019_s1 = inlined_call_operand.vmem [shape: f32[2,4,24,16], index: 1, kind: input, shape index: {}]   ;;  %s3020_s2 = inlined_call_operand.vmem [shape: f32[2,4,24,16], index: 2, kind: input, shape index: {}]   ;;  %s3021_s3 = inlined_call_operand.vmem [shape: f32[2,4,16,24], index: 3, kind: input, shape index: {}]   ;;  %s3022_s4 = inlined_call_operand.vmem [shape: f32[32,128], index: 4, kind: input, shape index: {}]   ;;  %s3023_s5 = inlined_call_operand.vmem [shape: f32[1,64], index: 5, kind: input, shape index: {}]   ;;  %s3024_s6 = inlined_call_operand.vmem [shape: f32[64,32], index: 6, kind: input, shape index: {}]   ;;  %s3025_s7 = inlined_call_operand.vmem [shape: f32[1,32], index: 7, kind: input, shape index: {}]   ;;  %s3026_s8 = inlined_call_operand.vmem [shape: f32[1,32], index: 8, kind: input, shape index: {}]   ;;  %s3027_s9 = inlined_call_operand.vmem [shape: f32[1,32], index: 9, kind: input, shape index: {}]   ;;  %s3028_s10 = inlined_call_operand.vmem [shape: f32[2,16,32], index: 10, kind: output, shape index: {}]  }
   0x1   :  { %s2586_s15 = smov 0  }
   0x2 LB: > { %s39_s16 = sadd.s32 1, %s2511_s14  ;;  %p2122_p0 = scmp.ge.s32.totalorder %s2515_s15, 1  ;;  %s2515_s15 = sphi %s2586_s15, %s20_s15   ;;  %s2511_s14 = sphi %s2584_s14, %s3032_s14   ;;  %s2507_s13 = sphi %s2582_s13, %s3031_s13  }
   0x3   : > { %p41_p1 = scmp.ge.s32.totalorder %s39_s16, 2  ;;  %p396_p2 = scmp.lt.s32.totalorder %s2515_s15, 3 }
   0x5   : > { %s3034_s16 = smov (%p41_p1, %s39_s16), 0  ;;  %p397_p3 = pnand %p2122_p0, %p396_p2 }
   0x6   : > { %p473_p4 = scmp.lt.s32.totalorder (!%p397_p3), %s2507_s13, 1  ;;  %vm531_vm0 = vcmask (!%p397_p3), 261120   ;;  %v579_v14 = vld [vmem:[%s3022_s4] sm:$0xff] (!%p397_p3)  ;;  %v580_v15 = vld [vmem:[%s3022_s4 + $0x8] sm:$0xff] (!%p397_p3)  ;;  %v581_v16 = vld [vmem:[%s3022_s4 + $0x10] sm:$0xff] (!%p397_p3)  ;;  %vm698_vm1 = vcmask (!%p397_p3), 130048  }
   0x7   : > { %400 = sbr.rel (%p397_p3) target bundleno = 1830 (0x726), region = 60  ;;  %v2332_v17 = vpack.c.bf16 (!%p397_p3), %v580_v15, %v579_v14  ;;  %v582_v18 = vld [vmem:[%s3022_s4 + $0x18] sm:$0xff] (!%p397_p3)  ;;  %vm2636_vm2 = vmpackc.low (!%p397_p3), %vm698_vm1, %vm698_vm1  ;;  %v2131_v31 = vld [vmem:[%s3026_s8] ss:$0 sm:$0xff] (!%p397_p3)  ;;  %s2517_s22 = smov (!%p397_p3), 112   ;;  %vm1152_vm3 = vcmask (!%p397_p3), 195584  }
   0x8   : > { %v2336_v19 = vpack.c.bf16 (!%p397_p3), %v582_v18, %v581_v16  ;;  %v2132_v33 = vld [vmem:[%s3027_s9] ss:$0 sm:$0xff] (!%p397_p3)  ;;  %s2518_s23 = smov (!%p397_p3), 96   ;;  %s2519_s24 = smov (!%p397_p3), 80   ;;  %vm730_vm4 = vcmask (!%p397_p3), 7168   ;;  %v2521_v14 = vmov (!%p397_p3), 0  }
   0x9   : > { %2333 = vmatprep.subr.bf16.mxu0 (!%p397_p3), %v2332_v17  ;;  %2432 = vset.pattern.permute.xlu1 (!%p397_p3), %v2521_v14  ;;  %v2522_v15 = vmov (!%p397_p3), 0.0   ;;  %s2523_s19 = smov (!%p397_p3), 64   ;;  %s2525_s18 = smov (!%p397_p3), 32   ;;  %vm695_vm5 = vcmask (!%p397_p3), 523264   ;;  %vm1861_vm6 = vcmask (!%p397_p3), 392192  }
   0xa   : > { %2335 = vmatpush3.bf16.msra.mxu0 (!%p397_p3), %v2332_v17  ;;  %2431 = vset.pattern.permute.xlu0 (!%p397_p3), %v2521_v14  ;;  %742 = vst.msk [vmem:[#allocation6 + $0x18] sm:$0xff] (!%p397_p3), %vm730_vm4, %v2522_v15  ;;  %739 = vst.msk [vmem:[#allocation6] sm:$0xff] (!%p397_p3), %vm730_vm4, %v2522_v15 }
   0xb   : > { %2337 = vmatprep.subr.bf16.mxu0 (!%p397_p3), %v2336_v19  ;;  %740 = vst.msk [vmem:[#allocation6 + $0x8] sm:$0xff] (!%p397_p3), %vm730_vm4, %v2522_v15  ;;  %741 = vst.msk [vmem:[#allocation6 + $0x10] sm:$0xff] (!%p397_p3), %vm730_vm4, %v2522_v15 }
   0xc   : > { %743 = vst.msk [vmem:[#allocation6 + $0x20] sm:$0xff] (!%p397_p3), %vm730_vm4, %v2522_v15  ;;  %744 = vst.msk [vmem:[#allocation6 + $0x28] sm:$0xff] (!%p397_p3), %vm730_vm4, %v2522_v15 }
   0xd   : > { %745 = vst.msk [vmem:[#allocation6 + $0x30] sm:$0xff] (!%p397_p3), %vm730_vm4, %v2522_v15  ;;  %746 = vst.msk [vmem:[#allocation6 + $0x38] sm:$0xff] (!%p397_p3), %vm730_vm4, %v2522_v15 }
   0xe   : > { %s3036_s13 = smov (!%p473_p4, %s2507_s13), 1  ;;  %2339 = vmatpush3.bf16.msra.mxu0 %v2336_v19  ;;  %747 = vst.msk [vmem:[#allocation7] sm:$0xff] %vm698_vm1, %v2522_v15  ;;  %748 = vst.msk [vmem:[#allocation7 + $0x8] sm:$0xff] %vm698_vm1, %v2522_v15 }
   0xf   : > { %s2171_s17 = sshll.u32 %s3036_s13, 4  ;;  %s2396_s29 = smul.u32 96, %s3036_s13  ;;  %749 = vst.msk [vmem:[#allocation7 + $0x10] sm:$0xff] %vm698_vm1, %v2522_v15  ;;  %750 = vst.msk [vmem:[#allocation7 + $0x18] sm:$0xff] %vm698_vm1, %v2522_v15 }
  0x10   : > { %s480_s20 = scalar_lea.vmem %s3018_s0, %s2171_s17  ;;  %s2172_s25 = sshll.u32 %s3036_s13, 6  ;;  %751 = vst.msk [vmem:[#allocation7 + $0x20] sm:$0xff] %vm698_vm1, %v2522_v15  ;;  %752 = vst.msk [vmem:[#allocation7 + $0x28] sm:$0xff] %vm698_vm1, %v2522_v15 }
  0x11   : > { %v529_v0 = vld [vmem:[%s480_s20] sm:$0xff]  ;;  %v530_v1 = vld [vmem:[%s480_s20 + $0x8] sm:$0xff]  ;;  %s2630_s12 = scalar_lea.vmem %s3019_s1, %s2396_s29  ;;  %s2716_s28 = scalar_lea.vmem %s3021_s3, %s2172_s25  ;;  %753 = vst.msk [vmem:[#allocation7 + $0x30] sm:$0xff] %vm698_vm1, %v2522_v15  ;;  %754 = vst.msk [vmem:[#allocation7 + $0x38] sm:$0xff] %vm698_vm1, %v2522_v15 }
  0x12   : > { %v532_v2 = vsel %vm531_vm0, %v529_v0, 0.0  ;;  %v535_v3 = vsel %vm531_vm0, %v530_v1, 0.0  ;;  %v763_v20 = vld [vmem:[%s2630_s12] sm:$0xff]  ;;  %v764_v21 = vld [vmem:[%s2630_s12 + $0x8] sm:$0xff]  ;;  %v765_v40 = vld [vmem:[%s2630_s12 + $0x10] sm:$0xff] }
  0x13   : > { %533 = vadd.xlane.f32.xlu0 %v532_v2  ;;  %v2340_v22 = vpack.c.bf16 %v764_v21, %v763_v20  ;;  %v766_v41 = vld [vmem:[%s2630_s12 + $0x18] sm:$0xff]  ;;  %v767_v42 = vld [vmem:[%s2630_s12 + $0x20] sm:$0xff]  ;;  %v769_v44 = vld [vmem:[%s2630_s12 + $0x30] sm:$0xff] }
  0x14   : > { %v2346_v43 = vpack.c.bf16 %v767_v42, %v766_v41  ;;  %v770_v45 = vld [vmem:[%s2630_s12 + $0x38] sm:$0xff]  ;;  %v768_v47 = vld [vmem:[%s2630_s12 + $0x28] sm:$0xff]  ;;  %v773_v49 = vld [vmem:[%s2630_s12 + $0x50] sm:$0xff] }
  0x15   : > { %2342 = vmatprep.subr.msk.bf16.mxu1 %vm2636_vm2, %v2340_v22  ;;  %v2352_v46 = vpack.c.bf16 %v770_v45, %v769_v44  ;;  %v772_v48 = vld [vmem:[%s2630_s12 + $0x48] sm:$0xff]  ;;  %v771_v55 = vld [vmem:[%s2630_s12 + $0x40] sm:$0xff]  ;;  %v774_v63 = vld [vmem:[%s2630_s12 + $0x58] sm:$0xff]  ;;  %s2807_s12 = scalar_lea.vmem %s3020_s2, %s2396_s29  ;;  %s2524_s29 = smov 16  }
  0x16   : > { %2345 = vmatpush3.bf16.xpose.msk.msra.mxu1 %vm2636_vm2, %v2340_v22  ;;  %2348 = vmatprep.subr.msk.bf16.mxu0 %vm2636_vm2, %v2346_v43  ;;  %v2358_v50 = vpack.c.bf16 %v773_v49, %v772_v48  ;;  %v777_v16 = vld [vmem:[%s2716_s28 + $0x10] sm:$0xff]  ;;  %v778_v18 = vld [vmem:[%s2716_s28 + $0x18] sm:$0xff]  ;;  %v780_v23 = vld [vmem:[%s2716_s28 + $0x28] sm:$0xff] }
  0x17   : > { %536 = vadd.xlane.f32.xlu0 %v535_v3  ;;  %2245 = vmatprep.subr.msk.mxu1 %vm698_vm1, %v765_v40  ;;  %v1386_v48 = vld [vmem:[%s2807_s12] sm:$0xff]  ;;  %v1387_v49 = vld [vmem:[%s2807_s12 + $0x8] sm:$0xff] }
  0x1e   : > { %2246 = vmatpush3.xpose.msk.msra.mxu1 %vm698_vm1, %v765_v40 }
  0x1f   : > { %2354 = vmatprep.subr.msk.bf16.mxu1 %vm2636_vm2, %v2352_v46 }
  0xa0   : > { %v534_v4 = vpop.xlane.xlu0 %533 }
  0xa1   : > { %v539_v5 = vmul.f32 0.03125, %v534_v4 }
  0xa3   : > { %v541_v6 = vsub.f32 %v529_v0, %v539_v5  ;;  %v776_v5 = vld [vmem:[%s2716_s28 + $0x8] sm:$0xff] }
  0xa4   : > { %v537_v7 = vpop.xlane.xlu0 %536 }
  0xa5   : > { %v540_v8 = vmul.f32 0.03125, %v537_v7  ;;  %v543_v9 = vmul.f32 %v541_v6, %v541_v6 }
  0xa7   : > { %v542_v10 = vsub.f32 %v530_v1, %v540_v8  ;;  %v545_v11 = vsel %vm531_vm0, %v543_v9, 0.0 }
  0xa8   : > { %546 = vadd.xlane.f32.xlu1 %v545_v11 }
  0xa9   : > { %v544_v12 = vmul.f32 %v542_v10, %v542_v10 }
  0xab   : > { %v548_v13 = vsel %vm531_vm0, %v544_v12, 0.0 }
  0xac   : > { %549 = vadd.xlane.f32.xlu1 %v548_v13  ;;  %v2520_v13 = vmov -inf  }
  0xad   : > { %732 = vst.msk [vmem:[#allocation5 + $0x8] sm:$0xff] %vm730_vm4, %v2520_v13  ;;  %731 = vst.msk [vmem:[#allocation5] sm:$0xff] %vm730_vm4, %v2520_v13 }
  0xae   : > { %733 = vst.msk [vmem:[#allocation5 + $0x10] sm:$0xff] %vm730_vm4, %v2520_v13  ;;  %734 = vst.msk [vmem:[#allocation5 + $0x18] sm:$0xff] %vm730_vm4, %v2520_v13 }
  0xaf   : > { %735 = vst.msk [vmem:[#allocation5 + $0x20] sm:$0xff] %vm730_vm4, %v2520_v13  ;;  %736 = vst.msk [vmem:[#allocation5 + $0x28] sm:$0xff] %vm730_vm4, %v2520_v13 }
  0xb0   : > { %737 = vst.msk [vmem:[#allocation5 + $0x30] sm:$0xff] %vm730_vm4, %v2520_v13  ;;  %738 = vst.msk [vmem:[#allocation5 + $0x38] sm:$0xff] %vm730_vm4, %v2520_v13 }
  0xb4   : > { %v2782_v40 = vld [vmem:[#allocation5 + $0x8] sm:$0xff]  ;;  %v2784_v41 = vld [vmem:[#allocation5] sm:$0xff] }
 0x135   : > { %v547_v24 = vpop.xlane.xlu1 %546 }
 0x136   : > { %v551_v25 = vmul.f32 0.03125, %v547_v24  ;;  %v779_v24 = vld [vmem:[%s2716_s28 + $0x20] sm:$0xff] }
 0x138   : > { %v553_v26 = vadd.f32 1e-05, %v551_v25 }
 0x139   : > { %v550_v27 = vpop.xlane.xlu1 %549 }
 0x13a   : > { %2433 = vrsqrt.f32 %v553_v26  ;;  %v552_v28 = vmul.f32 0.03125, %v550_v27 }
 0x13c   : > { %v554_v29 = vadd.f32 1e-05, %v552_v28 }
 0x13e   : > { %2435 = vrsqrt.f32 %v554_v29 }
 0x144   : > { %v2434_v30 = vpop.eup %2433 }
 0x145   : > { %v557_v32 = vmul.f32 %v2434_v30, %v541_v6  ;;  %v775_v6 = vld [vmem:[%s2716_s28] sm:$0xff] }
 0x147   : > { %v566_v34 = vmul.f32 %v2131_v31, %v557_v32  ;;  %v781_v32 = vld [vmem:[%s2716_s28 + $0x30] sm:$0xff] }
 0x148   : > { %v2436_v35 = vpop.eup %2435 }
 0x149   : > { %v558_v36 = vmul.f32 %v2436_v35, %v542_v10  ;;  %v575_v37 = vadd.f32 %v2132_v33, %v566_v34 }
 0x14b   : > { %v567_v38 = vmul.f32 %v2131_v31, %v558_v36  ;;  %577 = vst.msk [vmem:[#allocation3] sm:$0xff] %vm531_vm0, %v575_v37  ;;  %2238 = vmatprep.mubr.msk.f32.mxu0 %vm531_vm0, %v575_v37  ;;  %v782_v31 = vld [vmem:[%s2716_s28 + $0x38] sm:$0xff]  ;;  %s523_s28 = scalar_lea.vmem %s3028_s10, %s2171_s17 }
 0x14d   : > { %v576_v39 = vadd.f32 %v2132_v33, %v567_v38 }
 0x14f   : > { %578 = vst.msk [vmem:[#allocation3 + $0x8] sm:$0xff] %vm531_vm0, %v576_v39  ;;  %2239 = vmatmul.mubr.msk.f32.vlgmr.msra.gmra.mrb[0].mxu0 %vm531_vm0, %v576_v39 }
 0x150   : > { %2351 = vmatpush3.bf16.xpose.msk.msra.mxu0 %vm2636_vm2, %v2346_v43 }
 0x151   : > { %2254 = vmatprep.subr.msk.mxu0 %vm698_vm1, %v768_v47 }
 0x158   : > { %2255 = vmatpush3.xpose.msk.msra.mxu0 %vm698_vm1, %v768_v47 }
 0x159   : > { %2360 = vmatprep.subr.msk.bf16.mxu0 %vm2636_vm2, %v2358_v50 }
 0x222   : > { %v2674_v51 = vpop.f32.mrb[0].mxu0 }
 0x223   : > { %700 = vst.msk [vmem:[#allocation2 + $0x8] sm:$0xff] %vm698_vm1, %v2674_v51  ;;  %705 = vrot.lane.b32.xlu1 %v2674_v51, %s2517_s22  ;;  %v2679_v52 = vpop.f32.mrb[1].mxu0 }
 0x224   : > { %699 = vst.msk [vmem:[#allocation2] sm:$0xff] %vm698_vm1, %v2679_v52  ;;  %703 = vrot.lane.b32.xlu0 %v2679_v52, %s2517_s22 }
 0x227   : > { %712 = vrot.lane.b32.xlu1 %v2679_v52, %s2518_s23 }
 0x228   : > { %721 = vrot.lane.b32.xlu0 %v2679_v52, %s2519_s24 }
 0x22a   : > { %v756_v54 = vld [vmem:[#allocation2 + $0x8] sm:$0xff] }
 0x22b   : > { %714 = vrot.lane.b32.xlu1 %v2674_v51, %s2518_s23  ;;  %v755_v53 = vld [vmem:[#allocation2] sm:$0xff]  ;;  %s2526_s23 = smov 48  }
 0x22c   : > { %2247 = vmatprep.mubr.msk.f32.mxu1 %vm698_vm1, %v755_v53  ;;  %v1388_v53 = vld [vmem:[%s2807_s12 + $0x10] sm:$0xff] }
 0x22d   : > { %2248 = vmatmul.mubr.msk.f32.vlgmr.msra.gmra.mrb[0].mxu1 %vm698_vm1, %v756_v54  ;;  %v2812_v54 = vld [vmem:[#allocation5 + $0x10] sm:$0xff] }
 0x22e   : > { %2357 = vmatpush3.bf16.xpose.msk.msra.mxu1 %vm2636_vm2, %v2352_v46 }
 0x22f   : > { %723 = vrot.lane.b32.xlu1 %v2674_v51, %s2519_s24  ;;  %2263 = vmatprep.subr.msk.mxu1 %vm698_vm1, %v771_v55 }
 0x236   : > { %2264 = vmatpush3.xpose.msk.msra.mxu1 %vm698_vm1, %v771_v55 }
 0x295   : > { %v706_v56 = vpop.permute.xlu1 %705 }
 0x296   : > { %711 = vst.msk [vmem:[#allocation2 + $0x18] sm:$0xff] %vm698_vm1, %v706_v56  ;;  %v704_v57 = vpop.permute.xlu0 %703 }
 0x297   : > { %710 = vst.msk [vmem:[#allocation2 + $0x10] sm:$0xff] %vm698_vm1, %v704_v57  ;;  %v2817_v57 = vld [vmem:[#allocation5 + $0x18] sm:$0xff] }
 0x299   : > { %v713_v58 = vpop.permute.xlu1 %712 }
 0x29a   : > { %719 = vst.msk [vmem:[#allocation2 + $0x20] sm:$0xff] %vm698_vm1, %v713_v58  ;;  %v722_v59 = vpop.permute.xlu0 %721 }
 0x29b   : > { %728 = vst.msk [vmem:[#allocation2 + $0x30] sm:$0xff] %vm698_vm1, %v722_v59  ;;  %v2823_v59 = vld [vmem:[#allocation5 + $0x28] sm:$0xff] }
 0x29d   : > { %v715_v60 = vpop.permute.xlu1 %714  ;;  %v758_v62 = vld [vmem:[#allocation2 + $0x18] sm:$0xff] }
 0x29e   : > { %720 = vst.msk [vmem:[#allocation2 + $0x28] sm:$0xff] %vm698_vm1, %v715_v60  ;;  %v757_v61 = vld [vmem:[#allocation2 + $0x10] sm:$0xff] }
 0x29f   : > { %2256 = vmatprep.mubr.msk.f32.mxu0 %vm698_vm1, %v757_v61 }
 0x2a0   : > { %2257 = vmatmul.mubr.msk.f32.vlgmr.msra.gmra.mrb[2].mxu0 %vm698_vm1, %v758_v62 }
 0x2a1   : > { %2363 = vmatpush3.bf16.xpose.msk.msra.mxu0 %vm2636_vm2, %v2358_v50  ;;  %v724_v0 = vpop.permute.xlu1 %723  ;;  %v759_v1 = vld [vmem:[#allocation2 + $0x20] sm:$0xff]  ;;  %v2364_v50 = vpack.c.bf16 %v1387_v49, %v1386_v48 }
 0x2a2   : > { %729 = vst.msk [vmem:[#allocation2 + $0x38] sm:$0xff] %vm698_vm1, %v724_v0  ;;  %2265 = vmatprep.mubr.msk.f32.mxu1 %vm698_vm1, %v759_v1  ;;  %v761_v2 = vld [vmem:[#allocation2 + $0x30] sm:$0xff]  ;;  %2272 = vmatprep.subr.msk.mxu0 %vm698_vm1, %v774_v63  ;;  %v2831_v0 = vld [vmem:[#allocation5 + $0x20] sm:$0xff] }
 0x2a3   : > { %2274 = vmatprep.mubr.msk.f32.mxu0 %vm698_vm1, %v761_v2  ;;  %2365 = vmatprep.subr.bf16.mxu1 %v2364_v50 }
 0x2a5   : > { %v760_v3 = vld [vmem:[#allocation2 + $0x28] sm:$0xff] }
 0x2a6   : > { %2266 = vmatmul.mubr.msk.f32.vlgmr.msra.gmra.mrb[2].mxu1 %vm698_vm1, %v760_v3 }
 0x2a7   : > { %2367 = vmatpush3.bf16.msra.mxu1 %v2364_v50 }
 0x2a8   : > { %2281 = vmatprep.subr.mxu1 %v1388_v53 }
 0x2a9   : > { %2273 = vmatpush3.xpose.msk.msra.mxu0 %vm698_vm1, %v774_v63  ;;  %v762_v4 = vld [vmem:[#allocation2 + $0x38] sm:$0xff] }
 0x2ab   : > { %2282 = vmatpush3.msra.mxu1 %v1388_v53 }
 0x2ac   : > { %2275 = vmatmul.mubr.msk.f32.vlgmr.msra.gmra.mrb[4].mxu0 %vm698_vm1, %v762_v4 }
 0x300   : > { %v2249_v7 = vpop.f32.mrb[0].mxu1 }
 0x301   : > { %v2720_v8 = vadd.f32 %v2249_v7, %v776_v5  ;;  %v865_v9 = vpop.f32.mrb[1].mxu1  ;;  %v2845_v5 = vld [vmem:[#allocation5 + $0x38] sm:$0xff] }
 0x302   : > { %v2722_v10 = vadd.f32 %v865_v9, %v775_v6  ;;  %v2847_v6 = vld [vmem:[#allocation5 + $0x30] sm:$0xff] }
 0x303   : > { %v1156_v11 = vsel %vm1152_vm3, %v2720_v8, -inf }
 0x304   : > { %1157 = vmax.xlane.f32.xlu1 %v1156_v11  ;;  %v1153_v12 = vsel %vm1152_vm3, %v2722_v10, -inf }
 0x305   : > { %1154 = vmax.xlane.f32.xlu0 %v1153_v12 }
 0x373   : > { %v2258_v17 = vpop.f32.mrb[2].mxu0 }
 0x374   : > { %v955_v19 = vpop.f32.mrb[3].mxu0  ;;  %v2756_v21 = vadd.f32 %v2258_v17, %v778_v18 }
 0x375   : > { %v2754_v20 = vadd.f32 %v955_v19, %v777_v16 }
 0x376   : > { %v1162_v29 = vsel %vm1152_vm3, %v2756_v21, -inf }
 0x377   : > { %v1159_v22 = vsel %vm1152_vm3, %v2754_v20, -inf }
 0x378   : > { %1160 = vmax.xlane.f32.xlu0 %v1159_v22 }
 0x379   : > { %v2267_v25 = vpop.f32.mrb[2].mxu1 }
 0x37a   : > { %v2762_v26 = vadd.f32 %v2267_v25, %v780_v23  ;;  %v1045_v27 = vpop.f32.mrb[3].mxu1  ;;  %v1389_v23 = vld [vmem:[%s2807_s12 + $0x18] sm:$0xff] }
 0x37b   : > { %v2764_v28 = vadd.f32 %v1045_v27, %v779_v24  ;;  %v1390_v24 = vld [vmem:[%s2807_s12 + $0x20] sm:$0xff] }
 0x37c   : > { %1163 = vmax.xlane.f32.xlu0 %v1162_v29  ;;  %v1168_v30 = vsel %vm1152_vm3, %v2762_v26, -inf  ;;  %v2368_v27 = vpack.c.bf16 %v1390_v24, %v1389_v23 }
 0x37d   : > { %1169 = vmax.xlane.f32.xlu1 %v1168_v30  ;;  %v1165_v34 = vsel %vm1152_vm3, %v2764_v28, -inf  ;;  %v1392_v30 = vld [vmem:[%s2807_s12 + $0x30] sm:$0xff] }
 0x37e   : > { %2369 = vmatprep.subr.bf16.mxu1 %v2368_v27 }
 0x37f   : > { %v2276_v33 = vpop.f32.mrb[4].mxu0 }
 0x380   : > { %v2774_v35 = vadd.f32 %v2276_v33, %v782_v31  ;;  %v1135_v36 = vpop.f32.mrb[5].mxu0  ;;  %1166 = vmax.xlane.f32.xlu0 %v1165_v34  ;;  %v1393_v31 = vld [vmem:[%s2807_s12 + $0x38] sm:$0xff] }
 0x381   : > { %v2776_v37 = vadd.f32 %v1135_v36, %v781_v32  ;;  %v2372_v32 = vpack.c.bf16 %v1393_v31, %v1392_v30 }
 0x382   : > { %v1174_v38 = vsel %vm1152_vm3, %v2774_v35, -inf }
 0x383   : > { %1175 = vmax.xlane.f32.xlu1 %v1174_v38  ;;  %v1171_v39 = vsel %vm1152_vm3, %v2776_v37, -inf }
 0x384   : > { %1172 = vmax.xlane.f32.xlu0 %v1171_v39 }
 0x391   : > { %v1158_v42 = vpop.xlane.xlu1 %1157 }
 0x392   : > { %v2787_v43 = vmax.f32 %v2782_v40, %v1158_v42  ;;  %v1155_v44 = vpop.xlane.xlu0 %1154 }
 0x393   : > { %v2790_v45 = vmax.f32 %v2784_v41, %v1155_v44 }
 0x394   : > { %v1186_v46 = vsub.f32 %v2782_v40, %v2787_v43  ;;  %1739 = vst.msk [vmem:[#allocation5 + $0x8] sm:$0xff] %vm730_vm4, %v2787_v43  ;;  %1216 = vperm.xlu1 %2432, %v2787_v43  }
 0x395   : > { %v1185_v47 = vsub.f32 %v2784_v41, %v2790_v45  ;;  %1738 = vst.msk [vmem:[#allocation5] sm:$0xff] %vm730_vm4, %v2790_v45 }
 0x39a   : > { %1211 = vperm.xlu0 %2431, %v2790_v45  }
 0x405   : > { %v1161_v55 = vpop.xlane.xlu0 %1160 }
 0x406   : > { %v2815_v56 = vmax.f32 %v2812_v54, %v1161_v55 }
 0x408   : > { %v1187_v58 = vsub.f32 %v2812_v54, %v2815_v56  ;;  %1740 = vst.msk [vmem:[#allocation5 + $0x10] sm:$0xff] %vm730_vm4, %v2815_v56 }
 0x409   : > { %v1164_v60 = vpop.xlane.xlu0 %1163 }
 0x40a   : > { %v2826_v61 = vmax.f32 %v2817_v57, %v1164_v60  ;;  %v1170_v62 = vpop.xlane.xlu1 %1169 }
 0x40b   : > { %v2829_v63 = vmax.f32 %v2823_v59, %v1170_v62 }
 0x40c   : > { %v1188_v1 = vsub.f32 %v2817_v57, %v2826_v61  ;;  %1741 = vst.msk [vmem:[#allocation5 + $0x18] sm:$0xff] %vm730_vm4, %v2826_v61  ;;  %1226 = vperm.xlu1 %2432, %v2826_v61  }
 0x40d   : > { %v1190_v2 = vsub.f32 %v2823_v59, %v2829_v63  ;;  %1743 = vst.msk [vmem:[#allocation5 + $0x28] sm:$0xff] %vm730_vm4, %v2829_v63  ;;  %v1167_v3 = vpop.xlane.xlu0 %1166 }
 0x40e   : > { %v2843_v4 = vmax.f32 %v2831_v0, %v1167_v3 }
 0x410   : > { %v1189_v7 = vsub.f32 %v2831_v0, %v2843_v4  ;;  %1742 = vst.msk [vmem:[#allocation5 + $0x20] sm:$0xff] %vm730_vm4, %v2843_v4  ;;  %v1176_v9 = vpop.xlane.xlu1 %1175  ;;  %1236 = vperm.xlu1 %2432, %v2829_v63  }
 0x411   : > { %v2855_v11 = vmax.f32 %v2845_v5, %v1176_v9  ;;  %v1173_v12 = vpop.xlane.xlu0 %1172 }
 0x412   : > { %v2858_v13 = vmax.f32 %v2847_v6, %v1173_v12 }
 0x413   : > { %v1192_v14 = vsub.f32 %v2845_v5, %v2855_v11  ;;  %1745 = vst.msk [vmem:[#allocation5 + $0x38] sm:$0xff] %vm730_vm4, %v2855_v11  ;;  %v1276_v5 = vld [vmem:[#allocation6 + $0x18] sm:$0xff] }
 0x414   : > { %v1191_v15 = vsub.f32 %v2847_v6, %v2858_v13  ;;  %1744 = vst.msk [vmem:[#allocation5 + $0x30] sm:$0xff] %vm730_vm4, %v2858_v13  ;;  %v1217_v16 = vpop.permute.xlu1 %1216  ;;  %1221 = vperm.xlu1 %2432, %v2815_v56  }
 0x415   : > { %v1250_v17 = vsub.f32 %v2720_v8, %v1217_v16  ;;  %v1207_v56 = vmul.f32 1.442695, %v1192_v14  ;;  %v1193_v14 = vmul.f32 1.442695, %v1185_v47 }
 0x416   : > { %v1205_v54 = vmul.f32 1.442695, %v1191_v15 }
 0x417   : > { %v1259_v22 = vmul.f32 1.442695, %v1250_v17 }
 0x418   : > { %1231 = vperm.xlu1 %2432, %v2843_v4  }
 0x419   : > { %v1212_v18 = vpop.permute.xlu0 %1211 }
 0x41a   : > { %v1249_v19 = vsub.f32 %v2722_v10, %v1212_v18  ;;  %v1391_v10 = vld [vmem:[%s2807_s12 + $0x28] sm:$0xff] }
 0x41c   : > { %v1257_v25 = vmul.f32 1.442695, %v1249_v19  ;;  %1241 = vperm.xlu1 %2432, %v2858_v13   ;;  %v1394_v19 = vld [vmem:[%s2807_s12 + $0x40] sm:$0xff] }
 0x41e   : > { %2437 = vpow2.f32 %v1257_v25  ;;  %v1397_v25 = vld [vmem:[%s2807_s12 + $0x58] sm:$0xff] }
 0x41f   : > { %2439 = vpow2.f32 %v1259_v22  ;;  %v1395_v22 = vld [vmem:[%s2807_s12 + $0x48] sm:$0xff] }
 0x420   : > { %1246 = vperm.xlu1 %2432, %v2855_v11   ;;  %v1278_v11 = vld [vmem:[#allocation6 + $0x28] sm:$0xff] }
 0x428   : > { %v2876_v8 = vpop.eup %2437 }
 0x429   : > { %v2878_v29 = vpop.eup %2439  ;;  %2283 = vmatprep.mubr.msk.f32.mxu1 %vm1152_vm3, %v2876_v8 }
 0x42a   : > { %2284 = vmatmul.mubr.msk.f32.vlgmr.msra.gmra.mrb[4].mxu1 %vm1152_vm3, %v2878_v29 }
 0x42b   : > { %2371 = vmatpush3.bf16.msra.mxu1 %v2368_v27 }
 0x42c   : > { %2290 = vmatprep.subr.mxu1 %v1391_v10 }
 0x42f   : > { %2291 = vmatpush3.msra.mxu1 %v1391_v10 }
 0x430   : > { %2373 = vmatprep.subr.bf16.mxu1 %v2372_v32 }
 0x48b   : > { %v1227_v33 = vpop.permute.xlu1 %1226 }
 0x48c   : > { %v1252_v34 = vsub.f32 %v2756_v21, %v1227_v33  ;;  %v1292_v33 = vsel %vm1152_vm3, %v2878_v29, 0.0 }
 0x48e   : > { %v1263_v36 = vmul.f32 1.442695, %v1252_v34  ;;  %v1197_v34 = vmul.f32 1.442695, %v1187_v58  ;;  %v2135_v58 = vld [vmem:[%s3023_s5] ss:$0 sm:$0xff] }
 0x48f   : > { %v1237_v38 = vpop.permute.xlu1 %1236 }
 0x490   : > { %2441 = vpow2.f32 %v1263_v36  ;;  %v1254_v39 = vsub.f32 %v2762_v26, %v1237_v38  ;;  %v1199_v36 = vmul.f32 1.442695, %v1188_v1  ;;  %v1201_v38 = vmul.f32 1.442695, %v1189_v7 }
 0x492   : > { %v1267_v42 = vmul.f32 1.442695, %v1254_v39  ;;  %v1275_v39 = vld [vmem:[#allocation6 + $0x10] sm:$0xff] }
 0x493   : > { %v1222_v44 = vpop.permute.xlu1 %1221 }
 0x494   : > { %2443 = vpow2.f32 %v1267_v42  ;;  %v1251_v48 = vsub.f32 %v2754_v20, %v1222_v44  ;;  %v1195_v44 = vmul.f32 1.442695, %v1186_v46  ;;  %v1280_v46 = vld [vmem:[#allocation6 + $0x38] sm:$0xff] }
 0x496   : > { %v1261_v49 = vmul.f32 1.442695, %v1251_v48 }
 0x497   : > { %v1232_v50 = vpop.permute.xlu1 %1231 }
 0x498   : > { %2445 = vpow2.f32 %v1261_v49  ;;  %v1253_v53 = vsub.f32 %v2764_v28, %v1232_v50  ;;  %v1277_v50 = vld [vmem:[#allocation6 + $0x20] sm:$0xff] }
 0x49a   : > { %v2442_v55 = vpop.eup %2441  ;;  %v1265_v60 = vmul.f32 1.442695, %v1253_v53 }
 0x49b   : > { %v1242_v62 = vpop.permute.xlu1 %1241  ;;  %v1298_v21 = vsel %vm1152_vm3, %v2442_v55, 0.0 }
 0x49c   : > { %2447 = vpow2.f32 %v1265_v60  ;;  %v1255_v26 = vsub.f32 %v2776_v37, %v1242_v62  ;;  %1299 = vadd.xlane.f32.xlu0 %v1298_v21  ;;  %v1396_v37 = vld [vmem:[%s2807_s12 + $0x50] sm:$0xff] }
 0x49d   : > { %v2376_v24 = vpack.c.bf16 %v1396_v37, %v1395_v22 }
 0x49e   : > { %v2444_v3 = vpop.eup %2443  ;;  %v1269_v9 = vmul.f32 1.442695, %v1255_v26 }
 0x49f   : > { %v1247_v20 = vpop.permute.xlu1 %1246  ;;  %v1304_v12 = vsel %vm1152_vm3, %v2444_v3, 0.0 }
 0x4a0   : > { %2449 = vpow2.f32 %v1269_v9  ;;  %v1256_v28 = vsub.f32 %v2774_v35, %v1247_v20  ;;  %1305 = vadd.xlane.f32.xlu1 %v1304_v12 }
 0x4a2   : > { %v2446_v16 = vpop.eup %2445  ;;  %v1271_v17 = vmul.f32 1.442695, %v1256_v28 }
 0x4a3   : > { %2292 = vmatprep.mubr.msk.f32.mxu1 %vm1152_vm3, %v2446_v16  ;;  %v1295_v18 = vsel %vm1152_vm3, %v2446_v16, 0.0 }
 0x4a4   : > { %2451 = vpow2.f32 %v1271_v17  ;;  %1296 = vadd.xlane.f32.xlu1 %v1295_v18  ;;  %2293 = vmatmul.mubr.msk.f32.vlgmr.msra.gmra.mrb[6].mxu1 %vm1152_vm3, %v2442_v55  ;;  %v1279_v55 = vld [vmem:[#allocation6 + $0x30] sm:$0xff]  ;;  %v1274_v17 = vld [vmem:[#allocation6 + $0x8] sm:$0xff] }
 0x4a5   : > { %2375 = vmatpush3.bf16.msra.mxu1 %v2372_v32  ;;  %v1289_v32 = vsel %vm1152_vm3, %v2876_v8, 0.0  ;;  %2453 = vpow2.f32 %v1197_v34  ;;  %v1203_v8 = vmul.f32 1.442695, %v1190_v2 }
 0x4a6   : > { %v2448_v23 = vpop.eup %2447  ;;  %2299 = vmatprep.subr.mxu1 %v1394_v19  ;;  %2455 = vpow2.f32 %v1199_v36 }
 0x4a7   : > { %2301 = vmatprep.mubr.msk.f32.mxu1 %vm1152_vm3, %v2448_v23  ;;  %v1301_v35 = vsel %vm1152_vm3, %v2448_v23, 0.0  ;;  %2457 = vpow2.f32 %v1201_v38 }
 0x4a8   : > { %1302 = vadd.xlane.f32.xlu0 %v1301_v35  ;;  %2459 = vpow2.f32 %v1203_v8 }
 0x4a9   : > { %2300 = vmatpush3.msra.mxu1 %v1394_v19  ;;  %2461 = vpow2.f32 %v1205_v54 }
 0x4aa   : > { %v2450_v27 = vpop.eup %2449  ;;  %2302 = vmatmul.mubr.msk.f32.vlgmr.msra.gmra.mrb[8].mxu1 %vm1152_vm3, %v2444_v3  ;;  %2377 = vmatprep.subr.bf16.mxu1 %v2376_v24  ;;  %2463 = vpow2.f32 %v1207_v56  ;;  %v1273_v3 = vld [vmem:[#allocation6] sm:$0xff] }
 0x4ab   : > { %2379 = vmatpush3.bf16.msra.mxu1 %v2376_v24  ;;  %2310 = vmatprep.mubr.msk.f32.mxu1 %vm1152_vm3, %v2450_v27  ;;  %v1307_v10 = vsel %vm1152_vm3, %v2450_v27, 0.0  ;;  %2465 = vpow2.f32 %v1193_v14 }
 0x4ac   : > { %1308 = vadd.xlane.f32.xlu0 %v1307_v10  ;;  %2308 = vmatprep.subr.mxu1 %v1397_v25  ;;  %2467 = vpow2.f32 %v1195_v44  ;;  %v1335_v44 = vld [vmem:[#allocation7 + $0x28] sm:$0xff] }
 0x4ae   : > { %v2452_v30 = vpop.eup %2451 }
 0x4af   : > { %2309 = vmatpush3.msra.mxu1 %v1397_v25  ;;  %v1310_v31 = vsel %vm1152_vm3, %v2452_v30, 0.0  ;;  %v2454_v57 = vpop.eup %2453 }
 0x4b0   : > { %2311 = vmatmul.mubr.msk.f32.vlgmr.msra.gmra.mrb[10].mxu1 %vm1152_vm3, %v2452_v30  ;;  %1311 = vadd.xlane.f32.xlu1 %v1310_v31  ;;  %v2456_v59 = vpop.eup %2455  ;;  %v1283_v48 = vmul.f32 %v2454_v57, %v1275_v39 }
 0x4b1   : > { %1290 = vadd.xlane.f32.xlu0 %v1289_v32  ;;  %v2458_v61 = vpop.eup %2457  ;;  %v1284_v6 = vmul.f32 %v2456_v59, %v1276_v5 }
 0x4b2   : > { %v2460_v63 = vpop.eup %2459  ;;  %v1285_v45 = vmul.f32 %v2458_v61, %v1277_v50  ;;  %v1334_v50 = vld [vmem:[#allocation7 + $0x20] sm:$0xff] }
 0x4b3   : > { %v2462_v0 = vpop.eup %2461  ;;  %v1286_v15 = vmul.f32 %v2460_v63, %v1278_v11 }
 0x4b4   : > { %1293 = vadd.xlane.f32.xlu1 %v1292_v33  ;;  %v2464_v1 = vpop.eup %2463  ;;  %v1287_v40 = vmul.f32 %v2462_v0, %v1279_v55 }
 0x4b5   : > { %v2466_v21 = vpop.eup %2465  ;;  %v1288_v20 = vmul.f32 %v2464_v1, %v1280_v46  ;;  %v1336_v46 = vld [vmem:[#allocation7 + $0x30] sm:$0xff] }
 0x4b6   : > { %v2468_v12 = vpop.eup %2467  ;;  %v1281_v16 = vmul.f32 %v2466_v21, %v1273_v3 }
 0x4b7   : > { %v1282_v24 = vmul.f32 %v2468_v12, %v1274_v17  ;;  %v1869_v17 = vld [vmem:[%s3024_s6 + $0x8] sm:$0xff] }
 0x4c5   : > { %1350 = vperm.xlu1 %2432, %v2454_v57  }
 0x4c7   : > { %670 = vrot.lane.b32.xlu0 %v2135_v58, %s2523_s19 }
 0x4c9   : > { %1355 = vperm.xlu1 %2432, %v2456_v59  }
 0x4cb   : > { %1360 = vperm.xlu0 %2431, %v2458_v61  }
 0x4cd   : > { %1365 = vperm.xlu1 %2432, %v2460_v63  }
 0x4cf   : > { %1370 = vperm.xlu0 %2431, %v2462_v0  }
 0x4d1   : > { %1375 = vperm.xlu1 %2432, %v2464_v1  }
 0x4fd   : > { %v2935_v2 = vpop.f32.mrb[4].mxu1 }
 0x4fe   : > { %v2937_v4 = vpop.f32.mrb[5].mxu1 }
 0x529   : > { %v1300_v7 = vpop.xlane.xlu0 %1299 }
 0x52a   : > { %v1316_v13 = vadd.f32 %v1300_v7, %v1284_v6  ;;  %v1333_v7 = vld [vmem:[#allocation7 + $0x18] sm:$0xff] }
 0x52c   : > { %1325 = vst.msk [vmem:[#allocation6 + $0x18] sm:$0xff] %vm730_vm4, %v1316_v13  ;;  %v1332_v13 = vld [vmem:[#allocation7 + $0x10] sm:$0xff] }
 0x52d   : > { %v1306_v29 = vpop.xlane.xlu1 %1305 }
 0x52e   : > { %v1318_v42 = vadd.f32 %v1306_v29, %v1286_v15 }
 0x530   : > { %1327 = vst.msk [vmem:[#allocation6 + $0x28] sm:$0xff] %vm730_vm4, %v1318_v42 }
 0x531   : > { %v1297_v49 = vpop.xlane.xlu1 %1296 }
 0x532   : > { %v1315_v53 = vadd.f32 %v1297_v49, %v1283_v48 }
 0x533   : > { %v1752_v41 = vld [vmem:[#allocation6 + $0x18] sm:$0xff] }
 0x534   : > { %1324 = vst.msk [vmem:[#allocation6 + $0x10] sm:$0xff] %vm730_vm4, %v1315_v53  ;;  %2469 = vrcp.f32 %v1752_v41 }
 0x535   : > { %v1303_v47 = vpop.xlane.xlu0 %1302 }
 0x536   : > { %v1317_v60 = vadd.f32 %v1303_v47, %v1285_v45 }
 0x537   : > { %v1754_v62 = vld [vmem:[#allocation6 + $0x28] sm:$0xff] }
 0x538   : > { %1326 = vst.msk [vmem:[#allocation6 + $0x20] sm:$0xff] %vm730_vm4, %v1317_v60  ;;  %2471 = vrcp.f32 %v1754_v62  ;;  %v1337_v62 = vld [vmem:[#allocation7 + $0x38] sm:$0xff] }
 0x539   : > { %v1309_v43 = vpop.xlane.xlu0 %1308 }
 0x53a   : > { %v1319_v26 = vadd.f32 %v1309_v43, %v1287_v40 }
 0x53b   : > { %v1751_v9 = vld [vmem:[#allocation6 + $0x10] sm:$0xff] }
 0x53c   : > { %1328 = vst.msk [vmem:[#allocation6 + $0x30] sm:$0xff] %vm730_vm4, %v1319_v26  ;;  %2473 = vrcp.f32 %v1751_v9 }
 0x53d   : > { %v1312_v28 = vpop.xlane.xlu1 %1311 }
 0x53e   : > { %v2470_v18 = vpop.eup %2469  ;;  %v1320_v19 = vadd.f32 %v1312_v28, %v1288_v20  ;;  %v1291_v22 = vpop.xlane.xlu0 %1290 }
 0x53f   : > { %v1313_v37 = vadd.f32 %v1291_v22, %v1281_v16  ;;  %1797 = vperm.xlu1 %2432, %v2470_v18   ;;  %v1753_v23 = vld [vmem:[#allocation6 + $0x20] sm:$0xff]  ;;  %v1871_v22 = vld [vmem:[%s3024_s6 + $0x18] sm:$0xff] }
 0x540   : > { %1329 = vst.msk [vmem:[#allocation6 + $0x38] sm:$0xff] %vm730_vm4, %v1320_v19  ;;  %2475 = vrcp.f32 %v1753_v23  ;;  %v1868_v16 = vld [vmem:[%s3024_s6] sm:$0xff]  ;;  %v1870_v19 = vld [vmem:[%s3024_s6 + $0x10] sm:$0xff] }
 0x541   : > { %1322 = vst.msk [vmem:[#allocation6] sm:$0xff] %vm730_vm4, %v1313_v37  ;;  %v1294_v35 = vpop.xlane.xlu1 %1293  ;;  %v2380_v18 = vpack.c.bf16 %v1869_v17, %v1868_v16  ;;  %v2384_v37 = vpack.c.bf16 %v1871_v22, %v1870_v19 }
 0x542   : > { %v2472_v25 = vpop.eup %2471  ;;  %v1314_v27 = vadd.f32 %v1294_v35, %v1282_v24  ;;  %v671_v10 = vpop.permute.xlu0 %670 }
 0x543   : > { %v673_v30 = vadd.f32 %v671_v10, %v2679_v52  ;;  %v674_v31 = vadd.f32 %v2674_v51, %v671_v10  ;;  %1812 = vperm.xlu1 %2432, %v2472_v25   ;;  %v1755_v32 = vld [vmem:[#allocation6 + $0x30] sm:$0xff]  ;;  %2381 = vmatprep.subr.bf16.mxu0 %v2380_v18  ;;  %v1872_v25 = vld [vmem:[%s3024_s6 + $0x20] sm:$0xff] }
 0x544   : > { %1323 = vst.msk [vmem:[#allocation6 + $0x8] sm:$0xff] %vm730_vm4, %v1314_v27  ;;  %2477 = vrcp.f32 %v1755_v32  ;;  %2383 = vmatpush3.bf16.msra.mxu0 %v2380_v18  ;;  %v1873_v27 = vld [vmem:[%s3024_s6 + $0x28] sm:$0xff] }
 0x545   : > { %v2136_v33 = vmul.f32 -1.442695, %v673_v30  ;;  %v2137_v34 = vmul.f32 -1.442695, %v674_v31  ;;  %v1351_v6 = vpop.permute.xlu1 %1350  ;;  %2385 = vmatprep.subr.bf16.mxu0 %v2384_v37  ;;  %v2388_v10 = vpack.c.bf16 %v1873_v27, %v1872_v25  ;;  %v1966_v18 = vld [vmem:[#allocation3 + $0x8] sm:$0xff] }
 0x546   : > { %v2474_v36 = vpop.eup %2473  ;;  %v1380_v15 = vmul.f32 %v1351_v6, %v1332_v13 }
 0x547   : > { %2479 = vpow2.f32 %v2136_v33  ;;  %1792 = vperm.xlu0 %2431, %v2474_v36   ;;  %v1756_v38 = vld [vmem:[#allocation6 + $0x38] sm:$0xff]  ;;  %v1874_v33 = vld [vmem:[%s3024_s6 + $0x30] sm:$0xff] }
 0x548   : > { %2481 = vpow2.f32 %v2137_v34  ;;  %v1749_v8 = vld [vmem:[#allocation6] sm:$0xff]  ;;  %2387 = vmatpush3.bf16.msra.mxu0 %v2384_v37  ;;  %v1875_v34 = vld [vmem:[%s3024_s6 + $0x38] sm:$0xff] }
 0x549   : > { %2483 = vrcp.f32 %v1756_v38  ;;  %v1356_v11 = vpop.permute.xlu1 %1355  ;;  %2389 = vmatprep.subr.bf16.mxu0 %v2388_v10  ;;  %v1965_v37 = vld [vmem:[#allocation3] sm:$0xff] }
 0x54a   : > { %v2476_v54 = vpop.eup %2475  ;;  %2485 = vrcp.f32 %v1749_v8  ;;  %v1381_v14 = vmul.f32 %v1356_v11, %v1333_v7  ;;  %v1361_v53 = vpop.permute.xlu0 %1360  ;;  %v2392_v8 = vpack.c.bf16 %v1875_v34, %v1874_v33  ;;  %v1331_v11 = vld [vmem:[#allocation7 + $0x8] sm:$0xff] }
 0x54b   : > { %1807 = vperm.xlu0 %2431, %v2476_v54   ;;  %v1750_v56 = vld [vmem:[#allocation6 + $0x8] sm:$0xff]  ;;  %v1382_v45 = vmul.f32 %v1361_v53, %v1334_v50 }
 0x54c   : > { %2487 = vrcp.f32 %v1750_v56  ;;  %2391 = vmatpush3.bf16.msra.mxu0 %v2388_v10 }
 0x54d   : > { %v1366_v48 = vpop.permute.xlu1 %1365  ;;  %2393 = vmatprep.subr.bf16.mxu0 %v2392_v8 }
 0x54e   : > { %v2478_v52 = vpop.eup %2477  ;;  %v1383_v41 = vmul.f32 %v1366_v48, %v1335_v44 }
 0x54f   : > { %1822 = vperm.xlu0 %2431, %v2478_v52  }
 0x550   : > { %2395 = vmatpush3.bf16.msra.mxu0 %v2392_v8 }
 0x551   : > { %v2480_v51 = vpop.eup %2479  ;;  %v1376_v40 = vpop.permute.xlu1 %1375 }
 0x552   : > { %v2482_v57 = vpop.eup %2481  ;;  %v681_v58 = vadd.f32 1.0, %v2480_v51  ;;  %v1385_v26 = vmul.f32 %v1376_v40, %v1337_v62 }
 0x553   : > { %v2484_v59 = vpop.eup %2483  ;;  %v682_v61 = vadd.f32 1.0, %v2482_v57  ;;  %1340 = vperm.xlu0 %2431, %v2466_v21   ;;  %v1371_v21 = vpop.permute.xlu0 %1370 }
 0x554   : > { %2489 = vrcp.f32 %v681_v58  ;;  %1827 = vperm.xlu1 %2432, %v2484_v59   ;;  %v2486_v63 = vpop.eup %2485  ;;  %v1384_v3 = vmul.f32 %v1371_v21, %v1336_v46 }
 0x555   : > { %2491 = vrcp.f32 %v682_v61  ;;  %v1330_v61 = vld [vmem:[#allocation7] sm:$0xff] }
 0x556   : > { %v2488_v0 = vpop.eup %2487 }
 0x557   : > { %1777 = vperm.xlu0 %2431, %v2486_v63  }
 0x558   : > { %1345 = vperm.xlu1 %2432, %v2468_v12  }
 0x55c   : > { %1782 = vperm.xlu1 %2432, %v2488_v0  }
 0x55e   : > { %v2490_v1 = vpop.eup %2489 }
 0x55f   : > { %v2492_v5 = vpop.eup %2491  ;;  %689 = vrot.lane.b32.xlu0 %v2490_v1, %s2523_s19 }
 0x560   : > { %691 = vrot.lane.b32.xlu1 %v2492_v5, %s2523_s19 }
 0x577   : > { %v2294_v29 = vpop.f32.mrb[6].mxu1 }
 0x578   : > { %v1725_v39 = vadd.f32 %v2294_v29, %v1381_v14  ;;  %v1551_v42 = vpop.f32.mrb[7].mxu1 }
 0x579   : > { %v1724_v49 = vadd.f32 %v1551_v42, %v1380_v15 }
 0x57a   : > { %1733 = vst.msk [vmem:[#allocation7 + $0x18] sm:$0xff] %vm698_vm1, %v1725_v39 }
 0x57b   : > { %1732 = vst.msk [vmem:[#allocation7 + $0x10] sm:$0xff] %vm698_vm1, %v1724_v49 }
 0x57d   : > { %v2303_v47 = vpop.f32.mrb[8].mxu1 }
 0x57e   : > { %v1727_v55 = vadd.f32 %v2303_v47, %v1383_v41  ;;  %v1632_v60 = vpop.f32.mrb[9].mxu1 }
 0x57f   : > { %v1726_v43 = vadd.f32 %v1632_v60, %v1382_v45 }
 0x580   : > { %1735 = vst.msk [vmem:[#allocation7 + $0x28] sm:$0xff] %vm698_vm1, %v1727_v55 }
 0x581   : > { %1734 = vst.msk [vmem:[#allocation7 + $0x20] sm:$0xff] %vm698_vm1, %v1726_v43  ;;  %v1789_v23 = vld [vmem:[#allocation7 + $0x18] sm:$0xff] }
 0x582   : > { %v1788_v36 = vld [vmem:[#allocation7 + $0x10] sm:$0xff] }
 0x583   : > { %v2312_v9 = vpop.f32.mrb[10].mxu1 }
 0x584   : > { %v1729_v20 = vadd.f32 %v2312_v9, %v1385_v26  ;;  %v1713_v12 = vpop.f32.mrb[11].mxu1 }
 0x585   : > { %v1728_v28 = vadd.f32 %v1713_v12, %v1384_v3  ;;  %v2166_v12 = vld [vmem:[%s3025_s7] ss:$0 sm:$0xff] }
 0x586   : > { %1737 = vst.msk [vmem:[#allocation7 + $0x38] sm:$0xff] %vm698_vm1, %v1729_v20 }
 0x587   : > { %1736 = vst.msk [vmem:[#allocation7 + $0x30] sm:$0xff] %vm698_vm1, %v1728_v28  ;;  %v1804_v30 = vld [vmem:[#allocation7 + $0x28] sm:$0xff] }
 0x588   : > { %v1803_v52 = vld [vmem:[#allocation7 + $0x20] sm:$0xff] }
 0x58d   : > { %v1819_v0 = vld [vmem:[#allocation7 + $0x38] sm:$0xff] }
 0x58e   : > { %v1818_v57 = vld [vmem:[#allocation7 + $0x30] sm:$0xff] }
 0x5be   : > { %v1798_v24 = vpop.permute.xlu1 %1797 }
 0x5bf   : > { %v1801_v35 = vmul.f32 %v1798_v24, %v1789_v23 }
 0x5c1   : > { %1836 = vrot.lane.b32.xlu1 %v1801_v35, %s2524_s29 }
 0x5c2   : > { %v1813_v31 = vpop.permute.xlu1 %1812 }
 0x5c3   : > { %v1816_v32 = vmul.f32 %v1813_v31, %v1804_v30 }
 0x5c5   : > { %1844 = vrot.lane.b32.xlu1 %v1816_v32, %s2525_s18 }
 0x5c6   : > { %v1793_v38 = vpop.permute.xlu0 %1792 }
 0x5c7   : > { %v1800_v54 = vmul.f32 %v1793_v38, %v1788_v36 }
 0x5c9   : > { %1834 = vrot.lane.b32.xlu0 %v1800_v54, %s2524_s29 }
 0x5ca   : > { %v1808_v56 = vpop.permute.xlu0 %1807 }
 0x5cb   : > { %v1815_v51 = vmul.f32 %v1808_v56, %v1803_v52 }
 0x5cd   : > { %1842 = vrot.lane.b32.xlu0 %v1815_v51, %s2525_s18 }
 0x5ce   : > { %v1823_v58 = vpop.permute.xlu0 %1822 }
 0x5cf   : > { %v1830_v59 = vmul.f32 %v1823_v58, %v1818_v57 }
 0x5d1   : > { %1850 = vrot.lane.b32.xlu0 %v1830_v59, %s2526_s23 }
 0x5d2   : > { %v1341_v63 = vpop.permute.xlu0 %1340 }
 0x5d3   : > { %v1828_v1 = vpop.permute.xlu1 %1827  ;;  %v1378_v5 = vmul.f32 %v1341_v63, %v1330_v61 }
 0x5d4   : > { %v1831_v6 = vmul.f32 %v1828_v1, %v1819_v0 }
 0x5d5   : > { %v1722_v7 = vadd.f32 %v2937_v4, %v1378_v5 }
 0x5d6   : > { %1852 = vrot.lane.b32.xlu1 %v1831_v6, %s2526_s23  ;;  %v1778_v13 = vpop.permute.xlu0 %1777 }
 0x5d7   : > { %1730 = vst.msk [vmem:[#allocation7] sm:$0xff] %vm698_vm1, %v1722_v7  ;;  %v1346_v14 = vpop.permute.xlu1 %1345 }
 0x5d8   : > { %v1379_v15 = vmul.f32 %v1346_v14, %v1331_v11 }
 0x5da   : > { %v1723_v29 = vadd.f32 %v2935_v2, %v1379_v15  ;;  %v690_v39 = vpop.permute.xlu0 %689 }
 0x5db   : > { %v1783_v42 = vpop.permute.xlu1 %1782  ;;  %696 = vst.msk [vmem:[#allocation4] sm:$0xff] %vm695_vm5, %v690_v39 }
 0x5dc   : > { %1731 = vst.msk [vmem:[#allocation7 + $0x8] sm:$0xff] %vm698_vm1, %v1723_v29 }
 0x5de   : > { %v1773_v48 = vld [vmem:[#allocation7] sm:$0xff] }
 0x5df   : > { %v692_v44 = vpop.permute.xlu1 %691  ;;  %v1785_v53 = vmul.f32 %v1778_v13, %v1773_v48 }
 0x5e0   : > { %697 = vst.msk [vmem:[#allocation4 + $0x8] sm:$0xff] %vm695_vm5, %v692_v44 }
 0x5e2   : > { %v1864_v60 = vld [vmem:[#allocation4] sm:$0xff] }
 0x5e3   : > { %v1774_v41 = vld [vmem:[#allocation7 + $0x8] sm:$0xff] }
 0x5e4   : > { %v1786_v40 = vmul.f32 %v1783_v42, %v1774_v41 }
 0x5e7   : > { %v1865_v3 = vld [vmem:[#allocation4 + $0x8] sm:$0xff] }
 0x633   : > { %v1837_v49 = vpop.permute.xlu1 %1836 }
 0x634   : > { %v1857_v46 = vsel %vm698_vm1, %v1786_v40, %v1837_v49 }
 0x637   : > { %v1845_v55 = vpop.permute.xlu1 %1844 }
 0x638   : > { %v1860_v21 = vsel %vm531_vm0, %v1857_v46, %v1845_v55 }
 0x63b   : > { %v1835_v4 = vpop.permute.xlu0 %1834 }
 0x63c   : > { %v1856_v45 = vsel %vm698_vm1, %v1785_v53, %v1835_v4 }
 0x63f   : > { %v1843_v50 = vpop.permute.xlu0 %1842 }
 0x640   : > { %v1859_v2 = vsel %vm531_vm0, %v1856_v45, %v1843_v50 }
 0x643   : > { %v1851_v47 = vpop.permute.xlu0 %1850 }
 0x644   : > { %v1862_v62 = vsel %vm1861_vm6, %v1859_v2, %v1851_v47 }
 0x645   : > { %v1866_v43 = vmul.f32 %v1864_v60, %v1862_v62 }
 0x647   : > { %2329 = vmatprep.mubr.msk.f32.mxu0 %vm695_vm5, %v1866_v43 }
 0x648   : > { %v1853_v26 = vpop.permute.xlu1 %1852 }
 0x649   : > { %v1863_v9 = vsel %vm1861_vm6, %v1860_v21, %v1853_v26 }
 0x64a   : > { %v1867_v20 = vmul.f32 %v1865_v3, %v1863_v9 }
 0x64c   : > { %2330 = vmatmul.mubr.msk.f32.vlgmr.msra.gmra.mrb[6].mxu0 %vm695_vm5, %v1867_v20 }
 0x71f   : > { %v2331_v28 = vpop.f32.mrb[6].mxu0 }
 0x720   : > { %v1962_v16 = vadd.f32 %v2331_v28, %v2166_v12  ;;  %v1956_v17 = vpop.f32.mrb[7].mxu0 }
 0x721   : > { %v1957_v19 = vadd.f32 %v2166_v12, %v1956_v17 }
 0x722   : > { %v1968_v22 = vadd.f32 %v1966_v18, %v1962_v16 }
 0x723   : > { %v1967_v23 = vadd.f32 %v1965_v37, %v1957_v19 }
 0x724   : > { %1970 = vst.msk [vmem:[%s523_s28 + $0x8] sm:$0xff] %vm531_vm0, %v1968_v22 }
 0x725   : > { %1969 = vst.msk [vmem:[%s523_s28] sm:$0xff] %vm531_vm0, %v1967_v23 }
 0x726 PF: > { %s20_s15 = sadd.s32 1, %s2515_s15   ;;  %s3031_s13 = smov %s2511_s14 }
 0x727   : > { %p17_p5 = scmp.ge.s32.totalorder %s20_s15, 4   ;;  %s3032_s14 = smov %s3034_s16 }
 0x729   :  { %19 = sbr.rel (!%p17_p5) target bundleno = 2 (0x2), region = 113 }

</bundles_post_ra>
